<compile_context>
chip_gen: v7x
topology: tpu7x:2x2x1
jax: 0.10.0
libtpu: 0.0.40
codegen_flags: <defaults>
</compile_context>

<pallas_src>
import functools

import jax
import jax.numpy as jnp
from jax.experimental import pallas as pl
from jax.experimental.pallas import tpu as pltpu

LATENT_DIM = 32


# ----------------------------- Pallas kernels ------------------------------ #

def _matmul_bias_act_kernel(a_ref, b_ref, bias_ref, o_ref, *, act):
    # bf16 x bf16 MXU matmul, f32 accumulate; epilogue stays in f32 (v5e-safe).
    acc = jnp.dot(a_ref[...], b_ref[...], preferred_element_type=jnp.float32)
    acc = acc + bias_ref[...]
    if act == "relu":
        acc = jnp.maximum(acc, 0.0)
    elif act == "sigmoid":
        acc = jax.nn.sigmoid(acc)
    o_ref[...] = acc.astype(o_ref.dtype)


def _pick_tm(m):
    if m <= 1024:
        return m                      # single block -> single grid step
    for tm in (1024, 512, 256, 128, 64, 32, 16, 8):
        if m % tm == 0:
            return tm
    return m


def matmul_bias_act(a, b, bias, act="none"):
    """(M,K) @ (K,N) + bias with fused activation. bf16 operands, f32 acc."""
    m, k = a.shape
    k2, n = b.shape
    assert k == k2
    tm = _pick_tm(m)
    a16 = a.astype(jnp.bfloat16)
    b16 = b.astype(jnp.bfloat16)
    bias2 = bias.reshape(1, n).astype(jnp.float32)
    return pl.pallas_call(
        functools.partial(_matmul_bias_act_kernel, act=act),
        out_shape=jax.ShapeDtypeStruct((m, n), jnp.float32),
        grid_spec=pltpu.PrefetchScalarGridSpec(
            num_scalar_prefetch=0,
            grid=(m // tm,),
            in_specs=[
                pl.BlockSpec((tm, k), lambda i: (i, 0)),
                pl.BlockSpec((k, n), lambda i: (0, 0)),
                pl.BlockSpec((1, n), lambda i: (0, 0)),
            ],
            out_specs=pl.BlockSpec((tm, n), lambda i: (i, 0)),
        ),
        # M axis has no carried accumulator (K un-tiled) -> safe to shard
        # across v7x's 2 TensorCores; harmless no-op on v5e/v6e.
        compiler_params=pltpu.CompilerParams(
            dimension_semantics=("parallel",)),
    )(a16, b16, bias2)


def _latent_kernel(h_ref, wmu_ref, bmu_ref, wsig_ref, bsig_ref, eps_ref,
                   wd_ref, bd_ref, d_ref):
    """Fused fc_mu + fc_sigma + reparameterization + decoder fc (+ReLU)."""
    h = h_ref[...]
    mu = jnp.dot(h, wmu_ref[...], preferred_element_type=jnp.float32) + bmu_ref[...]
    log_s = jnp.dot(h, wsig_ref[...], preferred_element_type=jnp.float32) + bsig_ref[...]
    z = mu + jnp.exp(log_s) * eps_ref[...]
    d = jnp.dot(z.astype(wd_ref.dtype), wd_ref[...],
                preferred_element_type=jnp.float32) + bd_ref[...]
    d_ref[...] = jnp.maximum(d, 0.0)


def latent_fused(h, wmu, bmu, wsig, bsig, eps, wdec, bdec):
    """One kernel for the whole M=2 latent path (launch-latency bound)."""
    bsz = h.shape[0]
    n_out = wdec.shape[0]
    return pl.pallas_call(
        _latent_kernel,
        out_shape=jax.ShapeDtypeStruct((bsz, n_out), jnp.float32),
    )(h.astype(jnp.bfloat16),
      wmu.T.astype(jnp.bfloat16), bmu.reshape(1, -1).astype(jnp.float32),
      wsig.T.astype(jnp.bfloat16), bsig.reshape(1, -1).astype(jnp.float32),
      eps.astype(jnp.float32),
      wdec.T.astype(jnp.bfloat16), bdec.reshape(1, -1).astype(jnp.float32))


# ------------------------------ JAX glue code ------------------------------ #

def im2col_nhwc(x, k, stride, pad):
    """x: (B, H, W, C) NHWC -> (B*Ho*Wo, k*k*C); K-order = (kh, kw, c)."""
    x = jnp.pad(x, ((0, 0), (pad, pad), (pad, pad), (0, 0)))
    b, h, w, c = x.shape
    ho = (h - k) // stride + 1
    wo = (w - k) // stride + 1
    cols = jnp.concatenate(
        [x[:, di:di + stride * ho:stride, dj:dj + stride * wo:stride, :]
         for di in range(k) for dj in range(k)],
        axis=-1)                                       # (B, Ho, Wo, k*k*C)
    return cols.reshape(b * ho * wo, k * k * c), ho, wo


def conv2d(x, w, bias, stride, pad, act):
    """PyTorch Conv2d semantics on NHWC activations. w: (Cout, Cin, k, k)."""
    cout, cin, k, _ = w.shape
    bsz = x.shape[0]
    cols, ho, wo = im2col_nhwc(x, k, stride, pad)
    wm = jnp.transpose(w, (2, 3, 1, 0)).reshape(k * k * cin, cout)
    out = matmul_bias_act(cols, wm, bias, act)         # (B*Ho*Wo, Cout)
    return out.reshape(bsz, ho, wo, cout)


# ConvTranspose2d(k=4, s=2, p=1) sub-pixel decomposition.
# Output pixel (2m+r, 2n+s) only touches a 2x2 input window with a fixed 2x2
# subset of kernel taps; all 4 phases read from the same 3x3 window of the
# pad-1 input, so one GEMM with a (9*Cin, 4*Cout) weight covers the layer.
_PHASE_TAPS = ({0: 3, 1: 1},   # phase 0: 3x3-window offset -> kernel index
               {1: 2, 2: 0})   # phase 1


def _deconv_subpixel_weight(w):
    """w: (Cin, Cout, 4, 4) ConvTranspose2d weight -> (9*Cin, 4*Cout)."""
    cin, cout = w.shape[0], w.shape[1]
    big = jnp.zeros((3, 3, cin, 2, 2, cout), w.dtype)
    for r in (0, 1):
        for wy, ky in _PHASE_TAPS[r].items():
            for s in (0, 1):
                for wx, kx in _PHASE_TAPS[s].items():
                    big = big.at[wy, wx, :, r, s, :].set(w[:, :, ky, kx])
    return big.reshape(9 * cin, 4 * cout)


def conv_transpose2d(x, w, bias, act, lane_pad_to=None):
    """PyTorch ConvTranspose2d(k=4, s=2, p=1) on NHWC. w: (Cin, Cout, 4, 4)."""
    bsz, h, wd, cin = x.shape
    cout = w.shape[1]
    if lane_pad_to is not None and cout < lane_pad_to:
        # Lane-dense output stores for narrow channel counts; slice off later.
        w = jnp.pad(w, ((0, 0), (0, lane_pad_to - cout), (0, 0), (0, 0)))
        bias = jnp.pad(bias, (0, lane_pad_to - cout))
    cout_p = w.shape[1]
    xp = jnp.pad(x, ((0, 0), (1, 1), (1, 1), (0, 0)))
    cols = jnp.concatenate(
        [xp[:, dy:dy + h, dx:dx + wd, :] for dy in range(3) for dx in range(3)],
        axis=-1).reshape(bsz * h * wd, 9 * cin)
    wbig = _deconv_subpixel_weight(w)                  # (9*Cin, 4*Cout_p)
    bbig = jnp.tile(bias, 4)                           # (4*Cout_p,) order (r,s,oc)
    out = matmul_bias_act(cols, wbig, bbig, act)       # (B*H*W, 4*Cout_p)
    out = out.reshape(bsz, h, wd, 2, 2, cout_p).transpose(0, 1, 3, 2, 4, 5)
    out = out.reshape(bsz, 2 * h, 2 * wd, cout_p)      # pixel shuffle
    return out[..., :cout]


# --------------------------- Parameters (kaiming) --------------------------- #

def _kaiming(key, shape, fan_in):
    return jax.random.normal(key, shape, jnp.float32) * jnp.sqrt(2.0 / fan_in)


def init_params(key):
    ks = jax.random.split(key, 9)
    p = {}
    # Encoder: 3 -> 32 -> 64 -> 128 convs (k=4, s=2, p=1), then fc_mu / fc_sigma
    p["enc_c1_w"] = _kaiming(ks[0], (32, 3, 4, 4), 3 * 16)
    p["enc_c1_b"] = jnp.zeros((32,), jnp.float32)
    p["enc_c2_w"] = _kaiming(ks[1], (64, 32, 4, 4), 32 * 16)
    p["enc_c2_b"] = jnp.zeros((64,), jnp.float32)
    p["enc_c3_w"] = _kaiming(ks[2], (128, 64, 4, 4), 64 * 16)
    p["enc_c3_b"] = jnp.zeros((128,), jnp.float32)
    p["enc_mu_w"] = _kaiming(ks[3], (LATENT_DIM, 2048), 2048)
    p["enc_mu_b"] = jnp.zeros((LATENT_DIM,), jnp.float32)
    p["enc_sig_w"] = _kaiming(ks[4], (LATENT_DIM, 2048), 2048)
    p["enc_sig_b"] = jnp.zeros((LATENT_DIM,), jnp.float32)
    # Decoder: fc -> 128x4x4, then 3 transposed convs (k=4, s=2, p=1)
    p["dec_fc_w"] = _kaiming(ks[5], (2048, LATENT_DIM), LATENT_DIM)
    p["dec_fc_b"] = jnp.zeros((2048,), jnp.float32)
    p["dec_t1_w"] = _kaiming(ks[6], (128, 64, 4, 4), 128 * 16)
    p["dec_t1_b"] = jnp.zeros((64,), jnp.float32)
    p["dec_t2_w"] = _kaiming(ks[7], (64, 32, 4, 4), 64 * 16)
    p["dec_t2_b"] = jnp.zeros((32,), jnp.float32)
    p["dec_t3_w"] = _kaiming(ks[8], (32, 3, 4, 4), 32 * 16)
    p["dec_t3_b"] = jnp.zeros((3,), jnp.float32)
    return p


# -------------------------------- Forward ---------------------------------- #

def vae_cifar_forward(params, x, eps):
    bsz = x.shape[0]
    xh = jnp.transpose(x, (0, 2, 3, 1))                                   # NCHW -> NHWC
    # ----- VariationalEncoderCIFAR -----
    h = conv2d(xh, params["enc_c1_w"], params["enc_c1_b"], 2, 1, "relu")  # (B,16,16,32)
    h = conv2d(h, params["enc_c2_w"], params["enc_c2_b"], 2, 1, "relu")   # (B,8,8,64)
    h = conv2d(h, params["enc_c3_w"], params["enc_c3_b"], 2, 1, "relu")   # (B,4,4,128)
    h = jnp.transpose(h, (0, 3, 1, 2)).reshape(bsz, -1)                   # (B,2048), NCHW-order flatten
    # fc_mu, fc_sigma, z = mu + exp(.)*eps, decoder fc + ReLU -> one kernel
    d = latent_fused(h, params["enc_mu_w"], params["enc_mu_b"],
                     params["enc_sig_w"], params["enc_sig_b"], eps,
                     params["dec_fc_w"], params["dec_fc_b"])              # (B,2048)
    # ----- DecoderCIFAR -----
    d = d.reshape(bsz, 128, 4, 4).transpose(0, 2, 3, 1)                   # (B,4,4,128) NHWC
    d = conv_transpose2d(d, params["dec_t1_w"], params["dec_t1_b"], "relu")          # (B,8,8,64)
    d = conv_transpose2d(d, params["dec_t2_w"], params["dec_t2_b"], "relu")          # (B,16,16,32)
    out = conv_transpose2d(d, params["dec_t3_w"], params["dec_t3_b"], "sigmoid",
                           lane_pad_to=32)                                # (B,32,32,3)
    return jnp.transpose(out, (0, 3, 1, 2))                               # NHWC -> NCHW


if __name__ == "__main__":
    root = jax.random.PRNGKey(0)
    kp, kx, ke = jax.random.split(root, 3)
    params = init_params(kp)
    x = jax.random.normal(kx, (2, 3, 32, 32), jnp.float32)
    # reparameterization noise (torch Normal(0,1).sample equivalent, fixed seed)
    eps = jax.random.normal(ke, (2, LATENT_DIM), jnp.float32)

    fwd = jax.jit(vae_cifar_forward)
    out = jax.block_until_ready(fwd(params, x, eps))

    assert out.shape == (2, 3, 32, 32), out.shape
    assert out.dtype == jnp.float32
    assert bool(jnp.all(jnp.isfinite(out)))
    assert bool(jnp.all((out >= 0.0) & (out <= 1.0)))  # sigmoid output range
    print("KERNEL_OK")
</pallas_src>

<mosaic_0001>
module attributes {stable_mosaic.version = 11 : i64} {
  func.func @_matmul_bias_act_kernel(%arg0: i32, %arg1: memref<512x48xbf16, #tpu.memory_space<vmem>>, %arg2: memref<48x32xbf16, #tpu.memory_space<vmem>>, %arg3: memref<1x32xf32, #tpu.memory_space<vmem>>, %arg4: memref<512x32xf32, #tpu.memory_space<vmem>>) attributes {dimension_semantics = [#tpu.dimension_semantics<parallel>], iteration_bounds = array<i64: 1>, scalar_prefetch = 0 : i64, scratch_operands = 0 : i64, tpu.core_type = #tpu.core_type<tc>, window_params = [{transform_indices = @transform_0, window_bounds = array<i64: 512, 48>}, {pipeline_mode = #tpu.pipeline_mode<synchronous>, transform_indices = @transform_1, window_bounds = array<i64: 48, 32>}, {pipeline_mode = #tpu.pipeline_mode<synchronous>, transform_indices = @transform_2, window_bounds = array<i64: 1, 32>}, {transform_indices = @transform_3, window_bounds = array<i64: 512, 32>}]} {
    %c0 = arith.constant 0 : index
    %c0_0 = arith.constant 0 : index
    %0 = vector.load %arg1[%c0, %c0_0] : memref<512x48xbf16, #tpu.memory_space<vmem>>, vector<512x48xbf16>
    %c0_1 = arith.constant 0 : index
    %c0_2 = arith.constant 0 : index
    %1 = vector.load %arg2[%c0_1, %c0_2] : memref<48x32xbf16, #tpu.memory_space<vmem>>, vector<48x32xbf16>
    %cst = arith.constant dense<0.000000e+00> : vector<512x32xf32>
    %2 = tpu.matmul %0, %1, %cst {dimension_numbers = #tpu.dot_dimension_numbers<[1], [0], [0], [1], [0, 0, 1, 1], [], []>} : vector<512x48xbf16>, vector<48x32xbf16>, vector<512x32xf32> -> vector<512x32xf32>
    %c0_3 = arith.constant 0 : index
    %c0_4 = arith.constant 0 : index
    %3 = vector.load %arg3[%c0_3, %c0_4] : memref<1x32xf32, #tpu.memory_space<vmem>>, vector<1x32xf32>
    %4 = vector.broadcast %3 : vector<1x32xf32> to vector<512x32xf32>
    %5 = arith.addf %2, %4 : vector<512x32xf32>
    %cst_5 = arith.constant 0.000000e+00 : f32
    %6 = vector.broadcast %cst_5 : f32 to vector<512x32xf32>
    %7 = arith.maximumf %5, %6 : vector<512x32xf32>
    %c0_6 = arith.constant 0 : index
    %c0_7 = arith.constant 0 : index
    %8 = vector.load %arg4[%c0_6, %c0_7] : memref<512x32xf32, #tpu.memory_space<vmem>>, vector<512x32xf32>
    tpu.vector_store %arg4[%c0_6, %c0_7], %7 {strides = array<i32>} : memref<512x32xf32, #tpu.memory_space<vmem>>, vector<512x32xf32>,
    return
  }
  func.func @transform_0(%arg0: i32) -> (i32, i32) {
    %c0_i32 = arith.constant 0 : i32
    %c0_i32_0 = arith.constant 0 : i32
    return %arg0, %c0_i32 : i32, i32
  }
  func.func @transform_1(%arg0: i32) -> (i32, i32) {
    %c0_i32 = arith.constant 0 : i32
    %c0_i32_0 = arith.constant 0 : i32
    %c0_i32_1 = arith.constant 0 : i32
    return %c0_i32, %c0_i32_0 : i32, i32
  }
  func.func @transform_2(%arg0: i32) -> (i32, i32) {
    %c0_i32 = arith.constant 0 : i32
    %c0_i32_0 = arith.constant 0 : i32
    %c0_i32_1 = arith.constant 0 : i32
    return %c0_i32, %c0_i32_0 : i32, i32
  }
  func.func @transform_3(%arg0: i32) -> (i32, i32) {
    %c0_i32 = arith.constant 0 : i32
    %c0_i32_0 = arith.constant 0 : i32
    return %arg0, %c0_i32 : i32, i32
  }
}

module attributes {stable_mosaic.version = 11 : i64} {
  func.func @_matmul_bias_act_kernel(%arg0: i32, %arg1: memref<128x512xbf16, #tpu.memory_space<vmem>>, %arg2: memref<512x64xbf16, #tpu.memory_space<vmem>>, %arg3: memref<1x64xf32, #tpu.memory_space<vmem>>, %arg4: memref<128x64xf32, #tpu.memory_space<vmem>>) attributes {dimension_semantics = [#tpu.dimension_semantics<parallel>], iteration_bounds = array<i64: 1>, scalar_prefetch = 0 : i64, scratch_operands = 0 : i64, tpu.core_type = #tpu.core_type<tc>, window_params = [{transform_indices = @transform_0, window_bounds = array<i64: 128, 512>}, {pipeline_mode = #tpu.pipeline_mode<synchronous>, transform_indices = @transform_1, window_bounds = array<i64: 512, 64>}, {pipeline_mode = #tpu.pipeline_mode<synchronous>, transform_indices = @transform_2, window_bounds = array<i64: 1, 64>}, {transform_indices = @transform_3, window_bounds = array<i64: 128, 64>}]} {
    %c0 = arith.constant 0 : index
    %c0_0 = arith.constant 0 : index
    %0 = vector.load %arg1[%c0, %c0_0] : memref<128x512xbf16, #tpu.memory_space<vmem>>, vector<128x512xbf16>
    %c0_1 = arith.constant 0 : index
    %c0_2 = arith.constant 0 : index
    %1 = vector.load %arg2[%c0_1, %c0_2] : memref<512x64xbf16, #tpu.memory_space<vmem>>, vector<512x64xbf16>
    %cst = arith.constant dense<0.000000e+00> : vector<128x64xf32>
    %2 = tpu.matmul %0, %1, %cst {dimension_numbers = #tpu.dot_dimension_numbers<[1], [0], [0], [1], [0, 0, 1, 1], [], []>} : vector<128x512xbf16>, vector<512x64xbf16>, vector<128x64xf32> -> vector<128x64xf32>
    %c0_3 = arith.constant 0 : index
    %c0_4 = arith.constant 0 : index
    %3 = vector.load %arg3[%c0_3, %c0_4] : memref<1x64xf32, #tpu.memory_space<vmem>>, vector<1x64xf32>
    %4 = vector.broadcast %3 : vector<1x64xf32> to vector<128x64xf32>
    %5 = arith.addf %2, %4 : vector<128x64xf32>
    %cst_5 = arith.constant 0.000000e+00 : f32
    %6 = vector.broadcast %cst_5 : f32 to vector<128x64xf32>
    %7 = arith.maximumf %5, %6 : vector<128x64xf32>
    %c0_6 = arith.constant 0 : index
    %c0_7 = arith.constant 0 : index
    %8 = vector.load %arg4[%c0_6, %c0_7] : memref<128x64xf32, #tpu.memory_space<vmem>>, vector<128x64xf32>
    tpu.vector_store %arg4[%c0_6, %c0_7], %7 {strides = array<i32>} : memref<128x64xf32, #tpu.memory_space<vmem>>, vector<128x64xf32>,
    return
  }
  func.func @transform_0(%arg0: i32) -> (i32, i32) {
    %c0_i32 = arith.constant 0 : i32
    %c0_i32_0 = arith.constant 0 : i32
    return %arg0, %c0_i32 : i32, i32
  }
  func.func @transform_1(%arg0: i32) -> (i32, i32) {
    %c0_i32 = arith.constant 0 : i32
    %c0_i32_0 = arith.constant 0 : i32
    %c0_i32_1 = arith.constant 0 : i32
    return %c0_i32, %c0_i32_0 : i32, i32
  }
  func.func @transform_2(%arg0: i32) -> (i32, i32) {
    %c0_i32 = arith.constant 0 : i32
    %c0_i32_0 = arith.constant 0 : i32
    %c0_i32_1 = arith.constant 0 : i32
    return %c0_i32, %c0_i32_0 : i32, i32
  }
  func.func @transform_3(%arg0: i32) -> (i32, i32) {
    %c0_i32 = arith.constant 0 : i32
    %c0_i32_0 = arith.constant 0 : i32
    return %arg0, %c0_i32 : i32, i32
  }
}

module attributes {stable_mosaic.version = 11 : i64} {
  func.func @_matmul_bias_act_kernel(%arg0: i32, %arg1: memref<32x1024xbf16, #tpu.memory_space<vmem>>, %arg2: memref<1024x128xbf16, #tpu.memory_space<vmem>>, %arg3: memref<1x128xf32, #tpu.memory_space<vmem>>, %arg4: memref<32x128xf32, #tpu.memory_space<vmem>>) attributes {dimension_semantics = [#tpu.dimension_semantics<parallel>], iteration_bounds = array<i64: 1>, scalar_prefetch = 0 : i64, scratch_operands = 0 : i64, tpu.core_type = #tpu.core_type<tc>, window_params = [{transform_indices = @transform_0, window_bounds = array<i64: 32, 1024>}, {pipeline_mode = #tpu.pipeline_mode<synchronous>, transform_indices = @transform_1, window_bounds = array<i64: 1024, 128>}, {pipeline_mode = #tpu.pipeline_mode<synchronous>, transform_indices = @transform_2, window_bounds = array<i64: 1, 128>}, {transform_indices = @transform_3, window_bounds = array<i64: 32, 128>}]} {
    %c0 = arith.constant 0 : index
    %c0_0 = arith.constant 0 : index
    %0 = vector.load %arg1[%c0, %c0_0] : memref<32x1024xbf16, #tpu.memory_space<vmem>>, vector<32x1024xbf16>
    %c0_1 = arith.constant 0 : index
    %c0_2 = arith.constant 0 : index
    %1 = vector.load %arg2[%c0_1, %c0_2] : memref<1024x128xbf16, #tpu.memory_space<vmem>>, vector<1024x128xbf16>
    %cst = arith.constant dense<0.000000e+00> : vector<32x128xf32>
    %2 = tpu.matmul %0, %1, %cst {dimension_numbers = #tpu.dot_dimension_numbers<[1], [0], [0], [1], [0, 0, 1, 1], [], []>} : vector<32x1024xbf16>, vector<1024x128xbf16>, vector<32x128xf32> -> vector<32x128xf32>
    %c0_3 = arith.constant 0 : index
    %c0_4 = arith.constant 0 : index
    %3 = vector.load %arg3[%c0_3, %c0_4] : memref<1x128xf32, #tpu.memory_space<vmem>>, vector<1x128xf32>
    %4 = vector.broadcast %3 : vector<1x128xf32> to vector<32x128xf32>
    %5 = arith.addf %2, %4 : vector<32x128xf32>
    %cst_5 = arith.constant 0.000000e+00 : f32
    %6 = vector.broadcast %cst_5 : f32 to vector<32x128xf32>
    %7 = arith.maximumf %5, %6 : vector<32x128xf32>
    %c0_6 = arith.constant 0 : index
    %c0_7 = arith.constant 0 : index
    %8 = vector.load %arg4[%c0_6, %c0_7] : memref<32x128xf32, #tpu.memory_space<vmem>>, vector<32x128xf32>
    tpu.vector_store %arg4[%c0_6, %c0_7], %7 {strides = array<i32>} : memref<32x128xf32, #tpu.memory_space<vmem>>, vector<32x128xf32>,
    return
  }
  func.func @transform_0(%arg0: i32) -> (i32, i32) {
    %c0_i32 = arith.constant 0 : i32
    %c0_i32_0 = arith.constant 0 : i32
    return %arg0, %c0_i32 : i32, i32
  }
  func.func @transform_1(%arg0: i32) -> (i32, i32) {
    %c0_i32 = arith.constant 0 : i32
    %c0_i32_0 = arith.constant 0 : i32
    %c0_i32_1 = arith.constant 0 : i32
    return %c0_i32, %c0_i32_0 : i32, i32
  }
  func.func @transform_2(%arg0: i32) -> (i32, i32) {
    %c0_i32 = arith.constant 0 : i32
    %c0_i32_0 = arith.constant 0 : i32
    %c0_i32_1 = arith.constant 0 : i32
    return %c0_i32, %c0_i32_0 : i32, i32
  }
  func.func @transform_3(%arg0: i32) -> (i32, i32) {
    %c0_i32 = arith.constant 0 : i32
    %c0_i32_0 = arith.constant 0 : i32
    return %arg0, %c0_i32 : i32, i32
  }
}

module attributes {stable_mosaic.version = 11 : i64} {
  func.func @_latent_kernel(%arg0: memref<2x2048xbf16, #tpu.memory_space<vmem>>, %arg1: memref<2048x32xbf16, #tpu.memory_space<vmem>>, %arg2: memref<1x32xf32, #tpu.memory_space<vmem>>, %arg3: memref<2048x32xbf16, #tpu.memory_space<vmem>>, %arg4: memref<1x32xf32, #tpu.memory_space<vmem>>, %arg5: memref<2x32xf32, #tpu.memory_space<vmem>>, %arg6: memref<32x2048xbf16, #tpu.memory_space<vmem>>, %arg7: memref<1x2048xf32, #tpu.memory_space<vmem>>, %arg8: memref<2x2048xf32, #tpu.memory_space<vmem>>) attributes {dimension_semantics = [], scalar_prefetch = 0 : i64, scratch_operands = 0 : i64, tpu.core_type = #tpu.core_type<tc>} {
    %c0 = arith.constant 0 : index
    %c0_0 = arith.constant 0 : index
    %0 = vector.load %arg0[%c0, %c0_0] : memref<2x2048xbf16, #tpu.memory_space<vmem>>, vector<2x2048xbf16>
    %c0_1 = arith.constant 0 : index
    %c0_2 = arith.constant 0 : index
    %1 = vector.load %arg1[%c0_1, %c0_2] : memref<2048x32xbf16, #tpu.memory_space<vmem>>, vector<2048x32xbf16>
    %cst = arith.constant dense<0.000000e+00> : vector<2x32xf32>
    %2 = tpu.matmul %0, %1, %cst {dimension_numbers = #tpu.dot_dimension_numbers<[1], [0], [0], [1], [0, 0, 1, 1], [], []>} : vector<2x2048xbf16>, vector<2048x32xbf16>, vector<2x32xf32> -> vector<2x32xf32>
    %c0_3 = arith.constant 0 : index
    %c0_4 = arith.constant 0 : index
    %3 = vector.load %arg2[%c0_3, %c0_4] : memref<1x32xf32, #tpu.memory_space<vmem>>, vector<1x32xf32>
    %4 = vector.broadcast %3 : vector<1x32xf32> to vector<2x32xf32>
    %5 = arith.addf %2, %4 : vector<2x32xf32>
    %c0_5 = arith.constant 0 : index
    %c0_6 = arith.constant 0 : index
    %6 = vector.load %arg3[%c0_5, %c0_6] : memref<2048x32xbf16, #tpu.memory_space<vmem>>, vector<2048x32xbf16>
    %cst_7 = arith.constant dense<0.000000e+00> : vector<2x32xf32>
    %7 = tpu.matmul %0, %6, %cst_7 {dimension_numbers = #tpu.dot_dimension_numbers<[1], [0], [0], [1], [0, 0, 1, 1], [], []>} : vector<2x2048xbf16>, vector<2048x32xbf16>, vector<2x32xf32> -> vector<2x32xf32>
    %c0_8 = arith.constant 0 : index
    %c0_9 = arith.constant 0 : index
    %8 = vector.load %arg4[%c0_8, %c0_9] : memref<1x32xf32, #tpu.memory_space<vmem>>, vector<1x32xf32>
    %9 = vector.broadcast %8 : vector<1x32xf32> to vector<2x32xf32>
    %10 = arith.addf %7, %9 : vector<2x32xf32>
    %11 = math.exp %10 : vector<2x32xf32>
    %c0_10 = arith.constant 0 : index
    %c0_11 = arith.constant 0 : index
    %12 = vector.load %arg5[%c0_10, %c0_11] : memref<2x32xf32, #tpu.memory_space<vmem>>, vector<2x32xf32>
    %13 = arith.mulf %11, %12 : vector<2x32xf32>
    %14 = arith.addf %5, %13 : vector<2x32xf32>
    %15 = arith.truncf %14 : vector<2x32xf32> to vector<2x32xbf16>
    %c0_12 = arith.constant 0 : index
    %c0_13 = arith.constant 0 : index
    %16 = vector.load %arg6[%c0_12, %c0_13] : memref<32x2048xbf16, #tpu.memory_space<vmem>>, vector<32x2048xbf16>
    %cst_14 = arith.constant dense<0.000000e+00> : vector<2x2048xf32>
    %17 = tpu.matmul %15, %16, %cst_14 {dimension_numbers = #tpu.dot_dimension_numbers<[1], [0], [0], [1], [0, 0, 1, 1], [], []>} : vector<2x32xbf16>, vector<32x2048xbf16>, vector<2x2048xf32> -> vector<2x2048xf32>
    %c0_15 = arith.constant 0 : index
    %c0_16 = arith.constant 0 : index
    %18 = vector.load %arg7[%c0_15, %c0_16] : memref<1x2048xf32, #tpu.memory_space<vmem>>, vector<1x2048xf32>
    %19 = vector.broadcast %18 : vector<1x2048xf32> to vector<2x2048xf32>
    %20 = arith.addf %17, %19 : vector<2x2048xf32>
    %cst_17 = arith.constant 0.000000e+00 : f32
    %21 = vector.broadcast %cst_17 : f32 to vector<2x2048xf32>
    %22 = arith.maximumf %20, %21 : vector<2x2048xf32>
    %c0_18 = arith.constant 0 : index
    %c0_19 = arith.constant 0 : index
    %23 = vector.load %arg8[%c0_18, %c0_19] : memref<2x2048xf32, #tpu.memory_space<vmem>>, vector<2x2048xf32>
    tpu.vector_store %arg8[%c0_18, %c0_19], %22 {strides = array<i32>} : memref<2x2048xf32, #tpu.memory_space<vmem>>, vector<2x2048xf32>,
    return
  }
}

module attributes {stable_mosaic.version = 11 : i64} {
  func.func @_matmul_bias_act_kernel(%arg0: i32, %arg1: memref<32x1152xbf16, #tpu.memory_space<vmem>>, %arg2: memref<1152x256xbf16, #tpu.memory_space<vmem>>, %arg3: memref<1x256xf32, #tpu.memory_space<vmem>>, %arg4: memref<32x256xf32, #tpu.memory_space<vmem>>) attributes {dimension_semantics = [#tpu.dimension_semantics<parallel>], iteration_bounds = array<i64: 1>, scalar_prefetch = 0 : i64, scratch_operands = 0 : i64, tpu.core_type = #tpu.core_type<tc>, window_params = [{transform_indices = @transform_0, window_bounds = array<i64: 32, 1152>}, {pipeline_mode = #tpu.pipeline_mode<synchronous>, transform_indices = @transform_1, window_bounds = array<i64: 1152, 256>}, {pipeline_mode = #tpu.pipeline_mode<synchronous>, transform_indices = @transform_2, window_bounds = array<i64: 1, 256>}, {transform_indices = @transform_3, window_bounds = array<i64: 32, 256>}]} {
    %c0 = arith.constant 0 : index
    %c0_0 = arith.constant 0 : index
    %0 = vector.load %arg1[%c0, %c0_0] : memref<32x1152xbf16, #tpu.memory_space<vmem>>, vector<32x1152xbf16>
    %c0_1 = arith.constant 0 : index
    %c0_2 = arith.constant 0 : index
    %1 = vector.load %arg2[%c0_1, %c0_2] : memref<1152x256xbf16, #tpu.memory_space<vmem>>, vector<1152x256xbf16>
    %cst = arith.constant dense<0.000000e+00> : vector<32x256xf32>
    %2 = tpu.matmul %0, %1, %cst {dimension_numbers = #tpu.dot_dimension_numbers<[1], [0], [0], [1], [0, 0, 1, 1], [], []>} : vector<32x1152xbf16>, vector<1152x256xbf16>, vector<32x256xf32> -> vector<32x256xf32>
    %c0_3 = arith.constant 0 : index
    %c0_4 = arith.constant 0 : index
    %3 = vector.load %arg3[%c0_3, %c0_4] : memref<1x256xf32, #tpu.memory_space<vmem>>, vector<1x256xf32>
    %4 = vector.broadcast %3 : vector<1x256xf32> to vector<32x256xf32>
    %5 = arith.addf %2, %4 : vector<32x256xf32>
    %cst_5 = arith.constant 0.000000e+00 : f32
    %6 = vector.broadcast %cst_5 : f32 to vector<32x256xf32>
    %7 = arith.maximumf %5, %6 : vector<32x256xf32>
    %c0_6 = arith.constant 0 : index
    %c0_7 = arith.constant 0 : index
    %8 = vector.load %arg4[%c0_6, %c0_7] : memref<32x256xf32, #tpu.memory_space<vmem>>, vector<32x256xf32>
    tpu.vector_store %arg4[%c0_6, %c0_7], %7 {strides = array<i32>} : memref<32x256xf32, #tpu.memory_space<vmem>>, vector<32x256xf32>,
    return
  }
  func.func @transform_0(%arg0: i32) -> (i32, i32) {
    %c0_i32 = arith.constant 0 : i32
    %c0_i32_0 = arith.constant 0 : i32
    return %arg0, %c0_i32 : i32, i32
  }
  func.func @transform_1(%arg0: i32) -> (i32, i32) {
    %c0_i32 = arith.constant 0 : i32
    %c0_i32_0 = arith.constant 0 : i32
    %c0_i32_1 = arith.constant 0 : i32
    return %c0_i32, %c0_i32_0 : i32, i32
  }
  func.func @transform_2(%arg0: i32) -> (i32, i32) {
    %c0_i32 = arith.constant 0 : i32
    %c0_i32_0 = arith.constant 0 : i32
    %c0_i32_1 = arith.constant 0 : i32
    return %c0_i32, %c0_i32_0 : i32, i32
  }
  func.func @transform_3(%arg0: i32) -> (i32, i32) {
    %c0_i32 = arith.constant 0 : i32
    %c0_i32_0 = arith.constant 0 : i32
    return %arg0, %c0_i32 : i32, i32
  }
}

module attributes {stable_mosaic.version = 11 : i64} {
  func.func @_matmul_bias_act_kernel(%arg0: i32, %arg1: memref<128x576xbf16, #tpu.memory_space<vmem>>, %arg2: memref<576x128xbf16, #tpu.memory_space<vmem>>, %arg3: memref<1x128xf32, #tpu.memory_space<vmem>>, %arg4: memref<128x128xf32, #tpu.memory_space<vmem>>) attributes {dimension_semantics = [#tpu.dimension_semantics<parallel>], iteration_bounds = array<i64: 1>, scalar_prefetch = 0 : i64, scratch_operands = 0 : i64, tpu.core_type = #tpu.core_type<tc>, window_params = [{transform_indices = @transform_0, window_bounds = array<i64: 128, 576>}, {pipeline_mode = #tpu.pipeline_mode<synchronous>, transform_indices = @transform_1, window_bounds = array<i64: 576, 128>}, {pipeline_mode = #tpu.pipeline_mode<synchronous>, transform_indices = @transform_2, window_bounds = array<i64: 1, 128>}, {transform_indices = @transform_3, window_bounds = array<i64: 128, 128>}]} {
    %c0 = arith.constant 0 : index
    %c0_0 = arith.constant 0 : index
    %0 = vector.load %arg1[%c0, %c0_0] : memref<128x576xbf16, #tpu.memory_space<vmem>>, vector<128x576xbf16>
    %c0_1 = arith.constant 0 : index
    %c0_2 = arith.constant 0 : index
    %1 = vector.load %arg2[%c0_1, %c0_2] : memref<576x128xbf16, #tpu.memory_space<vmem>>, vector<576x128xbf16>
    %cst = arith.constant dense<0.000000e+00> : vector<128x128xf32>
    %2 = tpu.matmul %0, %1, %cst {dimension_numbers = #tpu.dot_dimension_numbers<[1], [0], [0], [1], [0, 0, 1, 1], [], []>} : vector<128x576xbf16>, vector<576x128xbf16>, vector<128x128xf32> -> vector<128x128xf32>
    %c0_3 = arith.constant 0 : index
    %c0_4 = arith.constant 0 : index
    %3 = vector.load %arg3[%c0_3, %c0_4] : memref<1x128xf32, #tpu.memory_space<vmem>>, vector<1x128xf32>
    %4 = vector.broadcast %3 : vector<1x128xf32> to vector<128x128xf32>
    %5 = arith.addf %2, %4 : vector<128x128xf32>
    %cst_5 = arith.constant 0.000000e+00 : f32
    %6 = vector.broadcast %cst_5 : f32 to vector<128x128xf32>
    %7 = arith.maximumf %5, %6 : vector<128x128xf32>
    %c0_6 = arith.constant 0 : index
    %c0_7 = arith.constant 0 : index
    %8 = vector.load %arg4[%c0_6, %c0_7] : memref<128x128xf32, #tpu.memory_space<vmem>>, vector<128x128xf32>
    tpu.vector_store %arg4[%c0_6, %c0_7], %7 {strides = array<i32>} : memref<128x128xf32, #tpu.memory_space<vmem>>, vector<128x128xf32>,
    return
  }
  func.func @transform_0(%arg0: i32) -> (i32, i32) {
    %c0_i32 = arith.constant 0 : i32
    %c0_i32_0 = arith.constant 0 : i32
    return %arg0, %c0_i32 : i32, i32
  }
  func.func @transform_1(%arg0: i32) -> (i32, i32) {
    %c0_i32 = arith.constant 0 : i32
    %c0_i32_0 = arith.constant 0 : i32
    %c0_i32_1 = arith.constant 0 : i32
    return %c0_i32, %c0_i32_0 : i32, i32
  }
  func.func @transform_2(%arg0: i32) -> (i32, i32) {
    %c0_i32 = arith.constant 0 : i32
    %c0_i32_0 = arith.constant 0 : i32
    %c0_i32_1 = arith.constant 0 : i32
    return %c0_i32, %c0_i32_0 : i32, i32
  }
  func.func @transform_3(%arg0: i32) -> (i32, i32) {
    %c0_i32 = arith.constant 0 : i32
    %c0_i32_0 = arith.constant 0 : i32
    return %arg0, %c0_i32 : i32, i32
  }
}

module attributes {stable_mosaic.version = 11 : i64} {
  func.func @_matmul_bias_act_kernel(%arg0: i32, %arg1: memref<512x288xbf16, #tpu.memory_space<vmem>>, %arg2: memref<288x128xbf16, #tpu.memory_space<vmem>>, %arg3: memref<1x128xf32, #tpu.memory_space<vmem>>, %arg4: memref<512x128xf32, #tpu.memory_space<vmem>>) attributes {dimension_semantics = [#tpu.dimension_semantics<parallel>], iteration_bounds = array<i64: 1>, scalar_prefetch = 0 : i64, scratch_operands = 0 : i64, tpu.core_type = #tpu.core_type<tc>, window_params = [{transform_indices = @transform_0, window_bounds = array<i64: 512, 288>}, {pipeline_mode = #tpu.pipeline_mode<synchronous>, transform_indices = @transform_1, window_bounds = array<i64: 288, 128>}, {pipeline_mode = #tpu.pipeline_mode<synchronous>, transform_indices = @transform_2, window_bounds = array<i64: 1, 128>}, {transform_indices = @transform_3, window_bounds = array<i64: 512, 128>}]} {
    %c0 = arith.constant 0 : index
    %c0_0 = arith.constant 0 : index
    %0 = vector.load %arg1[%c0, %c0_0] : memref<512x288xbf16, #tpu.memory_space<vmem>>, vector<512x288xbf16>
    %c0_1 = arith.constant 0 : index
    %c0_2 = arith.constant 0 : index
    %1 = vector.load %arg2[%c0_1, %c0_2] : memref<288x128xbf16, #tpu.memory_space<vmem>>, vector<288x128xbf16>
    %cst = arith.constant dense<0.000000e+00> : vector<512x128xf32>
    %2 = tpu.matmul %0, %1, %cst {dimension_numbers = #tpu.dot_dimension_numbers<[1], [0], [0], [1], [0, 0, 1, 1], [], []>} : vector<512x288xbf16>, vector<288x128xbf16>, vector<512x128xf32> -> vector<512x128xf32>
    %c0_3 = arith.constant 0 : index
    %c0_4 = arith.constant 0 : index
    %3 = vector.load %arg3[%c0_3, %c0_4] : memref<1x128xf32, #tpu.memory_space<vmem>>, vector<1x128xf32>
    %4 = vector.broadcast %3 : vector<1x128xf32> to vector<512x128xf32>
    %5 = arith.addf %2, %4 : vector<512x128xf32>
    %6 = arith.negf %5 : vector<512x128xf32>
    %7 = math.exp %6 : vector<512x128xf32>
    %cst_5 = arith.constant 1.000000e+00 : f32
    %8 = vector.broadcast %cst_5 : f32 to vector<512x128xf32>
    %9 = arith.addf %8, %7 : vector<512x128xf32>
    %10 = arith.divf %8, %9 : vector<512x128xf32>
    %c0_6 = arith.constant 0 : index
    %c0_7 = arith.constant 0 : index
    %11 = vector.load %arg4[%c0_6, %c0_7] : memref<512x128xf32, #tpu.memory_space<vmem>>, vector<512x128xf32>
    tpu.vector_store %arg4[%c0_6, %c0_7], %10 {strides = array<i32>} : memref<512x128xf32, #tpu.memory_space<vmem>>, vector<512x128xf32>,
    return
  }
  func.func @transform_0(%arg0: i32) -> (i32, i32) {
    %c0_i32 = arith.constant 0 : i32
    %c0_i32_0 = arith.constant 0 : i32
    return %arg0, %c0_i32 : i32, i32
  }
  func.func @transform_1(%arg0: i32) -> (i32, i32) {
    %c0_i32 = arith.constant 0 : i32
    %c0_i32_0 = arith.constant 0 : i32
    %c0_i32_1 = arith.constant 0 : i32
    return %c0_i32, %c0_i32_0 : i32, i32
  }
  func.func @transform_2(%arg0: i32) -> (i32, i32) {
    %c0_i32 = arith.constant 0 : i32
    %c0_i32_0 = arith.constant 0 : i32
    %c0_i32_1 = arith.constant 0 : i32
    return %c0_i32, %c0_i32_0 : i32, i32
  }
  func.func @transform_3(%arg0: i32) -> (i32, i32) {
    %c0_i32 = arith.constant 0 : i32
    %c0_i32_0 = arith.constant 0 : i32
    return %arg0, %c0_i32 : i32, i32
  }
}

</mosaic_0001>

<bundles_post_ra>
// kernel: vae_cifar_forward.7
= control target key start
LH: loop header
LB: loop body
LE: loop exit
PB: predicated region body
PF: predicated region fallthrough
CT: control target
= control target key end

     0   :  { %vm270_vm0 = vcmask 392192   ;;  %vm720_vm1 = vcmask 261120   ;;  %s1485_s1 = inlined_call_operand.vmem [shape: bf16[48,32], index: 1, kind: input, shape index: {}]   ;;  %s1486_s0 = inlined_call_operand.vmem [shape: bf16[512,48], index: 0, kind: input, shape index: {}]   ;;  %s1487_s2 = inlined_call_operand.vmem [shape: f32[1,32], index: 2, kind: input, shape index: {}]   ;;  %s1488_s3 = inlined_call_operand.vmem [shape: f32[512,32], index: 3, kind: output, shape index: {}]  }
   0x1   :  { %v968_v0 = vld [vmem:[%s1485_s1] sm:$0xff]   ;;  %v969_v1 = vld [vmem:[%s1485_s1 + $0x8] sm:$0xff]   ;;  %v970_v2 = vld [vmem:[%s1485_s1 + $0x10] sm:$0xff]  }
   0x2   :  { %892 = vmatprep.subr.bf16.mxu0 %v968_v0  ;;  %962 = vmatprep.subr.bf16.mxu1 %v968_v0  ;;  %v971_v3 = vld [vmem:[%s1486_s0] sm:$0xff]   ;;  %v973_v5 = vld [vmem:[%s1486_s0 + $0x8] sm:$0xff]   ;;  %v975_v7 = vld [vmem:[%s1486_s0 + $0x10] sm:$0xff]  }
   0x3   :  { %893 = vmatpush3.bf16.msra.mxu0 %v968_v0  ;;  %965 = vmatpush3.bf16.msra.mxu1 %v968_v0  ;;  %v972_v4 = vld [vmem:[%s1486_s0 + $0x80] sm:$0xff]   ;;  %v974_v6 = vld [vmem:[%s1486_s0 + $0x88] sm:$0xff]   ;;  %v976_v8 = vld [vmem:[%s1486_s0 + $0x90] sm:$0xff]  }
   0x4   :  { %894 = vmatprep.subr.bf16.mxu0 %v969_v1  ;;  %963 = vmatprep.subr.bf16.mxu1 %v969_v1  ;;  %v977_v9 = vld [vmem:[%s1486_s0 + $0x18] sm:$0xff]   ;;  %v979_v11 = vld [vmem:[%s1486_s0 + $0x20] sm:$0xff]   ;;  %v981_v13 = vld [vmem:[%s1486_s0 + $0x28] sm:$0xff]  }
   0x5   :  { %898 = vmatprep.mubr.msk.bf16.mxu0 %vm270_vm0, %v971_v3  ;;  %930 = vmatprep.mubr.msk.bf16.mxu1 %vm270_vm0, %v972_v4  ;;  %v978_v10 = vld [vmem:[%s1486_s0 + $0x98] sm:$0xff]   ;;  %v980_v12 = vld [vmem:[%s1486_s0 + $0xa0] sm:$0xff]   ;;  %v982_v14 = vld [vmem:[%s1486_s0 + $0xa8] sm:$0xff]  }
   0x6   :  { %v983_v15 = vld [vmem:[%s1486_s0 + $0x30] sm:$0xff]   ;;  %v985_v17 = vld [vmem:[%s1486_s0 + $0x38] sm:$0xff]   ;;  %v987_v19 = vld [vmem:[%s1486_s0 + $0x40] sm:$0xff]  }
   0x7   :  { %895 = vmatpush3.bf16.msra.mxu0 %v969_v1  ;;  %966 = vmatpush3.bf16.msra.mxu1 %v969_v1  ;;  %v984_v16 = vld [vmem:[%s1486_s0 + $0xb0] sm:$0xff]   ;;  %v986_v18 = vld [vmem:[%s1486_s0 + $0xb8] sm:$0xff]   ;;  %v988_v20 = vld [vmem:[%s1486_s0 + $0xc0] sm:$0xff]  }
   0x8   :  { %896 = vmatprep.subr.bf16.mxu0 %v970_v2  ;;  %964 = vmatprep.subr.bf16.mxu1 %v970_v2  ;;  %v989_v21 = vld [vmem:[%s1486_s0 + $0x48] sm:$0xff]   ;;  %v991_v23 = vld [vmem:[%s1486_s0 + $0x50] sm:$0xff]   ;;  %v993_v25 = vld [vmem:[%s1486_s0 + $0x58] sm:$0xff]  }
   0x9   :  { %v990_v22 = vld [vmem:[%s1486_s0 + $0xc8] sm:$0xff]   ;;  %v992_v24 = vld [vmem:[%s1486_s0 + $0xd0] sm:$0xff]   ;;  %v994_v26 = vld [vmem:[%s1486_s0 + $0xd8] sm:$0xff]  }
   0xa   :  { %v995_v27 = vld [vmem:[%s1486_s0 + $0x60] sm:$0xff]   ;;  %v997_v29 = vld [vmem:[%s1486_s0 + $0x68] sm:$0xff]   ;;  %v999_v31 = vld [vmem:[%s1486_s0 + $0x70] sm:$0xff]  }
   0xb   :  { %897 = vmatpush3.bf16.msra.mxu0 %v970_v2  ;;  %967 = vmatpush3.bf16.msra.mxu1 %v970_v2  ;;  %v996_v28 = vld [vmem:[%s1486_s0 + $0xe0] sm:$0xff]   ;;  %v998_v30 = vld [vmem:[%s1486_s0 + $0xe8] sm:$0xff]   ;;  %v1000_v32 = vld [vmem:[%s1486_s0 + $0xf0] sm:$0xff]  }
   0xc   :  { %v1001_v33 = vld [vmem:[%s1486_s0 + $0x78] sm:$0xff]   ;;  %v1163_v35 = vld [vmem:[%s1487_s2] ss:$0 sm:$0xff] }
   0xd   :  { %v1002_v34 = vld [vmem:[%s1486_s0 + $0xf8] sm:$0xff]  }
   0xe   :  { %899 = vmatmul.mubr.msk.bf16.vlgmr.msra.gmra.mrb[0].mxu0 %vm270_vm0, %v973_v5  ;;  %931 = vmatmul.mubr.msk.bf16.vlgmr.msra.gmra.mrb[0].mxu1 %vm270_vm0, %v974_v6 }
   0xf   :  { %902 = vmatprep.mubr.msk.bf16.mxu0 %vm270_vm0, %v975_v7  ;;  %934 = vmatprep.mubr.msk.bf16.mxu1 %vm270_vm0, %v976_v8 }
  0x16   :  { %903 = vmatmul.mubr.msk.bf16.gmra.mrb[4].mxu0 %vm270_vm0, %v977_v9  ;;  %935 = vmatmul.mubr.msk.bf16.gmra.mrb[4].mxu1 %vm270_vm0, %v978_v10 }
  0x17   :  { %906 = vmatprep.mubr.msk.bf16.mxu0 %vm270_vm0, %v979_v11  ;;  %938 = vmatprep.mubr.msk.bf16.mxu1 %vm270_vm0, %v980_v12 }
  0x1e   :  { %907 = vmatmul.mubr.msk.bf16.gmra.mrb[8].mxu0 %vm270_vm0, %v981_v13  ;;  %939 = vmatmul.mubr.msk.bf16.gmra.mrb[8].mxu1 %vm270_vm0, %v982_v14 }
  0x1f   :  { %910 = vmatprep.mubr.msk.bf16.mxu0 %vm270_vm0, %v983_v15  ;;  %942 = vmatprep.mubr.msk.bf16.mxu1 %vm270_vm0, %v984_v16 }
  0x26   :  { %911 = vmatmul.mubr.msk.bf16.gmra.mrb[12].mxu0 %vm270_vm0, %v985_v17  ;;  %943 = vmatmul.mubr.msk.bf16.gmra.mrb[12].mxu1 %vm270_vm0, %v986_v18 }
  0x27   :  { %914 = vmatprep.mubr.msk.bf16.mxu0 %vm270_vm0, %v987_v19  ;;  %946 = vmatprep.mubr.msk.bf16.mxu1 %vm270_vm0, %v988_v20 }
  0x2e   :  { %915 = vmatmul.mubr.msk.bf16.gmra.mrb[16].mxu0 %vm270_vm0, %v989_v21  ;;  %947 = vmatmul.mubr.msk.bf16.gmra.mrb[16].mxu1 %vm270_vm0, %v990_v22 }
  0x2f   :  { %918 = vmatprep.mubr.msk.bf16.mxu0 %vm270_vm0, %v991_v23  ;;  %950 = vmatprep.mubr.msk.bf16.mxu1 %vm270_vm0, %v992_v24 }
  0x36   :  { %919 = vmatmul.mubr.msk.bf16.gmra.mrb[20].mxu0 %vm270_vm0, %v993_v25  ;;  %951 = vmatmul.mubr.msk.bf16.gmra.mrb[20].mxu1 %vm270_vm0, %v994_v26 }
  0x37   :  { %922 = vmatprep.mubr.msk.bf16.mxu0 %vm270_vm0, %v995_v27  ;;  %954 = vmatprep.mubr.msk.bf16.mxu1 %vm270_vm0, %v996_v28 }
  0x3e   :  { %923 = vmatmul.mubr.msk.bf16.gmra.mrb[24].mxu0 %vm270_vm0, %v997_v29  ;;  %955 = vmatmul.mubr.msk.bf16.gmra.mrb[24].mxu1 %vm270_vm0, %v998_v30 }
  0x3f   :  { %926 = vmatprep.mubr.msk.bf16.mxu0 %vm270_vm0, %v999_v31  ;;  %958 = vmatprep.mubr.msk.bf16.mxu1 %vm270_vm0, %v1000_v32 }
  0x46   :  { %927 = vmatmul.mubr.msk.bf16.gmra.mrb[28].mxu0 %vm270_vm0, %v1001_v33  ;;  %959 = vmatmul.mubr.msk.bf16.gmra.mrb[28].mxu1 %vm270_vm0, %v1002_v34 }
  0xe1   :  { %v900_v36 = vpop.f32.mrb[0].mxu0  ;;  %v932_v37 = vpop.f32.mrb[0].mxu1 }
  0xe2   :  { %v410_v38 = vadd.f32 %v900_v36, %v1163_v35  ;;  %v538_v39 = vadd.f32 %v932_v37, %v1163_v35  ;;  %v401_v40 = vpop.f32.mrb[1].mxu0  ;;  %v529_v41 = vpop.f32.mrb[1].mxu1 }
  0xe3   :  { %v402_v42 = vadd.f32 %v1163_v35, %v401_v40  ;;  %v530_v43 = vadd.f32 %v1163_v35, %v529_v41  ;;  %v901_v44 = vpop.f32.mrb[2].mxu0  ;;  %v933_v45 = vpop.f32.mrb[2].mxu1 }
  0xe4   :  { %v658_v46 = vmax.f32 %v410_v38, 0.0  ;;  %v690_v47 = vmax.f32 %v538_v39, 0.0  ;;  %v413_v48 = vadd.f32 %v901_v44, %v1163_v35  ;;  %v541_v49 = vadd.f32 %v933_v45, %v1163_v35  ;;  %v404_v50 = vpop.f32.mrb[3].mxu0  ;;  %v532_v51 = vpop.f32.mrb[3].mxu1 }
  0xe5   :  { %v656_v52 = vmax.f32 %v402_v42, 0.0  ;;  %v688_v53 = vmax.f32 %v530_v43, 0.0  ;;  %v405_v54 = vadd.f32 %v1163_v35, %v404_v50  ;;  %v533_v55 = vadd.f32 %v1163_v35, %v532_v51 }
  0xe6   :  { %723 = vst.msk [vmem:[%s1488_s3 + $0x10] sm:$0xff] %vm720_vm1, %v658_v46  ;;  %755 = vst.msk [vmem:[%s1488_s3 + $0x110] sm:$0xff] %vm720_vm1, %v690_v47  ;;  %v659_v56 = vmax.f32 %v413_v48, 0.0  ;;  %v691_v57 = vmax.f32 %v541_v49, 0.0 }
  0xe7   :  { %721 = vst.msk [vmem:[%s1488_s3] sm:$0xff] %vm720_vm1, %v656_v52  ;;  %753 = vst.msk [vmem:[%s1488_s3 + $0x100] sm:$0xff] %vm720_vm1, %v688_v53  ;;  %v657_v58 = vmax.f32 %v405_v54, 0.0  ;;  %v689_v59 = vmax.f32 %v533_v55, 0.0 }
  0xe8   :  { %724 = vst.msk [vmem:[%s1488_s3 + $0x18] sm:$0xff] %vm720_vm1, %v659_v56  ;;  %756 = vst.msk [vmem:[%s1488_s3 + $0x118] sm:$0xff] %vm720_vm1, %v691_v57 }
  0xe9   :  { %722 = vst.msk [vmem:[%s1488_s3 + $0x8] sm:$0xff] %vm720_vm1, %v657_v58  ;;  %754 = vst.msk [vmem:[%s1488_s3 + $0x108] sm:$0xff] %vm720_vm1, %v689_v59  ;;  %v904_v60 = vpop.f32.mrb[4].mxu0  ;;  %v936_v61 = vpop.f32.mrb[4].mxu1 }
  0xea   :  { %v426_v62 = vadd.f32 %v904_v60, %v1163_v35  ;;  %v554_v63 = vadd.f32 %v936_v61, %v1163_v35  ;;  %v417_v0 = vpop.f32.mrb[5].mxu0  ;;  %v545_v1 = vpop.f32.mrb[5].mxu1 }
  0xeb   :  { %v418_v2 = vadd.f32 %v1163_v35, %v417_v0  ;;  %v546_v3 = vadd.f32 %v1163_v35, %v545_v1  ;;  %v905_v4 = vpop.f32.mrb[6].mxu0  ;;  %v937_v5 = vpop.f32.mrb[6].mxu1 }
  0xec   :  { %v662_v6 = vmax.f32 %v426_v62, 0.0  ;;  %v694_v7 = vmax.f32 %v554_v63, 0.0  ;;  %v429_v8 = vadd.f32 %v905_v4, %v1163_v35  ;;  %v557_v9 = vadd.f32 %v937_v5, %v1163_v35  ;;  %v420_v10 = vpop.f32.mrb[7].mxu0  ;;  %v548_v11 = vpop.f32.mrb[7].mxu1 }
  0xed   :  { %v660_v12 = vmax.f32 %v418_v2, 0.0  ;;  %v692_v13 = vmax.f32 %v546_v3, 0.0  ;;  %v421_v14 = vadd.f32 %v1163_v35, %v420_v10  ;;  %v549_v15 = vadd.f32 %v1163_v35, %v548_v11 }
  0xee   :  { %727 = vst.msk [vmem:[%s1488_s3 + $0x30] sm:$0xff] %vm720_vm1, %v662_v6  ;;  %759 = vst.msk [vmem:[%s1488_s3 + $0x130] sm:$0xff] %vm720_vm1, %v694_v7  ;;  %v663_v16 = vmax.f32 %v429_v8, 0.0  ;;  %v695_v17 = vmax.f32 %v557_v9, 0.0 }
  0xef   :  { %725 = vst.msk [vmem:[%s1488_s3 + $0x20] sm:$0xff] %vm720_vm1, %v660_v12  ;;  %757 = vst.msk [vmem:[%s1488_s3 + $0x120] sm:$0xff] %vm720_vm1, %v692_v13  ;;  %v661_v18 = vmax.f32 %v421_v14, 0.0  ;;  %v693_v19 = vmax.f32 %v549_v15, 0.0 }
  0xf0   :  { %728 = vst.msk [vmem:[%s1488_s3 + $0x38] sm:$0xff] %vm720_vm1, %v663_v16  ;;  %760 = vst.msk [vmem:[%s1488_s3 + $0x138] sm:$0xff] %vm720_vm1, %v695_v17 }
  0xf1   :  { %726 = vst.msk [vmem:[%s1488_s3 + $0x28] sm:$0xff] %vm720_vm1, %v661_v18  ;;  %758 = vst.msk [vmem:[%s1488_s3 + $0x128] sm:$0xff] %vm720_vm1, %v693_v19  ;;  %v908_v20 = vpop.f32.mrb[8].mxu0  ;;  %v940_v21 = vpop.f32.mrb[8].mxu1 }
  0xf2   :  { %v442_v22 = vadd.f32 %v908_v20, %v1163_v35  ;;  %v570_v23 = vadd.f32 %v940_v21, %v1163_v35  ;;  %v433_v24 = vpop.f32.mrb[9].mxu0  ;;  %v561_v25 = vpop.f32.mrb[9].mxu1 }
  0xf3   :  { %v434_v26 = vadd.f32 %v1163_v35, %v433_v24  ;;  %v562_v27 = vadd.f32 %v1163_v35, %v561_v25  ;;  %v909_v28 = vpop.f32.mrb[10].mxu0  ;;  %v941_v29 = vpop.f32.mrb[10].mxu1 }
  0xf4   :  { %v666_v30 = vmax.f32 %v442_v22, 0.0  ;;  %v698_v31 = vmax.f32 %v570_v23, 0.0  ;;  %v445_v32 = vadd.f32 %v909_v28, %v1163_v35  ;;  %v573_v33 = vadd.f32 %v941_v29, %v1163_v35  ;;  %v436_v34 = vpop.f32.mrb[11].mxu0  ;;  %v564_v36 = vpop.f32.mrb[11].mxu1 }
  0xf5   :  { %v664_v37 = vmax.f32 %v434_v26, 0.0  ;;  %v696_v38 = vmax.f32 %v562_v27, 0.0  ;;  %v437_v39 = vadd.f32 %v1163_v35, %v436_v34  ;;  %v565_v40 = vadd.f32 %v1163_v35, %v564_v36 }
  0xf6   :  { %731 = vst.msk [vmem:[%s1488_s3 + $0x50] sm:$0xff] %vm720_vm1, %v666_v30  ;;  %763 = vst.msk [vmem:[%s1488_s3 + $0x150] sm:$0xff] %vm720_vm1, %v698_v31  ;;  %v667_v41 = vmax.f32 %v445_v32, 0.0  ;;  %v699_v42 = vmax.f32 %v573_v33, 0.0 }
  0xf7   :  { %729 = vst.msk [vmem:[%s1488_s3 + $0x40] sm:$0xff] %vm720_vm1, %v664_v37  ;;  %761 = vst.msk [vmem:[%s1488_s3 + $0x140] sm:$0xff] %vm720_vm1, %v696_v38  ;;  %v665_v43 = vmax.f32 %v437_v39, 0.0  ;;  %v697_v44 = vmax.f32 %v565_v40, 0.0 }
  0xf8   :  { %732 = vst.msk [vmem:[%s1488_s3 + $0x58] sm:$0xff] %vm720_vm1, %v667_v41  ;;  %764 = vst.msk [vmem:[%s1488_s3 + $0x158] sm:$0xff] %vm720_vm1, %v699_v42 }
  0xf9   :  { %730 = vst.msk [vmem:[%s1488_s3 + $0x48] sm:$0xff] %vm720_vm1, %v665_v43  ;;  %762 = vst.msk [vmem:[%s1488_s3 + $0x148] sm:$0xff] %vm720_vm1, %v697_v44  ;;  %v912_v45 = vpop.f32.mrb[12].mxu0  ;;  %v944_v46 = vpop.f32.mrb[12].mxu1 }
  0xfa   :  { %v458_v47 = vadd.f32 %v912_v45, %v1163_v35  ;;  %v586_v48 = vadd.f32 %v944_v46, %v1163_v35  ;;  %v449_v49 = vpop.f32.mrb[13].mxu0  ;;  %v577_v50 = vpop.f32.mrb[13].mxu1 }
  0xfb   :  { %v450_v51 = vadd.f32 %v1163_v35, %v449_v49  ;;  %v578_v52 = vadd.f32 %v1163_v35, %v577_v50  ;;  %v913_v53 = vpop.f32.mrb[14].mxu0  ;;  %v945_v54 = vpop.f32.mrb[14].mxu1 }
  0xfc   :  { %v670_v55 = vmax.f32 %v458_v47, 0.0  ;;  %v702_v56 = vmax.f32 %v586_v48, 0.0  ;;  %v461_v57 = vadd.f32 %v913_v53, %v1163_v35  ;;  %v589_v58 = vadd.f32 %v945_v54, %v1163_v35  ;;  %v452_v59 = vpop.f32.mrb[15].mxu0  ;;  %v580_v60 = vpop.f32.mrb[15].mxu1 }
  0xfd   :  { %v668_v61 = vmax.f32 %v450_v51, 0.0  ;;  %v700_v62 = vmax.f32 %v578_v52, 0.0  ;;  %v453_v63 = vadd.f32 %v1163_v35, %v452_v59  ;;  %v581_v0 = vadd.f32 %v1163_v35, %v580_v60 }
  0xfe   :  { %735 = vst.msk [vmem:[%s1488_s3 + $0x70] sm:$0xff] %vm720_vm1, %v670_v55  ;;  %767 = vst.msk [vmem:[%s1488_s3 + $0x170] sm:$0xff] %vm720_vm1, %v702_v56  ;;  %v671_v1 = vmax.f32 %v461_v57, 0.0  ;;  %v703_v2 = vmax.f32 %v589_v58, 0.0 }
  0xff   :  { %733 = vst.msk [vmem:[%s1488_s3 + $0x60] sm:$0xff] %vm720_vm1, %v668_v61  ;;  %765 = vst.msk [vmem:[%s1488_s3 + $0x160] sm:$0xff] %vm720_vm1, %v700_v62  ;;  %v669_v3 = vmax.f32 %v453_v63, 0.0  ;;  %v701_v4 = vmax.f32 %v581_v0, 0.0 }
 0x100   :  { %736 = vst.msk [vmem:[%s1488_s3 + $0x78] sm:$0xff] %vm720_vm1, %v671_v1  ;;  %768 = vst.msk [vmem:[%s1488_s3 + $0x178] sm:$0xff] %vm720_vm1, %v703_v2 }
 0x101   :  { %734 = vst.msk [vmem:[%s1488_s3 + $0x68] sm:$0xff] %vm720_vm1, %v669_v3  ;;  %766 = vst.msk [vmem:[%s1488_s3 + $0x168] sm:$0xff] %vm720_vm1, %v701_v4  ;;  %v916_v5 = vpop.f32.mrb[16].mxu0  ;;  %v948_v6 = vpop.f32.mrb[16].mxu1 }
 0x102   :  { %v474_v7 = vadd.f32 %v916_v5, %v1163_v35  ;;  %v602_v8 = vadd.f32 %v948_v6, %v1163_v35  ;;  %v465_v9 = vpop.f32.mrb[17].mxu0  ;;  %v593_v10 = vpop.f32.mrb[17].mxu1 }
 0x103   :  { %v466_v11 = vadd.f32 %v1163_v35, %v465_v9  ;;  %v594_v12 = vadd.f32 %v1163_v35, %v593_v10  ;;  %v917_v13 = vpop.f32.mrb[18].mxu0  ;;  %v949_v14 = vpop.f32.mrb[18].mxu1 }
 0x104   :  { %v674_v15 = vmax.f32 %v474_v7, 0.0  ;;  %v706_v16 = vmax.f32 %v602_v8, 0.0  ;;  %v477_v17 = vadd.f32 %v917_v13, %v1163_v35  ;;  %v605_v18 = vadd.f32 %v949_v14, %v1163_v35  ;;  %v468_v19 = vpop.f32.mrb[19].mxu0  ;;  %v596_v20 = vpop.f32.mrb[19].mxu1 }
 0x105   :  { %v672_v21 = vmax.f32 %v466_v11, 0.0  ;;  %v704_v22 = vmax.f32 %v594_v12, 0.0  ;;  %v469_v23 = vadd.f32 %v1163_v35, %v468_v19  ;;  %v597_v24 = vadd.f32 %v1163_v35, %v596_v20 }
 0x106   :  { %739 = vst.msk [vmem:[%s1488_s3 + $0x90] sm:$0xff] %vm720_vm1, %v674_v15  ;;  %771 = vst.msk [vmem:[%s1488_s3 + $0x190] sm:$0xff] %vm720_vm1, %v706_v16  ;;  %v675_v25 = vmax.f32 %v477_v17, 0.0  ;;  %v707_v26 = vmax.f32 %v605_v18, 0.0 }
 0x107   :  { %737 = vst.msk [vmem:[%s1488_s3 + $0x80] sm:$0xff] %vm720_vm1, %v672_v21  ;;  %769 = vst.msk [vmem:[%s1488_s3 + $0x180] sm:$0xff] %vm720_vm1, %v704_v22  ;;  %v673_v27 = vmax.f32 %v469_v23, 0.0  ;;  %v705_v28 = vmax.f32 %v597_v24, 0.0 }
 0x108   :  { %740 = vst.msk [vmem:[%s1488_s3 + $0x98] sm:$0xff] %vm720_vm1, %v675_v25  ;;  %772 = vst.msk [vmem:[%s1488_s3 + $0x198] sm:$0xff] %vm720_vm1, %v707_v26 }
 0x109   :  { %738 = vst.msk [vmem:[%s1488_s3 + $0x88] sm:$0xff] %vm720_vm1, %v673_v27  ;;  %770 = vst.msk [vmem:[%s1488_s3 + $0x188] sm:$0xff] %vm720_vm1, %v705_v28  ;;  %v920_v29 = vpop.f32.mrb[20].mxu0  ;;  %v952_v30 = vpop.f32.mrb[20].mxu1 }
 0x10a   :  { %v490_v31 = vadd.f32 %v920_v29, %v1163_v35  ;;  %v618_v32 = vadd.f32 %v952_v30, %v1163_v35  ;;  %v481_v33 = vpop.f32.mrb[21].mxu0  ;;  %v609_v34 = vpop.f32.mrb[21].mxu1 }
 0x10b   :  { %v482_v36 = vadd.f32 %v1163_v35, %v481_v33  ;;  %v610_v37 = vadd.f32 %v1163_v35, %v609_v34  ;;  %v921_v38 = vpop.f32.mrb[22].mxu0  ;;  %v953_v39 = vpop.f32.mrb[22].mxu1 }
 0x10c   :  { %v678_v40 = vmax.f32 %v490_v31, 0.0  ;;  %v710_v41 = vmax.f32 %v618_v32, 0.0  ;;  %v493_v42 = vadd.f32 %v921_v38, %v1163_v35  ;;  %v621_v43 = vadd.f32 %v953_v39, %v1163_v35  ;;  %v484_v44 = vpop.f32.mrb[23].mxu0  ;;  %v612_v45 = vpop.f32.mrb[23].mxu1 }
 0x10d   :  { %v676_v46 = vmax.f32 %v482_v36, 0.0  ;;  %v708_v47 = vmax.f32 %v610_v37, 0.0  ;;  %v485_v48 = vadd.f32 %v1163_v35, %v484_v44  ;;  %v613_v49 = vadd.f32 %v1163_v35, %v612_v45 }
 0x10e   :  { %743 = vst.msk [vmem:[%s1488_s3 + $0xb0] sm:$0xff] %vm720_vm1, %v678_v40  ;;  %775 = vst.msk [vmem:[%s1488_s3 + $0x1b0] sm:$0xff] %vm720_vm1, %v710_v41  ;;  %v679_v50 = vmax.f32 %v493_v42, 0.0  ;;  %v711_v51 = vmax.f32 %v621_v43, 0.0 }
 0x10f   :  { %741 = vst.msk [vmem:[%s1488_s3 + $0xa0] sm:$0xff] %vm720_vm1, %v676_v46  ;;  %773 = vst.msk [vmem:[%s1488_s3 + $0x1a0] sm:$0xff] %vm720_vm1, %v708_v47  ;;  %v677_v52 = vmax.f32 %v485_v48, 0.0  ;;  %v709_v53 = vmax.f32 %v613_v49, 0.0 }
 0x110   :  { %744 = vst.msk [vmem:[%s1488_s3 + $0xb8] sm:$0xff] %vm720_vm1, %v679_v50  ;;  %776 = vst.msk [vmem:[%s1488_s3 + $0x1b8] sm:$0xff] %vm720_vm1, %v711_v51 }
 0x111   :  { %742 = vst.msk [vmem:[%s1488_s3 + $0xa8] sm:$0xff] %vm720_vm1, %v677_v52  ;;  %774 = vst.msk [vmem:[%s1488_s3 + $0x1a8] sm:$0xff] %vm720_vm1, %v709_v53  ;;  %v924_v54 = vpop.f32.mrb[24].mxu0  ;;  %v956_v55 = vpop.f32.mrb[24].mxu1 }
 0x112   :  { %v506_v56 = vadd.f32 %v924_v54, %v1163_v35  ;;  %v634_v57 = vadd.f32 %v956_v55, %v1163_v35  ;;  %v497_v58 = vpop.f32.mrb[25].mxu0  ;;  %v625_v59 = vpop.f32.mrb[25].mxu1 }
 0x113   :  { %v498_v60 = vadd.f32 %v1163_v35, %v497_v58  ;;  %v626_v61 = vadd.f32 %v1163_v35, %v625_v59  ;;  %v925_v62 = vpop.f32.mrb[26].mxu0  ;;  %v957_v63 = vpop.f32.mrb[26].mxu1 }
 0x114   :  { %v682_v0 = vmax.f32 %v506_v56, 0.0  ;;  %v714_v1 = vmax.f32 %v634_v57, 0.0  ;;  %v509_v2 = vadd.f32 %v925_v62, %v1163_v35  ;;  %v637_v3 = vadd.f32 %v957_v63, %v1163_v35  ;;  %v500_v4 = vpop.f32.mrb[27].mxu0  ;;  %v628_v5 = vpop.f32.mrb[27].mxu1 }
 0x115   :  { %v680_v6 = vmax.f32 %v498_v60, 0.0  ;;  %v712_v7 = vmax.f32 %v626_v61, 0.0  ;;  %v501_v8 = vadd.f32 %v1163_v35, %v500_v4  ;;  %v629_v9 = vadd.f32 %v1163_v35, %v628_v5 }
 0x116   :  { %747 = vst.msk [vmem:[%s1488_s3 + $0xd0] sm:$0xff] %vm720_vm1, %v682_v0  ;;  %779 = vst.msk [vmem:[%s1488_s3 + $0x1d0] sm:$0xff] %vm720_vm1, %v714_v1  ;;  %v683_v10 = vmax.f32 %v509_v2, 0.0  ;;  %v715_v11 = vmax.f32 %v637_v3, 0.0 }
 0x117   :  { %745 = vst.msk [vmem:[%s1488_s3 + $0xc0] sm:$0xff] %vm720_vm1, %v680_v6  ;;  %777 = vst.msk [vmem:[%s1488_s3 + $0x1c0] sm:$0xff] %vm720_vm1, %v712_v7  ;;  %v681_v12 = vmax.f32 %v501_v8, 0.0  ;;  %v713_v13 = vmax.f32 %v629_v9, 0.0 }
 0x118   :  { %748 = vst.msk [vmem:[%s1488_s3 + $0xd8] sm:$0xff] %vm720_vm1, %v683_v10  ;;  %780 = vst.msk [vmem:[%s1488_s3 + $0x1d8] sm:$0xff] %vm720_vm1, %v715_v11 }
 0x119   :  { %746 = vst.msk [vmem:[%s1488_s3 + $0xc8] sm:$0xff] %vm720_vm1, %v681_v12  ;;  %778 = vst.msk [vmem:[%s1488_s3 + $0x1c8] sm:$0xff] %vm720_vm1, %v713_v13  ;;  %v928_v14 = vpop.f32.mrb[28].mxu0  ;;  %v960_v15 = vpop.f32.mrb[28].mxu1 }
 0x11a   :  { %v522_v16 = vadd.f32 %v928_v14, %v1163_v35  ;;  %v650_v17 = vadd.f32 %v960_v15, %v1163_v35  ;;  %v513_v18 = vpop.f32.mrb[29].mxu0  ;;  %v641_v19 = vpop.f32.mrb[29].mxu1 }
 0x11b   :  { %v514_v20 = vadd.f32 %v1163_v35, %v513_v18  ;;  %v642_v21 = vadd.f32 %v1163_v35, %v641_v19  ;;  %v929_v22 = vpop.f32.mrb[30].mxu0  ;;  %v961_v23 = vpop.f32.mrb[30].mxu1 }
 0x11c   :  { %v686_v24 = vmax.f32 %v522_v16, 0.0  ;;  %v718_v25 = vmax.f32 %v650_v17, 0.0  ;;  %v525_v26 = vadd.f32 %v929_v22, %v1163_v35  ;;  %v653_v27 = vadd.f32 %v961_v23, %v1163_v35  ;;  %v516_v28 = vpop.f32.mrb[31].mxu0  ;;  %v644_v29 = vpop.f32.mrb[31].mxu1 }
 0x11d   :  { %v684_v30 = vmax.f32 %v514_v20, 0.0  ;;  %v716_v31 = vmax.f32 %v642_v21, 0.0  ;;  %v517_v32 = vadd.f32 %v1163_v35, %v516_v28  ;;  %v645_v33 = vadd.f32 %v1163_v35, %v644_v29 }
 0x11e   :  { %751 = vst.msk [vmem:[%s1488_s3 + $0xf0] sm:$0xff] %vm720_vm1, %v686_v24  ;;  %783 = vst.msk [vmem:[%s1488_s3 + $0x1f0] sm:$0xff] %vm720_vm1, %v718_v25  ;;  %v687_v34 = vmax.f32 %v525_v26, 0.0  ;;  %v719_v36 = vmax.f32 %v653_v27, 0.0 }
 0x11f   :  { %749 = vst.msk [vmem:[%s1488_s3 + $0xe0] sm:$0xff] %vm720_vm1, %v684_v30  ;;  %781 = vst.msk [vmem:[%s1488_s3 + $0x1e0] sm:$0xff] %vm720_vm1, %v716_v31  ;;  %v685_v35 = vmax.f32 %v517_v32, 0.0  ;;  %v717_v37 = vmax.f32 %v645_v33, 0.0 }
 0x120   :  { %752 = vst.msk [vmem:[%s1488_s3 + $0xf8] sm:$0xff] %vm720_vm1, %v687_v34  ;;  %784 = vst.msk [vmem:[%s1488_s3 + $0x1f8] sm:$0xff] %vm720_vm1, %v719_v36 }
 0x121   :  { %750 = vst.msk [vmem:[%s1488_s3 + $0xe8] sm:$0xff] %vm720_vm1, %v685_v35  ;;  %782 = vst.msk [vmem:[%s1488_s3 + $0x1e8] sm:$0xff] %vm720_vm1, %v717_v37 }

// kernel: vae_cifar_forward.8
= control target key start
LH: loop header
LB: loop body
LE: loop exit
PB: predicated region body
PF: predicated region fallthrough
CT: control target
= control target key end

     0   :  { %vm680_vm0 = vcmask 523264   ;;  %s1271_s1 = inlined_call_operand.vmem [shape: bf16[512,64], index: 1, kind: input, shape index: {}]   ;;  %s1272_s0 = inlined_call_operand.vmem [shape: bf16[128,512], index: 0, kind: input, shape index: {}]   ;;  %s1273_s2 = inlined_call_operand.vmem [shape: f32[1,64], index: 2, kind: input, shape index: {}]   ;;  %s1274_s3 = inlined_call_operand.vmem [shape: f32[128,64], index: 3, kind: output, shape index: {}]  }
   0x1   :  { %v894_v0 = vld [vmem:[%s1271_s1 + $0x40] sm:$0xff]   ;;  %v898_v4 = vld [vmem:[%s1271_s1 + $0x48] sm:$0xff]   ;;  %v902_v8 = vld [vmem:[%s1271_s1 + $0x50] sm:$0xff]  }
   0x2   :  { %v895_v1 = vld [vmem:[%s1271_s1 + $0xc0] sm:$0xff]   ;;  %766 = vmatprep.subr.bf16.mxu0 %v894_v0  ;;  %v899_v5 = vld [vmem:[%s1271_s1 + $0xc8] sm:$0xff]   ;;  %v903_v9 = vld [vmem:[%s1271_s1 + $0xd0] sm:$0xff]  }
   0x3   :  { %v896_v2 = vld [vmem:[%s1271_s1] sm:$0xff]   ;;  %830 = vmatprep.subr.bf16.mxu1 %v895_v1  ;;  %v900_v6 = vld [vmem:[%s1271_s1 + $0x8] sm:$0xff]   ;;  %v904_v10 = vld [vmem:[%s1271_s1 + $0x10] sm:$0xff]  }
   0x4   :  { %v897_v3 = vld [vmem:[%s1271_s1 + $0x80] sm:$0xff]   ;;  %767 = vmatpush3.bf16.msra.mxu0 %v896_v2  ;;  %v901_v7 = vld [vmem:[%s1271_s1 + $0x88] sm:$0xff]   ;;  %v905_v11 = vld [vmem:[%s1271_s1 + $0x90] sm:$0xff]  }
   0x5   :  { %831 = vmatpush3.bf16.msra.mxu1 %v897_v3  ;;  %768 = vmatprep.subr.bf16.mxu0 %v898_v4  ;;  %v906_v12 = vld [vmem:[%s1271_s1 + $0x58] sm:$0xff]   ;;  %v910_v16 = vld [vmem:[%s1271_s1 + $0x60] sm:$0xff]   ;;  %v914_v20 = vld [vmem:[%s1271_s1 + $0x68] sm:$0xff]  }
   0x6   :  { %832 = vmatprep.subr.bf16.mxu1 %v899_v5  ;;  %v907_v13 = vld [vmem:[%s1271_s1 + $0xd8] sm:$0xff]   ;;  %v911_v17 = vld [vmem:[%s1271_s1 + $0xe0] sm:$0xff]   ;;  %v915_v21 = vld [vmem:[%s1271_s1 + $0xe8] sm:$0xff]  }
   0x7   :  { %v908_v14 = vld [vmem:[%s1271_s1 + $0x18] sm:$0xff]   ;;  %v912_v18 = vld [vmem:[%s1271_s1 + $0x20] sm:$0xff]   ;;  %v916_v22 = vld [vmem:[%s1271_s1 + $0x28] sm:$0xff]  }
   0x8   :  { %769 = vmatpush3.bf16.msra.mxu0 %v900_v6  ;;  %v909_v15 = vld [vmem:[%s1271_s1 + $0x98] sm:$0xff]   ;;  %v913_v19 = vld [vmem:[%s1271_s1 + $0xa0] sm:$0xff]   ;;  %v917_v23 = vld [vmem:[%s1271_s1 + $0xa8] sm:$0xff]  }
   0x9   :  { %833 = vmatpush3.bf16.msra.mxu1 %v901_v7  ;;  %770 = vmatprep.subr.bf16.mxu0 %v902_v8  ;;  %v918_v24 = vld [vmem:[%s1271_s1 + $0x70] sm:$0xff]   ;;  %v922_v28 = vld [vmem:[%s1271_s1 + $0x78] sm:$0xff]   ;;  %v1189_v2 = vld [vmem:[%s1273_s2] ss:$0 sm:$0xff] }
   0xa   :  { %834 = vmatprep.subr.bf16.mxu1 %v903_v9  ;;  %v919_v25 = vld [vmem:[%s1271_s1 + $0xf0] sm:$0xff]   ;;  %v923_v29 = vld [vmem:[%s1271_s1 + $0xf8] sm:$0xff]  }
   0xb   :  { %v920_v26 = vld [vmem:[%s1271_s1 + $0x30] sm:$0xff]   ;;  %v924_v30 = vld [vmem:[%s1271_s1 + $0x38] sm:$0xff]  }
   0xc   :  { %771 = vmatpush3.bf16.msra.mxu0 %v904_v10  ;;  %v921_v27 = vld [vmem:[%s1271_s1 + $0xb0] sm:$0xff]   ;;  %v925_v31 = vld [vmem:[%s1271_s1 + $0xb8] sm:$0xff]  }
   0xd   :  { %835 = vmatpush3.bf16.msra.mxu1 %v905_v11  ;;  %772 = vmatprep.subr.bf16.mxu0 %v906_v12  ;;  %v926_v32 = vld [vmem:[%s1272_s0] ss:$16 sps:$4 sm:$0xff]   ;;  %v928_v33 = vld [vmem:[%s1272_s0 + $0x4] ss:$16 sps:$4 sm:$0xff]   ;;  %v929_v34 = vld [vmem:[%s1272_s0 + $0x8] ss:$16 sps:$4 sm:$0xff]  }
   0xe   :  { %836 = vmatprep.subr.bf16.mxu1 %v907_v13  ;;  %v931_v35 = vld [vmem:[%s1272_s0 + $0xc] ss:$16 sps:$4 sm:$0xff]   ;;  %502 = vmatprep.mubr.bf16.mxu0 %v928_v33  ;;  %v932_v36 = vld [vmem:[%s1272_s0 + $0x24] ss:$16 sps:$4 sm:$0xff]   ;;  %v936_v38 = vld [vmem:[%s1272_s0 + $0x20] ss:$16 sps:$4 sm:$0xff]  }
   0xf   :  { %599 = vmatprep.mubr.bf16.mxu1 %v931_v35  ;;  %v934_v37 = vld [vmem:[%s1272_s0 + $0x2c] ss:$16 sps:$4 sm:$0xff]   ;;  %v937_v39 = vld [vmem:[%s1272_s0 + $0x28] ss:$16 sps:$4 sm:$0xff]   ;;  %v938_v40 = vld [vmem:[%s1272_s0 + $0x44] ss:$16 sps:$4 sm:$0xff]  }
  0x10   :  { %773 = vmatpush3.bf16.msra.mxu0 %v908_v14  ;;  %v940_v41 = vld [vmem:[%s1272_s0 + $0x4c] ss:$16 sps:$4 sm:$0xff]   ;;  %v942_v42 = vld [vmem:[%s1272_s0 + $0x40] ss:$16 sps:$4 sm:$0xff]   ;;  %v943_v43 = vld [vmem:[%s1272_s0 + $0x48] ss:$16 sps:$4 sm:$0xff]  }
  0x11   :  { %837 = vmatpush3.bf16.msra.mxu1 %v909_v15  ;;  %774 = vmatprep.subr.bf16.mxu0 %v910_v16  ;;  %v944_v44 = vld [vmem:[%s1272_s0 + $0x64] ss:$16 sps:$4 sm:$0xff]   ;;  %v946_v45 = vld [vmem:[%s1272_s0 + $0x6c] ss:$16 sps:$4 sm:$0xff]   ;;  %v948_v46 = vld [vmem:[%s1272_s0 + $0x60] ss:$16 sps:$4 sm:$0xff]  }
  0x12   :  { %838 = vmatprep.subr.bf16.mxu1 %v911_v17  ;;  %v949_v47 = vld [vmem:[%s1272_s0 + $0x68] ss:$16 sps:$4 sm:$0xff]   ;;  %v950_v48 = vld [vmem:[%s1272_s0 + $0x84] ss:$16 sps:$4 sm:$0xff]   ;;  %v952_v49 = vld [vmem:[%s1272_s0 + $0x8c] ss:$16 sps:$4 sm:$0xff]  }
  0x13   :  { %v954_v50 = vld [vmem:[%s1272_s0 + $0x80] ss:$16 sps:$4 sm:$0xff]   ;;  %v955_v51 = vld [vmem:[%s1272_s0 + $0x88] ss:$16 sps:$4 sm:$0xff]   ;;  %v956_v52 = vld [vmem:[%s1272_s0 + $0xa4] ss:$16 sps:$4 sm:$0xff]  }
  0x14   :  { %775 = vmatpush3.bf16.msra.mxu0 %v912_v18  ;;  %v958_v53 = vld [vmem:[%s1272_s0 + $0xac] ss:$16 sps:$4 sm:$0xff]   ;;  %v960_v54 = vld [vmem:[%s1272_s0 + $0xa0] ss:$16 sps:$4 sm:$0xff]   ;;  %v961_v55 = vld [vmem:[%s1272_s0 + $0xa8] ss:$16 sps:$4 sm:$0xff]  }
  0x15   :  { %839 = vmatpush3.bf16.msra.mxu1 %v913_v19  ;;  %776 = vmatprep.subr.bf16.mxu0 %v914_v20  ;;  %v962_v56 = vld [vmem:[%s1272_s0 + $0xc4] ss:$16 sps:$4 sm:$0xff]   ;;  %v964_v57 = vld [vmem:[%s1272_s0 + $0xcc] ss:$16 sps:$4 sm:$0xff]   ;;  %v966_v58 = vld [vmem:[%s1272_s0 + $0xc0] ss:$16 sps:$4 sm:$0xff]  }
  0x16   :  { %840 = vmatprep.subr.bf16.mxu1 %v915_v21  ;;  %v967_v59 = vld [vmem:[%s1272_s0 + $0xc8] ss:$16 sps:$4 sm:$0xff]   ;;  %v968_v60 = vld [vmem:[%s1272_s0 + $0xe4] ss:$16 sps:$4 sm:$0xff]   ;;  %v970_v61 = vld [vmem:[%s1272_s0 + $0xec] ss:$16 sps:$4 sm:$0xff]  }
  0x17   :  { %v972_v62 = vld [vmem:[%s1272_s0 + $0xe0] ss:$16 sps:$4 sm:$0xff]   ;;  %v973_v63 = vld [vmem:[%s1272_s0 + $0xe8] ss:$16 sps:$4 sm:$0xff]  }
  0x18   :  { %777 = vmatpush3.bf16.msra.mxu0 %v916_v22 }
  0x19   :  { %841 = vmatpush3.bf16.msra.mxu1 %v917_v23  ;;  %778 = vmatprep.subr.bf16.mxu0 %v918_v24 }
  0x1a   :  { %842 = vmatprep.subr.bf16.mxu1 %v919_v25 }
  0x1c   :  { %779 = vmatpush3.bf16.msra.mxu0 %v920_v26 }
  0x1d   :  { %843 = vmatpush3.bf16.msra.mxu1 %v921_v27  ;;  %780 = vmatprep.subr.bf16.mxu0 %v922_v28 }
  0x1e   :  { %844 = vmatprep.subr.bf16.mxu1 %v923_v29 }
  0x20   :  { %781 = vmatpush3.bf16.msra.mxu0 %v924_v30 }
  0x21   :  { %845 = vmatpush3.bf16.msra.mxu1 %v925_v31 }
  0x23   :  { %503 = vmatmul.mubr.bf16.vlgmr.msra.gmra.mrb[0].mxu0 %v926_v32 }
  0x24   :  { %600 = vmatmul.mubr.bf16.vlgmr.msra.gmra.mrb[0].mxu1 %v929_v34  ;;  %510 = vmatprep.mubr.bf16.mxu0 %v932_v36 }
  0x25   :  { %607 = vmatprep.mubr.bf16.mxu1 %v934_v37 }
  0x2b   :  { %511 = vmatmul.mubr.bf16.gmra.mrb[4].mxu0 %v936_v38 }
  0x2c   :  { %608 = vmatmul.mubr.bf16.gmra.mrb[4].mxu1 %v937_v39  ;;  %518 = vmatprep.mubr.bf16.mxu0 %v938_v40 }
  0x2d   :  { %615 = vmatprep.mubr.bf16.mxu1 %v940_v41 }
  0x33   :  { %519 = vmatmul.mubr.bf16.gmra.mrb[8].mxu0 %v942_v42 }
  0x34   :  { %616 = vmatmul.mubr.bf16.gmra.mrb[8].mxu1 %v943_v43  ;;  %526 = vmatprep.mubr.bf16.mxu0 %v944_v44 }
  0x35   :  { %623 = vmatprep.mubr.bf16.mxu1 %v946_v45 }
  0x3b   :  { %527 = vmatmul.mubr.bf16.gmra.mrb[12].mxu0 %v948_v46 }
  0x3c   :  { %624 = vmatmul.mubr.bf16.gmra.mrb[12].mxu1 %v949_v47  ;;  %534 = vmatprep.mubr.bf16.mxu0 %v950_v48 }
  0x3d   :  { %631 = vmatprep.mubr.bf16.mxu1 %v952_v49 }
  0x43   :  { %535 = vmatmul.mubr.bf16.gmra.mrb[16].mxu0 %v954_v50 }
  0x44   :  { %632 = vmatmul.mubr.bf16.gmra.mrb[16].mxu1 %v955_v51  ;;  %542 = vmatprep.mubr.bf16.mxu0 %v956_v52 }
  0x45   :  { %639 = vmatprep.mubr.bf16.mxu1 %v958_v53 }
  0x4b   :  { %543 = vmatmul.mubr.bf16.gmra.mrb[20].mxu0 %v960_v54 }
  0x4c   :  { %640 = vmatmul.mubr.bf16.gmra.mrb[20].mxu1 %v961_v55  ;;  %550 = vmatprep.mubr.bf16.mxu0 %v962_v56 }
  0x4d   :  { %647 = vmatprep.mubr.bf16.mxu1 %v964_v57 }
  0x53   :  { %551 = vmatmul.mubr.bf16.gmra.mrb[24].mxu0 %v966_v58 }
  0x54   :  { %648 = vmatmul.mubr.bf16.gmra.mrb[24].mxu1 %v967_v59  ;;  %558 = vmatprep.mubr.bf16.mxu0 %v968_v60 }
  0x55   :  { %655 = vmatprep.mubr.bf16.mxu1 %v970_v61 }
  0x5b   :  { %559 = vmatmul.mubr.bf16.gmra.mrb[28].mxu0 %v972_v62 }
  0x5c   :  { %656 = vmatmul.mubr.bf16.gmra.mrb[28].mxu1 %v973_v63 }
  0xf6   :  { %v782_v0 = vpop.f32.mrb[0].mxu0 }
  0xf7   :  { %v846_v1 = vpop.f32.mrb[0].mxu1  ;;  %v783_v3 = vpop.f32.mrb[1].mxu0 }
  0xf8   :  { %v784_v4 = vadd.f32 %v783_v3, %v782_v0  ;;  %v847_v5 = vpop.f32.mrb[1].mxu1  ;;  %v785_v6 = vpop.f32.mrb[2].mxu0 }
  0xf9   :  { %v848_v7 = vadd.f32 %v847_v5, %v846_v1  ;;  %v849_v8 = vpop.f32.mrb[2].mxu1  ;;  %v786_v9 = vpop.f32.mrb[3].mxu0 }
  0xfa   :  { %v505_v10 = vadd.f32 %v784_v4, %v1189_v2  ;;  %v787_v11 = vadd.f32 %v786_v9, %v785_v6  ;;  %v850_v12 = vpop.f32.mrb[3].mxu1 }
  0xfb   :  { %v851_v13 = vadd.f32 %v850_v12, %v849_v8 }
  0xfc   :  { %v602_v14 = vadd.f32 %v848_v7, %v505_v10  ;;  %v508_v15 = vadd.f32 %v787_v11, %v1189_v2 }
  0xfe   :  { %v664_v16 = vmax.f32 %v602_v14, 0.0  ;;  %v605_v17 = vadd.f32 %v851_v13, %v508_v15  ;;  %v788_v18 = vpop.f32.mrb[4].mxu0 }
  0xff   :  { %v852_v19 = vpop.f32.mrb[4].mxu1  ;;  %v789_v20 = vpop.f32.mrb[5].mxu0 }
 0x100   :  { %681 = vst.msk [vmem:[%s1274_s3] sm:$0xff] %vm680_vm0, %v664_v16  ;;  %v665_v21 = vmax.f32 %v605_v17, 0.0  ;;  %v790_v22 = vadd.f32 %v789_v20, %v788_v18  ;;  %v853_v23 = vpop.f32.mrb[5].mxu1  ;;  %v791_v24 = vpop.f32.mrb[6].mxu0 }
 0x101   :  { %v854_v25 = vadd.f32 %v853_v23, %v852_v19  ;;  %v855_v26 = vpop.f32.mrb[6].mxu1  ;;  %v792_v27 = vpop.f32.mrb[7].mxu0 }
 0x102   :  { %682 = vst.msk [vmem:[%s1274_s3 + $0x8] sm:$0xff] %vm680_vm0, %v665_v21  ;;  %v513_v28 = vadd.f32 %v790_v22, %v1189_v2  ;;  %v793_v29 = vadd.f32 %v792_v27, %v791_v24  ;;  %v856_v30 = vpop.f32.mrb[7].mxu1 }
 0x103   :  { %v857_v31 = vadd.f32 %v856_v30, %v855_v26 }
 0x104   :  { %v610_v32 = vadd.f32 %v854_v25, %v513_v28  ;;  %v516_v33 = vadd.f32 %v793_v29, %v1189_v2 }
 0x106   :  { %v666_v34 = vmax.f32 %v610_v32, 0.0  ;;  %v613_v35 = vadd.f32 %v857_v31, %v516_v33  ;;  %v794_v36 = vpop.f32.mrb[8].mxu0 }
 0x107   :  { %v858_v37 = vpop.f32.mrb[8].mxu1  ;;  %v795_v38 = vpop.f32.mrb[9].mxu0 }
 0x108   :  { %683 = vst.msk [vmem:[%s1274_s3 + $0x10] sm:$0xff] %vm680_vm0, %v666_v34  ;;  %v667_v39 = vmax.f32 %v613_v35, 0.0  ;;  %v796_v40 = vadd.f32 %v795_v38, %v794_v36  ;;  %v859_v41 = vpop.f32.mrb[9].mxu1  ;;  %v797_v42 = vpop.f32.mrb[10].mxu0 }
 0x109   :  { %v860_v43 = vadd.f32 %v859_v41, %v858_v37  ;;  %v861_v44 = vpop.f32.mrb[10].mxu1  ;;  %v798_v45 = vpop.f32.mrb[11].mxu0 }
 0x10a   :  { %684 = vst.msk [vmem:[%s1274_s3 + $0x18] sm:$0xff] %vm680_vm0, %v667_v39  ;;  %v521_v46 = vadd.f32 %v796_v40, %v1189_v2  ;;  %v799_v47 = vadd.f32 %v798_v45, %v797_v42  ;;  %v862_v48 = vpop.f32.mrb[11].mxu1 }
 0x10b   :  { %v863_v49 = vadd.f32 %v862_v48, %v861_v44 }
 0x10c   :  { %v618_v50 = vadd.f32 %v860_v43, %v521_v46  ;;  %v524_v51 = vadd.f32 %v799_v47, %v1189_v2 }
 0x10e   :  { %v668_v52 = vmax.f32 %v618_v50, 0.0  ;;  %v621_v53 = vadd.f32 %v863_v49, %v524_v51  ;;  %v800_v54 = vpop.f32.mrb[12].mxu0 }
 0x10f   :  { %v864_v55 = vpop.f32.mrb[12].mxu1  ;;  %v801_v56 = vpop.f32.mrb[13].mxu0 }
 0x110   :  { %685 = vst.msk [vmem:[%s1274_s3 + $0x20] sm:$0xff] %vm680_vm0, %v668_v52  ;;  %v669_v57 = vmax.f32 %v621_v53, 0.0  ;;  %v802_v58 = vadd.f32 %v801_v56, %v800_v54  ;;  %v865_v59 = vpop.f32.mrb[13].mxu1  ;;  %v803_v60 = vpop.f32.mrb[14].mxu0 }
 0x111   :  { %v866_v61 = vadd.f32 %v865_v59, %v864_v55  ;;  %v867_v62 = vpop.f32.mrb[14].mxu1  ;;  %v804_v63 = vpop.f32.mrb[15].mxu0 }
 0x112   :  { %686 = vst.msk [vmem:[%s1274_s3 + $0x28] sm:$0xff] %vm680_vm0, %v669_v57  ;;  %v529_v0 = vadd.f32 %v802_v58, %v1189_v2  ;;  %v805_v1 = vadd.f32 %v804_v63, %v803_v60  ;;  %v868_v3 = vpop.f32.mrb[15].mxu1 }
 0x113   :  { %v869_v4 = vadd.f32 %v868_v3, %v867_v62 }
 0x114   :  { %v626_v5 = vadd.f32 %v866_v61, %v529_v0  ;;  %v532_v6 = vadd.f32 %v805_v1, %v1189_v2 }
 0x116   :  { %v670_v7 = vmax.f32 %v626_v5, 0.0  ;;  %v629_v8 = vadd.f32 %v869_v4, %v532_v6  ;;  %v806_v9 = vpop.f32.mrb[16].mxu0 }
 0x117   :  { %v870_v10 = vpop.f32.mrb[16].mxu1  ;;  %v807_v11 = vpop.f32.mrb[17].mxu0 }
 0x118   :  { %687 = vst.msk [vmem:[%s1274_s3 + $0x30] sm:$0xff] %vm680_vm0, %v670_v7  ;;  %v671_v12 = vmax.f32 %v629_v8, 0.0  ;;  %v808_v13 = vadd.f32 %v807_v11, %v806_v9  ;;  %v871_v14 = vpop.f32.mrb[17].mxu1  ;;  %v809_v15 = vpop.f32.mrb[18].mxu0 }
 0x119   :  { %v872_v16 = vadd.f32 %v871_v14, %v870_v10  ;;  %v873_v17 = vpop.f32.mrb[18].mxu1  ;;  %v810_v18 = vpop.f32.mrb[19].mxu0 }
 0x11a   :  { %688 = vst.msk [vmem:[%s1274_s3 + $0x38] sm:$0xff] %vm680_vm0, %v671_v12  ;;  %v537_v19 = vadd.f32 %v808_v13, %v1189_v2  ;;  %v811_v20 = vadd.f32 %v810_v18, %v809_v15  ;;  %v874_v21 = vpop.f32.mrb[19].mxu1 }
 0x11b   :  { %v875_v22 = vadd.f32 %v874_v21, %v873_v17 }
 0x11c   :  { %v634_v23 = vadd.f32 %v872_v16, %v537_v19  ;;  %v540_v24 = vadd.f32 %v811_v20, %v1189_v2 }
 0x11e   :  { %v672_v25 = vmax.f32 %v634_v23, 0.0  ;;  %v637_v26 = vadd.f32 %v875_v22, %v540_v24  ;;  %v812_v27 = vpop.f32.mrb[20].mxu0 }
 0x11f   :  { %v876_v28 = vpop.f32.mrb[20].mxu1  ;;  %v813_v29 = vpop.f32.mrb[21].mxu0 }
 0x120   :  { %689 = vst.msk [vmem:[%s1274_s3 + $0x40] sm:$0xff] %vm680_vm0, %v672_v25  ;;  %v673_v30 = vmax.f32 %v637_v26, 0.0  ;;  %v814_v31 = vadd.f32 %v813_v29, %v812_v27  ;;  %v877_v32 = vpop.f32.mrb[21].mxu1  ;;  %v815_v33 = vpop.f32.mrb[22].mxu0 }
 0x121   :  { %v878_v34 = vadd.f32 %v877_v32, %v876_v28  ;;  %v879_v35 = vpop.f32.mrb[22].mxu1  ;;  %v816_v36 = vpop.f32.mrb[23].mxu0 }
 0x122   :  { %690 = vst.msk [vmem:[%s1274_s3 + $0x48] sm:$0xff] %vm680_vm0, %v673_v30  ;;  %v545_v37 = vadd.f32 %v814_v31, %v1189_v2  ;;  %v817_v38 = vadd.f32 %v816_v36, %v815_v33  ;;  %v880_v39 = vpop.f32.mrb[23].mxu1 }
 0x123   :  { %v881_v40 = vadd.f32 %v880_v39, %v879_v35 }
 0x124   :  { %v642_v41 = vadd.f32 %v878_v34, %v545_v37  ;;  %v548_v42 = vadd.f32 %v817_v38, %v1189_v2 }
 0x126   :  { %v674_v43 = vmax.f32 %v642_v41, 0.0  ;;  %v645_v44 = vadd.f32 %v881_v40, %v548_v42  ;;  %v818_v45 = vpop.f32.mrb[24].mxu0 }
 0x127   :  { %v882_v46 = vpop.f32.mrb[24].mxu1  ;;  %v819_v47 = vpop.f32.mrb[25].mxu0 }
 0x128   :  { %691 = vst.msk [vmem:[%s1274_s3 + $0x50] sm:$0xff] %vm680_vm0, %v674_v43  ;;  %v675_v48 = vmax.f32 %v645_v44, 0.0  ;;  %v820_v49 = vadd.f32 %v819_v47, %v818_v45  ;;  %v883_v50 = vpop.f32.mrb[25].mxu1  ;;  %v821_v51 = vpop.f32.mrb[26].mxu0 }
 0x129   :  { %v884_v52 = vadd.f32 %v883_v50, %v882_v46  ;;  %v885_v53 = vpop.f32.mrb[26].mxu1  ;;  %v822_v54 = vpop.f32.mrb[27].mxu0 }
 0x12a   :  { %692 = vst.msk [vmem:[%s1274_s3 + $0x58] sm:$0xff] %vm680_vm0, %v675_v48  ;;  %v553_v55 = vadd.f32 %v820_v49, %v1189_v2  ;;  %v823_v56 = vadd.f32 %v822_v54, %v821_v51  ;;  %v886_v57 = vpop.f32.mrb[27].mxu1 }
 0x12b   :  { %v887_v58 = vadd.f32 %v886_v57, %v885_v53 }
 0x12c   :  { %v650_v59 = vadd.f32 %v884_v52, %v553_v55  ;;  %v556_v60 = vadd.f32 %v823_v56, %v1189_v2 }
 0x12e   :  { %v676_v61 = vmax.f32 %v650_v59, 0.0  ;;  %v653_v62 = vadd.f32 %v887_v58, %v556_v60  ;;  %v824_v63 = vpop.f32.mrb[28].mxu0 }
 0x12f   :  { %v888_v0 = vpop.f32.mrb[28].mxu1  ;;  %v825_v1 = vpop.f32.mrb[29].mxu0 }
 0x130   :  { %693 = vst.msk [vmem:[%s1274_s3 + $0x60] sm:$0xff] %vm680_vm0, %v676_v61  ;;  %v677_v3 = vmax.f32 %v653_v62, 0.0  ;;  %v826_v4 = vadd.f32 %v825_v1, %v824_v63  ;;  %v889_v5 = vpop.f32.mrb[29].mxu1  ;;  %v827_v6 = vpop.f32.mrb[30].mxu0 }
 0x131   :  { %v890_v7 = vadd.f32 %v889_v5, %v888_v0  ;;  %v891_v8 = vpop.f32.mrb[30].mxu1  ;;  %v828_v9 = vpop.f32.mrb[31].mxu0 }
 0x132   :  { %694 = vst.msk [vmem:[%s1274_s3 + $0x68] sm:$0xff] %vm680_vm0, %v677_v3  ;;  %v561_v10 = vadd.f32 %v826_v4, %v1189_v2  ;;  %v829_v11 = vadd.f32 %v828_v9, %v827_v6  ;;  %v892_v12 = vpop.f32.mrb[31].mxu1 }
 0x133   :  { %v893_v13 = vadd.f32 %v892_v12, %v891_v8 }
 0x134   :  { %v658_v14 = vadd.f32 %v890_v7, %v561_v10  ;;  %v564_v15 = vadd.f32 %v829_v11, %v1189_v2 }
 0x136   :  { %v678_v16 = vmax.f32 %v658_v14, 0.0  ;;  %v661_v17 = vadd.f32 %v893_v13, %v564_v15 }
 0x138   :  { %695 = vst.msk [vmem:[%s1274_s3 + $0x70] sm:$0xff] %vm680_vm0, %v678_v16  ;;  %v679_v18 = vmax.f32 %v661_v17, 0.0 }
 0x13a   :  { %696 = vst.msk [vmem:[%s1274_s3 + $0x78] sm:$0xff] %vm680_vm0, %v679_v18 }

// kernel: vae_cifar_forward.9
= control target key start
LH: loop header
LB: loop body
LE: loop exit
PB: predicated region body
PF: predicated region fallthrough
CT: control target
= control target key end

     0   :  { %s1370_s1 = inlined_call_operand.vmem [shape: bf16[1024,128], index: 1, kind: input, shape index: {}]   ;;  %s1371_s0 = inlined_call_operand.vmem [shape: bf16[32,1024], index: 0, kind: input, shape index: {}]   ;;  %s1372_s2 = inlined_call_operand.vmem [shape: f32[1,128], index: 2, kind: input, shape index: {}]   ;;  %s1373_s3 = inlined_call_operand.vmem [shape: f32[32,128], index: 3, kind: output, shape index: {}]  }
   0x1   :  { %v1031_v0 = vld [vmem:[%s1370_s1 + $0x40] sm:$0xff]   ;;  %v1035_v4 = vld [vmem:[%s1370_s1 + $0x48] sm:$0xff]   ;;  %v1039_v8 = vld [vmem:[%s1370_s1 + $0x50] sm:$0xff]  }
   0x2   :  { %v1032_v1 = vld [vmem:[%s1370_s1 + $0xc0] sm:$0xff]   ;;  %919 = vmatprep.subr.bf16.mxu0 %v1031_v0  ;;  %v1036_v5 = vld [vmem:[%s1370_s1 + $0xc8] sm:$0xff]   ;;  %v1040_v9 = vld [vmem:[%s1370_s1 + $0xd0] sm:$0xff]  }
   0x3   :  { %v1033_v2 = vld [vmem:[%s1370_s1] sm:$0xff]   ;;  %947 = vmatprep.subr.bf16.mxu1 %v1032_v1  ;;  %v1037_v6 = vld [vmem:[%s1370_s1 + $0x8] sm:$0xff]   ;;  %v1041_v10 = vld [vmem:[%s1370_s1 + $0x10] sm:$0xff]  }
   0x4   :  { %v1034_v3 = vld [vmem:[%s1370_s1 + $0x80] sm:$0xff]   ;;  %920 = vmatpush3.bf16.msra.mxu0 %v1033_v2  ;;  %v1038_v7 = vld [vmem:[%s1370_s1 + $0x88] sm:$0xff]   ;;  %v1042_v11 = vld [vmem:[%s1370_s1 + $0x90] sm:$0xff]  }
   0x5   :  { %948 = vmatpush3.bf16.msra.mxu1 %v1034_v3  ;;  %921 = vmatprep.subr.bf16.mxu0 %v1035_v4  ;;  %v1043_v12 = vld [vmem:[%s1370_s1 + $0x58] sm:$0xff]   ;;  %v1047_v16 = vld [vmem:[%s1370_s1 + $0x60] sm:$0xff]   ;;  %v1051_v20 = vld [vmem:[%s1370_s1 + $0x68] sm:$0xff]  }
   0x6   :  { %949 = vmatprep.subr.bf16.mxu1 %v1036_v5  ;;  %v1044_v13 = vld [vmem:[%s1370_s1 + $0xd8] sm:$0xff]   ;;  %v1048_v17 = vld [vmem:[%s1370_s1 + $0xe0] sm:$0xff]   ;;  %v1052_v21 = vld [vmem:[%s1370_s1 + $0xe8] sm:$0xff]  }
   0x7   :  { %v1045_v14 = vld [vmem:[%s1370_s1 + $0x18] sm:$0xff]   ;;  %v1049_v18 = vld [vmem:[%s1370_s1 + $0x20] sm:$0xff]   ;;  %v1053_v22 = vld [vmem:[%s1370_s1 + $0x28] sm:$0xff]  }
   0x8   :  { %922 = vmatpush3.bf16.msra.mxu0 %v1037_v6  ;;  %v1046_v15 = vld [vmem:[%s1370_s1 + $0x98] sm:$0xff]   ;;  %v1050_v19 = vld [vmem:[%s1370_s1 + $0xa0] sm:$0xff]   ;;  %v1054_v23 = vld [vmem:[%s1370_s1 + $0xa8] sm:$0xff]  }
   0x9   :  { %950 = vmatpush3.bf16.msra.mxu1 %v1038_v7  ;;  %923 = vmatprep.subr.bf16.mxu0 %v1039_v8  ;;  %v1055_v24 = vld [vmem:[%s1370_s1 + $0x70] sm:$0xff]   ;;  %v1059_v28 = vld [vmem:[%s1370_s1 + $0x78] sm:$0xff]   ;;  %v15_v32 = vld [vmem:[%s1371_s0] sm:$0xff] }
   0xa   :  { %951 = vmatprep.subr.bf16.mxu1 %v1040_v9  ;;  %v1056_v25 = vld [vmem:[%s1370_s1 + $0xf0] sm:$0xff]   ;;  %v1060_v29 = vld [vmem:[%s1370_s1 + $0xf8] sm:$0xff]   ;;  %v19_v33 = vld [vmem:[%s1371_s0 + $0x20] sm:$0xff] }
   0xb   :  { %v1057_v26 = vld [vmem:[%s1370_s1 + $0x30] sm:$0xff]   ;;  %v1061_v30 = vld [vmem:[%s1370_s1 + $0x38] sm:$0xff]   ;;  %v16_v34 = vld [vmem:[%s1371_s0 + $0x8] sm:$0xff]  ;;  %v839_v35 = vcombine.low %v15_v32, %v19_v33  ;;  %v840_v36 = vcombine.high %v15_v32, %v19_v33 }
   0xc   :  { %924 = vmatpush3.bf16.msra.mxu0 %v1041_v10  ;;  %v1058_v27 = vld [vmem:[%s1370_s1 + $0xb0] sm:$0xff]   ;;  %v1062_v31 = vld [vmem:[%s1370_s1 + $0xb8] sm:$0xff]   ;;  %v20_v37 = vld [vmem:[%s1371_s0 + $0x28] sm:$0xff] }
   0xd   :  { %952 = vmatpush3.bf16.msra.mxu1 %v1042_v11  ;;  %925 = vmatprep.subr.bf16.mxu0 %v1043_v12  ;;  %v841_v38 = vcombine.low %v16_v34, %v20_v37  ;;  %v842_v39 = vcombine.high %v16_v34, %v20_v37  ;;  %v1063_v40 = vld [vmem:[%s1370_s1 + $0x140] sm:$0xff]   ;;  %v1067_v44 = vld [vmem:[%s1370_s1 + $0x148] sm:$0xff]   ;;  %v1071_v48 = vld [vmem:[%s1370_s1 + $0x150] sm:$0xff]  }
   0xe   :  { %953 = vmatprep.subr.bf16.mxu1 %v1044_v13  ;;  %662 = vmatprep.mubr.bf16.mxu0 %v840_v36  ;;  %v1064_v41 = vld [vmem:[%s1370_s1 + $0x1c0] sm:$0xff]   ;;  %v1068_v45 = vld [vmem:[%s1370_s1 + $0x1c8] sm:$0xff]   ;;  %v1072_v49 = vld [vmem:[%s1370_s1 + $0x1d0] sm:$0xff]  }
   0xf   :  { %711 = vmatprep.mubr.bf16.mxu1 %v842_v39  ;;  %v1065_v42 = vld [vmem:[%s1370_s1 + $0x100] sm:$0xff]   ;;  %v1069_v46 = vld [vmem:[%s1370_s1 + $0x108] sm:$0xff]   ;;  %v1073_v50 = vld [vmem:[%s1370_s1 + $0x110] sm:$0xff]  }
  0x10   :  { %926 = vmatpush3.bf16.msra.mxu0 %v1045_v14  ;;  %v1066_v43 = vld [vmem:[%s1370_s1 + $0x180] sm:$0xff]   ;;  %v1070_v47 = vld [vmem:[%s1370_s1 + $0x188] sm:$0xff]   ;;  %v1074_v51 = vld [vmem:[%s1370_s1 + $0x190] sm:$0xff]  }
  0x11   :  { %954 = vmatpush3.bf16.msra.mxu1 %v1046_v15  ;;  %927 = vmatprep.subr.bf16.mxu0 %v1047_v16  ;;  %v1075_v52 = vld [vmem:[%s1370_s1 + $0x158] sm:$0xff]   ;;  %v1079_v56 = vld [vmem:[%s1370_s1 + $0x160] sm:$0xff]   ;;  %v1083_v63 = vld [vmem:[%s1370_s1 + $0x168] sm:$0xff]  }
  0x12   :  { %955 = vmatprep.subr.bf16.mxu1 %v1048_v17  ;;  %v1076_v53 = vld [vmem:[%s1370_s1 + $0x1d8] sm:$0xff]   ;;  %v1080_v57 = vld [vmem:[%s1370_s1 + $0x1e0] sm:$0xff]   ;;  %v1084_v1 = vld [vmem:[%s1370_s1 + $0x1e8] sm:$0xff]  }
  0x13   :  { %v1077_v54 = vld [vmem:[%s1370_s1 + $0x118] sm:$0xff]   ;;  %v1081_v58 = vld [vmem:[%s1370_s1 + $0x120] sm:$0xff]   ;;  %v1085_v2 = vld [vmem:[%s1370_s1 + $0x128] sm:$0xff]  }
  0x14   :  { %928 = vmatpush3.bf16.msra.mxu0 %v1049_v18  ;;  %v1078_v55 = vld [vmem:[%s1370_s1 + $0x198] sm:$0xff]   ;;  %v1082_v59 = vld [vmem:[%s1370_s1 + $0x1a0] sm:$0xff]   ;;  %v1086_v3 = vld [vmem:[%s1370_s1 + $0x1a8] sm:$0xff]  }
  0x15   :  { %956 = vmatpush3.bf16.msra.mxu1 %v1050_v19  ;;  %929 = vmatprep.subr.bf16.mxu0 %v1051_v20  ;;  %v23_v60 = vld [vmem:[%s1371_s0 + $0x40] sm:$0xff]  ;;  %v24_v4 = vld [vmem:[%s1371_s0 + $0x48] sm:$0xff]  ;;  %v1087_v8 = vld [vmem:[%s1370_s1 + $0x170] sm:$0xff]  }
  0x16   :  { %957 = vmatprep.subr.bf16.mxu1 %v1052_v21  ;;  %v27_v61 = vld [vmem:[%s1371_s0 + $0x60] sm:$0xff]  ;;  %v28_v5 = vld [vmem:[%s1371_s0 + $0x68] sm:$0xff]  ;;  %v1088_v9 = vld [vmem:[%s1370_s1 + $0x1f0] sm:$0xff]  }
  0x17   :  { %v848_v62 = vcombine.high %v23_v60, %v27_v61  ;;  %v847_v0 = vcombine.low %v23_v60, %v27_v61  ;;  %v850_v6 = vcombine.high %v24_v4, %v28_v5  ;;  %v849_v7 = vcombine.low %v24_v4, %v28_v5  ;;  %v1089_v10 = vld [vmem:[%s1370_s1 + $0x130] sm:$0xff]   ;;  %v1091_v12 = vld [vmem:[%s1370_s1 + $0x178] sm:$0xff]   ;;  %v838_v34 = vld [vmem:[%s1372_s2] ss:$0 sm:$0xff] }
  0x18   :  { %930 = vmatpush3.bf16.msra.mxu0 %v1053_v22  ;;  %v1090_v11 = vld [vmem:[%s1370_s1 + $0x1b0] sm:$0xff]   ;;  %v1092_v13 = vld [vmem:[%s1370_s1 + $0x1f8] sm:$0xff]  }
  0x19   :  { %958 = vmatpush3.bf16.msra.mxu1 %v1054_v23  ;;  %931 = vmatprep.subr.bf16.mxu0 %v1055_v24  ;;  %v1093_v14 = vld [vmem:[%s1370_s1 + $0x138] sm:$0xff]   ;;  %v17_v16 = vld [vmem:[%s1371_s0 + $0x10] sm:$0xff] }
  0x1a   :  { %959 = vmatprep.subr.bf16.mxu1 %v1056_v25  ;;  %v1094_v15 = vld [vmem:[%s1370_s1 + $0x1b8] sm:$0xff]   ;;  %v21_v17 = vld [vmem:[%s1371_s0 + $0x30] sm:$0xff] }
  0x1b   :  { %v18_v18 = vld [vmem:[%s1371_s0 + $0x18] sm:$0xff]  ;;  %v843_v20 = vcombine.low %v17_v16, %v21_v17  ;;  %v844_v21 = vcombine.high %v17_v16, %v21_v17  ;;  %v25_v24 = vld [vmem:[%s1371_s0 + $0x50] sm:$0xff] }
  0x1c   :  { %932 = vmatpush3.bf16.msra.mxu0 %v1057_v26  ;;  %v22_v19 = vld [vmem:[%s1371_s0 + $0x38] sm:$0xff]  ;;  %v29_v25 = vld [vmem:[%s1371_s0 + $0x70] sm:$0xff] }
  0x1d   :  { %960 = vmatpush3.bf16.msra.mxu1 %v1058_v27  ;;  %933 = vmatprep.subr.bf16.mxu0 %v1059_v28  ;;  %v845_v22 = vcombine.low %v18_v18, %v22_v19  ;;  %v846_v23 = vcombine.high %v18_v18, %v22_v19  ;;  %v26_v26 = vld [vmem:[%s1371_s0 + $0x58] sm:$0xff]  ;;  %v852_v27 = vcombine.high %v25_v24, %v29_v25 }
  0x1e   :  { %961 = vmatprep.subr.bf16.mxu1 %v1060_v29  ;;  %v30_v28 = vld [vmem:[%s1371_s0 + $0x78] sm:$0xff] }
  0x1f   :  { %v854_v29 = vcombine.high %v26_v26, %v30_v28 }
  0x20   :  { %934 = vmatpush3.bf16.msra.mxu0 %v1061_v30  ;;  %v851_v30 = vcombine.low %v25_v24, %v29_v25 }
  0x21   :  { %962 = vmatpush3.bf16.msra.mxu1 %v1062_v31  ;;  %975 = vmatprep.subr.bf16.mxu0 %v1063_v40  ;;  %v853_v31 = vcombine.low %v26_v26, %v30_v28 }
  0x22   :  { %1003 = vmatprep.subr.bf16.mxu1 %v1064_v41 }
  0x23   :  { %663 = vmatmul.mubr.bf16.vlgmr.msra.gmra.mrb[0].mxu0 %v839_v35 }
  0x24   :  { %712 = vmatmul.mubr.bf16.vlgmr.msra.gmra.mrb[0].mxu1 %v841_v38  ;;  %976 = vmatpush3.bf16.msra.mxu0 %v1065_v42 }
  0x25   :  { %1004 = vmatpush3.bf16.msra.mxu1 %v1066_v43  ;;  %977 = vmatprep.subr.bf16.mxu0 %v1067_v44 }
  0x26   :  { %1005 = vmatprep.subr.bf16.mxu1 %v1068_v45  ;;  %670 = vmatprep.mubr.bf16.mxu0 %v848_v62 }
  0x27   :  { %719 = vmatprep.mubr.bf16.mxu1 %v850_v6 }
  0x28   :  { %978 = vmatpush3.bf16.msra.mxu0 %v1069_v46 }
  0x29   :  { %1006 = vmatpush3.bf16.msra.mxu1 %v1070_v47  ;;  %979 = vmatprep.subr.bf16.mxu0 %v1071_v48 }
  0x2a   :  { %1007 = vmatprep.subr.bf16.mxu1 %v1072_v49 }
  0x2b   :  { %671 = vmatmul.mubr.bf16.gmra.mrb[4].mxu0 %v847_v0 }
  0x2c   :  { %980 = vmatpush3.bf16.msra.mxu0 %v1073_v50  ;;  %720 = vmatmul.mubr.bf16.gmra.mrb[4].mxu1 %v849_v7 }
  0x2d   :  { %1008 = vmatpush3.bf16.msra.mxu1 %v1074_v51  ;;  %981 = vmatprep.subr.bf16.mxu0 %v1075_v52 }
  0x2e   :  { %1009 = vmatprep.subr.bf16.mxu1 %v1076_v53  ;;  %760 = vmatprep.mubr.bf16.mxu0 %v844_v21 }
  0x2f   :  { %809 = vmatprep.mubr.bf16.mxu1 %v846_v23 }
  0x30   :  { %982 = vmatpush3.bf16.msra.mxu0 %v1077_v54 }
  0x31   :  { %1010 = vmatpush3.bf16.msra.mxu1 %v1078_v55  ;;  %983 = vmatprep.subr.bf16.mxu0 %v1079_v56 }
  0x32   :  { %1011 = vmatprep.subr.bf16.mxu1 %v1080_v57 }
  0x34   :  { %984 = vmatpush3.bf16.msra.mxu0 %v1081_v58 }
  0x35   :  { %1012 = vmatpush3.bf16.msra.mxu1 %v1082_v59  ;;  %985 = vmatprep.subr.bf16.mxu0 %v1083_v63 }
  0x36   :  { %1013 = vmatprep.subr.bf16.mxu1 %v1084_v1 }
  0x38   :  { %986 = vmatpush3.bf16.msra.mxu0 %v1085_v2 }
  0x39   :  { %1014 = vmatpush3.bf16.msra.mxu1 %v1086_v3  ;;  %987 = vmatprep.subr.bf16.mxu0 %v1087_v8 }
  0x3a   :  { %1015 = vmatprep.subr.bf16.mxu1 %v1088_v9 }
  0x3c   :  { %988 = vmatpush3.bf16.msra.mxu0 %v1089_v10 }
  0x3d   :  { %1016 = vmatpush3.bf16.msra.mxu1 %v1090_v11  ;;  %989 = vmatprep.subr.bf16.mxu0 %v1091_v12 }
  0x3e   :  { %1017 = vmatprep.subr.bf16.mxu1 %v1092_v13 }
  0x40   :  { %990 = vmatpush3.bf16.msra.mxu0 %v1093_v14 }
  0x41   :  { %1018 = vmatpush3.bf16.msra.mxu1 %v1094_v15 }
  0x43   :  { %761 = vmatmul.mubr.bf16.vlgmr.msra.gmra.mrb[8].mxu0 %v843_v20 }
  0x44   :  { %810 = vmatmul.mubr.bf16.vlgmr.msra.gmra.mrb[8].mxu1 %v845_v22  ;;  %768 = vmatprep.mubr.bf16.mxu0 %v852_v27 }
  0x45   :  { %817 = vmatprep.mubr.bf16.mxu1 %v854_v29 }
  0x4b   :  { %769 = vmatmul.mubr.bf16.gmra.mrb[12].mxu0 %v851_v30 }
  0x4c   :  { %818 = vmatmul.mubr.bf16.gmra.mrb[12].mxu1 %v853_v31 }
  0xf6   :  { %v935_v32 = vpop.f32.mrb[0].mxu0 }
  0xf7   :  { %v963_v33 = vpop.f32.mrb[0].mxu1  ;;  %v936_v35 = vpop.f32.mrb[1].mxu0 }
  0xf8   :  { %v937_v36 = vadd.f32 %v936_v35, %v935_v32  ;;  %v964_v37 = vpop.f32.mrb[1].mxu1  ;;  %v938_v38 = vpop.f32.mrb[2].mxu0 }
  0xf9   :  { %v965_v39 = vadd.f32 %v964_v37, %v963_v33  ;;  %v966_v40 = vpop.f32.mrb[2].mxu1  ;;  %v939_v41 = vpop.f32.mrb[3].mxu0 }
  0xfa   :  { %v665_v42 = vadd.f32 %v937_v36, %v838_v34  ;;  %v940_v43 = vadd.f32 %v939_v41, %v938_v38  ;;  %v967_v44 = vpop.f32.mrb[3].mxu1 }
  0xfb   :  { %v968_v45 = vadd.f32 %v967_v44, %v966_v40 }
  0xfc   :  { %v714_v46 = vadd.f32 %v965_v39, %v665_v42  ;;  %v668_v47 = vadd.f32 %v940_v43, %v838_v34 }
  0xfe   :  { %v717_v48 = vadd.f32 %v968_v45, %v668_v47  ;;  %v941_v49 = vpop.f32.mrb[4].mxu0 }
  0xff   :  { %v942_v50 = vpop.f32.mrb[5].mxu0  ;;  %v969_v56 = vpop.f32.mrb[4].mxu1 }
 0x100   :  { %v943_v51 = vadd.f32 %v942_v50, %v941_v49  ;;  %v944_v52 = vpop.f32.mrb[6].mxu0  ;;  %v970_v57 = vpop.f32.mrb[5].mxu1 }
 0x101   :  { %v945_v53 = vpop.f32.mrb[7].mxu0  ;;  %v971_v59 = vadd.f32 %v970_v57, %v969_v56  ;;  %v972_v60 = vpop.f32.mrb[6].mxu1 }
 0x102   :  { %v946_v54 = vadd.f32 %v945_v53, %v944_v52  ;;  %v673_v55 = vadd.f32 %v943_v51, %v838_v34  ;;  %v973_v61 = vpop.f32.mrb[7].mxu1 }
 0x103   :  { %v974_v63 = vadd.f32 %v973_v61, %v972_v60 }
 0x104   :  { %v676_v58 = vadd.f32 %v946_v54, %v838_v34  ;;  %v722_v62 = vadd.f32 %v971_v59, %v673_v55 }
 0x106   :  { %v725_v0 = vadd.f32 %v974_v63, %v676_v58 }
 0x116   :  { %v991_v1 = vpop.f32.mrb[8].mxu0 }
 0x117   :  { %v1019_v2 = vpop.f32.mrb[8].mxu1  ;;  %v992_v3 = vpop.f32.mrb[9].mxu0 }
 0x118   :  { %v1020_v4 = vpop.f32.mrb[9].mxu1  ;;  %v993_v5 = vadd.f32 %v992_v3, %v991_v1  ;;  %v994_v7 = vpop.f32.mrb[10].mxu0 }
 0x119   :  { %v1021_v6 = vadd.f32 %v1020_v4, %v1019_v2  ;;  %v1022_v8 = vpop.f32.mrb[10].mxu1  ;;  %v995_v9 = vpop.f32.mrb[11].mxu0 }
 0x11a   :  { %v1023_v10 = vpop.f32.mrb[11].mxu1  ;;  %v763_v11 = vadd.f32 %v993_v5, %v714_v46  ;;  %v996_v12 = vadd.f32 %v995_v9, %v994_v7 }
 0x11b   :  { %v1024_v13 = vadd.f32 %v1023_v10, %v1022_v8 }
 0x11c   :  { %v812_v14 = vadd.f32 %v1021_v6, %v763_v11  ;;  %v766_v15 = vadd.f32 %v996_v12, %v717_v48 }
 0x11e   :  { %v826_v16 = vmax.f32 %v812_v14, 0.0  ;;  %v815_v17 = vadd.f32 %v1024_v13, %v766_v15  ;;  %v997_v18 = vpop.f32.mrb[12].mxu0 }
 0x11f   :  { %v1025_v19 = vpop.f32.mrb[12].mxu1  ;;  %v998_v20 = vpop.f32.mrb[13].mxu0 }
 0x120   :  { %v1026_v21 = vpop.f32.mrb[13].mxu1  ;;  %830 = vst [vmem:[%s1373_s3] sm:$0xff] %v826_v16  ;;  %v827_v22 = vmax.f32 %v815_v17, 0.0  ;;  %v999_v23 = vadd.f32 %v998_v20, %v997_v18  ;;  %v1000_v25 = vpop.f32.mrb[14].mxu0 }
 0x121   :  { %v1027_v24 = vadd.f32 %v1026_v21, %v1025_v19  ;;  %v1028_v26 = vpop.f32.mrb[14].mxu1  ;;  %v1001_v27 = vpop.f32.mrb[15].mxu0 }
 0x122   :  { %v1029_v28 = vpop.f32.mrb[15].mxu1  ;;  %831 = vst [vmem:[%s1373_s3 + $0x8] sm:$0xff] %v827_v22  ;;  %v771_v29 = vadd.f32 %v999_v23, %v722_v62  ;;  %v1002_v30 = vadd.f32 %v1001_v27, %v1000_v25 }
 0x123   :  { %v1030_v31 = vadd.f32 %v1029_v28, %v1028_v26 }
 0x124   :  { %v820_v32 = vadd.f32 %v1027_v24, %v771_v29  ;;  %v774_v33 = vadd.f32 %v1002_v30, %v725_v0 }
 0x126   :  { %v828_v34 = vmax.f32 %v820_v32, 0.0  ;;  %v823_v35 = vadd.f32 %v1030_v31, %v774_v33 }
 0x128   :  { %832 = vst [vmem:[%s1373_s3 + $0x10] sm:$0xff] %v828_v34  ;;  %v829_v36 = vmax.f32 %v823_v35, 0.0 }
 0x12a   :  { %833 = vst [vmem:[%s1373_s3 + $0x18] sm:$0xff] %v829_v36 }

// kernel: vae_cifar_forward.10
= control target key start
LH: loop header
LB: loop body
LE: loop exit
PB: predicated region body
PF: predicated region fallthrough
CT: control target
= control target key end

     0   :  { %v4489_v22 = vmov 1966171168   ;;  %v301_v24 = vlaneseq  ;;  %vm3132_vm0 = vcmask 261120   ;;  %s5627_s1 = inlined_call_operand.vmem [shape: bf16[2048,32], index: 1, kind: input, shape index: {}]   ;;  %s5628_s0 = inlined_call_operand.vmem [shape: bf16[2,2048], index: 0, kind: input, shape index: {}]   ;;  %s5629_s3 = inlined_call_operand.vmem [shape: bf16[2048,32], index: 3, kind: input, shape index: {}]   ;;  %s5630_s2 = inlined_call_operand.vmem [shape: f32[1,32], index: 2, kind: input, shape index: {}]   ;;  %s5631_s6 = inlined_call_operand.vmem [shape: bf16[32,2048], index: 6, kind: input, shape index: {}]   ;;  %s5632_s4 = inlined_call_operand.vmem [shape: f32[1,32], index: 4, kind: input, shape index: {}]   ;;  %s5633_s5 = inlined_call_operand.vmem [shape: f32[2,32], index: 5, kind: input, shape index: {}]   ;;  %s5634_s7 = inlined_call_operand.vmem [shape: f32[1,2048], index: 7, kind: input, shape index: {}]   ;;  %s5635_s8 = inlined_call_operand.vmem [shape: f32[2,2048], index: 8, kind: output, shape index: {}]  }
   0x1   :  { %v4229_v0 = vld [vmem:[%s5627_s1 + $0x40] sm:$0xff]   ;;  %v4233_v4 = vld [vmem:[%s5627_s1 + $0x48] sm:$0xff]   ;;  %v4237_v8 = vld [vmem:[%s5627_s1 + $0x50] sm:$0xff]   ;;  %v299_v23 = vunpack.c.l.s4 %v4489_v22 }
   0x2   :  { %v4230_v1 = vld [vmem:[%s5627_s1 + $0xc0] sm:$0xff]   ;;  %3874 = vmatprep.subr.bf16.mxu0 %v4229_v0  ;;  %v4234_v5 = vld [vmem:[%s5627_s1 + $0xc8] sm:$0xff]   ;;  %v4238_v9 = vld [vmem:[%s5627_s1 + $0xd0] sm:$0xff]   ;;  %v4615_v30 = vshrl.u32 %v301_v24, 7 }
   0x3   :  { %v4231_v2 = vld [vmem:[%s5627_s1] sm:$0xff]   ;;  %3896 = vmatprep.subr.bf16.mxu1 %v4230_v1  ;;  %v4235_v6 = vld [vmem:[%s5627_s1 + $0x8] sm:$0xff]   ;;  %v4239_v10 = vld [vmem:[%s5627_s1 + $0x10] sm:$0xff]   ;;  %v300_v29 = vunpack.c.0.s8 %v299_v23 }
   0x4   :  { %v4232_v3 = vld [vmem:[%s5627_s1 + $0x80] sm:$0xff]   ;;  %3875 = vmatpush3.bf16.msra.mxu0 %v4231_v2  ;;  %v4236_v7 = vld [vmem:[%s5627_s1 + $0x88] sm:$0xff]   ;;  %v4240_v11 = vld [vmem:[%s5627_s1 + $0x90] sm:$0xff]  }
   0x5   :  { %3897 = vmatpush3.bf16.msra.mxu1 %v4232_v3  ;;  %3876 = vmatprep.subr.bf16.mxu0 %v4233_v4  ;;  %v4241_v12 = vld [vmem:[%s5627_s1 + $0x58] sm:$0xff]   ;;  %v4245_v16 = vld [vmem:[%s5627_s1 + $0x60] sm:$0xff]   ;;  %v4249_v20 = vld [vmem:[%s5627_s1 + $0x68] sm:$0xff]   ;;  %v4630_v35 = vsub.s32 %v300_v29, %v4615_v30 }
   0x6   :  { %3898 = vmatprep.subr.bf16.mxu1 %v4234_v5  ;;  %v4242_v13 = vld [vmem:[%s5627_s1 + $0xd8] sm:$0xff]   ;;  %v4246_v17 = vld [vmem:[%s5627_s1 + $0xe0] sm:$0xff]   ;;  %v4250_v21 = vld [vmem:[%s5627_s1 + $0xe8] sm:$0xff]  }
   0x7   :  { %v4243_v14 = vld [vmem:[%s5627_s1 + $0x18] sm:$0xff]   ;;  %v4247_v18 = vld [vmem:[%s5627_s1 + $0x20] sm:$0xff]   ;;  %v4251_v25 = vld [vmem:[%s5627_s1 + $0x28] sm:$0xff]  }
   0x8   :  { %3877 = vmatpush3.bf16.msra.mxu0 %v4235_v6  ;;  %v4244_v15 = vld [vmem:[%s5627_s1 + $0x98] sm:$0xff]   ;;  %v4248_v19 = vld [vmem:[%s5627_s1 + $0xa0] sm:$0xff]   ;;  %v4252_v26 = vld [vmem:[%s5627_s1 + $0xa8] sm:$0xff]  }
   0x9   :  { %3899 = vmatpush3.bf16.msra.mxu1 %v4236_v7  ;;  %3878 = vmatprep.subr.bf16.mxu0 %v4237_v8  ;;  %v4253_v27 = vld [vmem:[%s5627_s1 + $0x70] sm:$0xff]   ;;  %v4257_v33 = vld [vmem:[%s5627_s1 + $0x78] sm:$0xff]   ;;  %v30_v38 = vld [vmem:[%s5628_s0] sm:$0xff] }
   0xa   :  { %3900 = vmatprep.subr.bf16.mxu1 %v4238_v9  ;;  %v4254_v28 = vld [vmem:[%s5627_s1 + $0xf0] sm:$0xff]   ;;  %v4258_v34 = vld [vmem:[%s5627_s1 + $0xf8] sm:$0xff]   ;;  %v304_v39 = vrot.slane %v30_v38, %v4630_v35  ;;  %v4261_v40 = vld [vmem:[%s5627_s1 + $0x140] sm:$0xff]   ;;  %v297_v41 = vcombine.high %v30_v38, %v30_v38 }
   0xb   :  { %v4255_v31 = vld [vmem:[%s5627_s1 + $0x30] sm:$0xff]   ;;  %v4259_v36 = vld [vmem:[%s5627_s1 + $0x38] sm:$0xff]   ;;  %v4262_v42 = vld [vmem:[%s5627_s1 + $0x1c0] sm:$0xff]  }
   0xc   :  { %3879 = vmatpush3.bf16.msra.mxu0 %v4239_v10  ;;  %v4256_v32 = vld [vmem:[%s5627_s1 + $0xb0] sm:$0xff]   ;;  %v4260_v37 = vld [vmem:[%s5627_s1 + $0xb8] sm:$0xff]   ;;  %v312_v43 = vcombine.high %v304_v39, %v304_v39  ;;  %v4649_v44 = vrot.slane %v304_v39, %v4630_v35  ;;  %v4652_v45 = vrot.slane %v297_v41, %v4630_v35  ;;  %v4263_v47 = vld [vmem:[%s5627_s1 + $0x100] sm:$0xff]  }
   0xd   :  { %3901 = vmatpush3.bf16.msra.mxu1 %v4240_v11  ;;  %3880 = vmatprep.subr.bf16.mxu0 %v4241_v12  ;;  %v4265_v50 = vld [vmem:[%s5627_s1 + $0x148] sm:$0xff]   ;;  %v4264_v52 = vld [vmem:[%s5627_s1 + $0x180] sm:$0xff]   ;;  %v4269_v57 = vld [vmem:[%s5627_s1 + $0x150] sm:$0xff]  }
   0xe   :  { %3902 = vmatprep.subr.bf16.mxu1 %v4242_v13  ;;  %v4655_v46 = vrot.slane %v312_v43, %v4630_v35  ;;  %v313_v48 = vcombine.high %v4652_v45, %v4652_v45  ;;  %v4664_v49 = vcombine.high %v4649_v44, %v4649_v44  ;;  %v4266_v54 = vld [vmem:[%s5627_s1 + $0x1c8] sm:$0xff]   ;;  %v4270_v59 = vld [vmem:[%s5627_s1 + $0x1d0] sm:$0xff]   ;;  %v4273_v61 = vld [vmem:[%s5627_s1 + $0x158] sm:$0xff]  }
   0xf   :  { %v4267_v55 = vld [vmem:[%s5627_s1 + $0x108] sm:$0xff]   ;;  %v4271_v60 = vld [vmem:[%s5627_s1 + $0x110] sm:$0xff]   ;;  %v4274_v63 = vld [vmem:[%s5627_s1 + $0x1d8] sm:$0xff]  }
  0x10   :  { %3881 = vmatpush3.bf16.msra.mxu0 %v4243_v14  ;;  %1211 = vmatprep.mubr.bf16.mxu0 %v4655_v46  ;;  %v4672_v51 = vcombine.high %v4655_v46, %v4655_v46  ;;  %v4678_v53 = vrot.slane %v313_v48, %v4630_v35  ;;  %v4268_v58 = vld [vmem:[%s5627_s1 + $0x188] sm:$0xff]   ;;  %v4272_v62 = vld [vmem:[%s5627_s1 + $0x190] sm:$0xff]   ;;  %v4275_v0 = vld [vmem:[%s5627_s1 + $0x118] sm:$0xff]  }
  0x11   :  { %3903 = vmatpush3.bf16.msra.mxu1 %v4244_v15  ;;  %3882 = vmatprep.subr.bf16.mxu0 %v4245_v16  ;;  %v4277_v1 = vld [vmem:[%s5627_s1 + $0x160] sm:$0xff]   ;;  %v4276_v2 = vld [vmem:[%s5627_s1 + $0x198] sm:$0xff]   ;;  %v4281_v5 = vld [vmem:[%s5627_s1 + $0x168] sm:$0xff]  }
  0x12   :  { %3904 = vmatprep.subr.bf16.mxu1 %v4246_v17  ;;  %1251 = vmatprep.mubr.bf16.mxu1 %v4672_v51  ;;  %v4690_v56 = vcombine.high %v4678_v53, %v4678_v53  ;;  %v4278_v3 = vld [vmem:[%s5627_s1 + $0x1e0] sm:$0xff]   ;;  %v4282_v7 = vld [vmem:[%s5627_s1 + $0x1e8] sm:$0xff]   ;;  %v4285_v9 = vld [vmem:[%s5627_s1 + $0x170] sm:$0xff]   ;;  %v4769_v17 = vrot.slane %v4652_v45, %v4630_v35 }
  0x13   :  { %v4279_v4 = vld [vmem:[%s5627_s1 + $0x120] sm:$0xff]   ;;  %v4283_v8 = vld [vmem:[%s5627_s1 + $0x128] sm:$0xff]   ;;  %v4286_v11 = vld [vmem:[%s5627_s1 + $0x1f0] sm:$0xff]  }
  0x14   :  { %3883 = vmatpush3.bf16.msra.mxu0 %v4247_v18  ;;  %v4280_v6 = vld [vmem:[%s5627_s1 + $0x1a0] sm:$0xff]   ;;  %v4284_v10 = vld [vmem:[%s5627_s1 + $0x1a8] sm:$0xff]   ;;  %v4287_v12 = vld [vmem:[%s5627_s1 + $0x130] sm:$0xff]   ;;  %v4785_v22 = vcombine.high %v4769_v17, %v4769_v17 }
  0x15   :  { %3905 = vmatpush3.bf16.msra.mxu1 %v4248_v19  ;;  %3884 = vmatprep.subr.bf16.mxu0 %v4249_v20  ;;  %v4289_v13 = vld [vmem:[%s5627_s1 + $0x178] sm:$0xff]   ;;  %v4288_v14 = vld [vmem:[%s5627_s1 + $0x1b0] sm:$0xff]   ;;  %v4294_v18 = vld [vmem:[%s5627_s1 + $0x240] sm:$0xff]  }
  0x16   :  { %3906 = vmatprep.subr.bf16.mxu1 %v4250_v21  ;;  %v4290_v15 = vld [vmem:[%s5627_s1 + $0x1f8] sm:$0xff]   ;;  %v4295_v20 = vld [vmem:[%s5627_s1 + $0x2c0] sm:$0xff]   ;;  %v4298_v23 = vld [vmem:[%s5627_s1 + $0x248] sm:$0xff]  }
  0x17   :  { %v4291_v16 = vld [vmem:[%s5627_s1 + $0x138] sm:$0xff]   ;;  %v4296_v21 = vld [vmem:[%s5627_s1 + $0x200] sm:$0xff]   ;;  %v4303_v29 = vld [vmem:[%s5627_s1 + $0x2d0] sm:$0xff]  }
  0x18   :  { %3885 = vmatpush3.bf16.msra.mxu0 %v4251_v25  ;;  %v4292_v19 = vld [vmem:[%s5627_s1 + $0x1b8] sm:$0xff]   ;;  %v4297_v24 = vld [vmem:[%s5627_s1 + $0x280] sm:$0xff]   ;;  %v4299_v25 = vld [vmem:[%s5627_s1 + $0x2c8] sm:$0xff]  }
  0x19   :  { %3907 = vmatpush3.bf16.msra.mxu1 %v4252_v26  ;;  %3886 = vmatprep.subr.bf16.mxu0 %v4253_v27  ;;  %v4300_v26 = vld [vmem:[%s5627_s1 + $0x208] sm:$0xff]   ;;  %v4302_v27 = vld [vmem:[%s5627_s1 + $0x250] sm:$0xff]   ;;  %v4309_v38 = vld [vmem:[%s5627_s1 + $0x298] sm:$0xff]  }
  0x1a   :  { %3908 = vmatprep.subr.bf16.mxu1 %v4254_v28  ;;  %v4301_v28 = vld [vmem:[%s5627_s1 + $0x288] sm:$0xff]   ;;  %v4311_v39 = vld [vmem:[%s5627_s1 + $0x2e0] sm:$0xff]  }
  0x1b   :  { %v4314_v41 = vld [vmem:[%s5627_s1 + $0x268] sm:$0xff]  }
  0x1c   :  { %3887 = vmatpush3.bf16.msra.mxu0 %v4255_v31  ;;  %v4304_v31 = vld [vmem:[%s5627_s1 + $0x210] sm:$0xff]   ;;  %v4315_v43 = vld [vmem:[%s5627_s1 + $0x2e8] sm:$0xff]  }
  0x1d   :  { %3909 = vmatpush3.bf16.msra.mxu1 %v4256_v32  ;;  %3888 = vmatprep.subr.bf16.mxu0 %v4257_v33  ;;  %v4306_v32 = vld [vmem:[%s5627_s1 + $0x258] sm:$0xff]   ;;  %v4305_v33 = vld [vmem:[%s5627_s1 + $0x290] sm:$0xff]   ;;  %v4316_v45 = vld [vmem:[%s5627_s1 + $0x228] sm:$0xff]  }
  0x1e   :  { %3910 = vmatprep.subr.bf16.mxu1 %v4258_v34  ;;  %v4307_v34 = vld [vmem:[%s5627_s1 + $0x2d8] sm:$0xff]   ;;  %v4317_v48 = vld [vmem:[%s5627_s1 + $0x2a8] sm:$0xff]  }
  0x20   :  { %3889 = vmatpush3.bf16.msra.mxu0 %v4259_v36  ;;  %v4308_v36 = vld [vmem:[%s5627_s1 + $0x218] sm:$0xff]  }
  0x21   :  { %3911 = vmatpush3.bf16.msra.mxu1 %v4260_v37  ;;  %3918 = vmatprep.subr.bf16.mxu0 %v4261_v40  ;;  %v4310_v37 = vld [vmem:[%s5627_s1 + $0x260] sm:$0xff]  }
  0x22   :  { %3940 = vmatprep.subr.bf16.mxu1 %v4262_v42  ;;  %v4312_v40 = vld [vmem:[%s5627_s1 + $0x220] sm:$0xff]  }
  0x23   :  { %1212 = vmatmul.mubr.bf16.vlgmr.msra.gmra.mrb[0].mxu0 %v4649_v44  ;;  %v4313_v42 = vld [vmem:[%s5627_s1 + $0x2a0] sm:$0xff]  }
  0x24   :  { %3919 = vmatpush3.bf16.msra.mxu0 %v4263_v47  ;;  %1252 = vmatmul.mubr.bf16.vlgmr.msra.gmra.mrb[0].mxu1 %v4664_v49  ;;  %v4318_v47 = vld [vmem:[%s5627_s1 + $0x270] sm:$0xff]  }
  0x25   :  { %3920 = vmatprep.subr.bf16.mxu0 %v4265_v50  ;;  %3941 = vmatpush3.bf16.msra.mxu1 %v4264_v52  ;;  %v4319_v50 = vld [vmem:[%s5627_s1 + $0x2f0] sm:$0xff]  }
  0x26   :  { %1291 = vmatprep.mubr.bf16.mxu0 %v4678_v53  ;;  %3942 = vmatprep.subr.bf16.mxu1 %v4266_v54  ;;  %v4320_v52 = vld [vmem:[%s5627_s1 + $0x230] sm:$0xff]   ;;  %v4322_v54 = vld [vmem:[%s5627_s1 + $0x278] sm:$0xff]  }
  0x27   :  { %1331 = vmatprep.mubr.bf16.mxu1 %v4690_v56 }
  0x28   :  { %3921 = vmatpush3.bf16.msra.mxu0 %v4267_v55  ;;  %v4321_v55 = vld [vmem:[%s5627_s1 + $0x2b0] sm:$0xff]  }
  0x29   :  { %3922 = vmatprep.subr.bf16.mxu0 %v4269_v57  ;;  %3943 = vmatpush3.bf16.msra.mxu1 %v4268_v58  ;;  %v4323_v57 = vld [vmem:[%s5627_s1 + $0x2f8] sm:$0xff]   ;;  %v31_v58 = vld [vmem:[%s5628_s0 + $0x8] sm:$0xff] }
  0x2a   :  { %3944 = vmatprep.subr.bf16.mxu1 %v4270_v59  ;;  %v4324_v59 = vld [vmem:[%s5627_s1 + $0x238] sm:$0xff]  }
  0x2c   :  { %3923 = vmatpush3.bf16.msra.mxu0 %v4271_v60  ;;  %v353_v60 = vrot.slane %v31_v58, %v4630_v35 }
  0x2d   :  { %3924 = vmatprep.subr.bf16.mxu0 %v4273_v61  ;;  %3945 = vmatpush3.bf16.msra.mxu1 %v4272_v62  ;;  %v346_v61 = vcombine.high %v31_v58, %v31_v58  ;;  %v4326_v62 = vld [vmem:[%s5627_s1 + $0x340] sm:$0xff]   ;;  %v4367_v58 = vld [vmem:[%s5629_s3 + $0x50] sm:$0xff]  }
  0x2e   :  { %3946 = vmatprep.subr.bf16.mxu1 %v4274_v63  ;;  %v4325_v63 = vld [vmem:[%s5627_s1 + $0x2b8] sm:$0xff]  }
  0x30   :  { %3925 = vmatpush3.bf16.msra.mxu0 %v4275_v0  ;;  %v361_v0 = vcombine.high %v353_v60, %v353_v60 }
  0x31   :  { %3926 = vmatprep.subr.bf16.mxu0 %v4277_v1  ;;  %3947 = vmatpush3.bf16.msra.mxu1 %v4276_v2  ;;  %v4884_v1 = vrot.slane %v353_v60, %v4630_v35  ;;  %v4887_v2 = vrot.slane %v346_v61, %v4630_v35  ;;  %v4368_v60 = vld [vmem:[%s5629_s3 + $0xd0] sm:$0xff]   ;;  %v4371_v61 = vld [vmem:[%s5629_s3 + $0x58] sm:$0xff]  }
  0x32   :  { %3948 = vmatprep.subr.bf16.mxu1 %v4278_v3  ;;  %v4327_v3 = vld [vmem:[%s5627_s1 + $0x3c0] sm:$0xff]  }
  0x34   :  { %3927 = vmatpush3.bf16.msra.mxu0 %v4279_v4  ;;  %v4893_v4 = vrot.slane %v361_v0, %v4630_v35  ;;  %v4375_v0 = vld [vmem:[%s5629_s3 + $0x60] sm:$0xff]  }
  0x35   :  { %3928 = vmatprep.subr.bf16.mxu0 %v4281_v5  ;;  %3949 = vmatpush3.bf16.msra.mxu1 %v4280_v6  ;;  %v4328_v5 = vld [vmem:[%s5627_s1 + $0x300] sm:$0xff]   ;;  %v362_v6 = vcombine.high %v4887_v2, %v4887_v2 }
  0x36   :  { %3950 = vmatprep.subr.bf16.mxu1 %v4282_v7  ;;  %v4902_v7 = vcombine.high %v4884_v1, %v4884_v1 }
  0x38   :  { %3929 = vmatpush3.bf16.msra.mxu0 %v4283_v8  ;;  %v4330_v8 = vld [vmem:[%s5627_s1 + $0x348] sm:$0xff]  }
  0x39   :  { %3930 = vmatprep.subr.bf16.mxu0 %v4285_v9  ;;  %3951 = vmatpush3.bf16.msra.mxu1 %v4284_v10  ;;  %v4910_v9 = vcombine.high %v4893_v4, %v4893_v4  ;;  %v4329_v10 = vld [vmem:[%s5627_s1 + $0x380] sm:$0xff]  }
  0x3a   :  { %3952 = vmatprep.subr.bf16.mxu1 %v4286_v11  ;;  %v4916_v11 = vrot.slane %v362_v6, %v4630_v35  ;;  %v4379_v6 = vld [vmem:[%s5629_s3 + $0x68] sm:$0xff]  }
  0x3c   :  { %3931 = vmatpush3.bf16.msra.mxu0 %v4287_v12  ;;  %v4331_v12 = vld [vmem:[%s5627_s1 + $0x3c8] sm:$0xff]  }
  0x3d   :  { %3932 = vmatprep.subr.bf16.mxu0 %v4289_v13  ;;  %3953 = vmatpush3.bf16.msra.mxu1 %v4288_v14  ;;  %v4332_v13 = vld [vmem:[%s5627_s1 + $0x308] sm:$0xff]   ;;  %v4928_v14 = vcombine.high %v4916_v11, %v4916_v11 }
  0x3e   :  { %3954 = vmatprep.subr.bf16.mxu1 %v4290_v15  ;;  %v4334_v15 = vld [vmem:[%s5627_s1 + $0x350] sm:$0xff]  }
  0x40   :  { %3933 = vmatpush3.bf16.msra.mxu0 %v4291_v16  ;;  %v4333_v16 = vld [vmem:[%s5627_s1 + $0x388] sm:$0xff]  }
  0x41   :  { %3962 = vmatprep.subr.bf16.mxu0 %v4294_v18  ;;  %3955 = vmatpush3.bf16.msra.mxu1 %v4292_v19  ;;  %v4335_v18 = vld [vmem:[%s5627_s1 + $0x3d0] sm:$0xff]  }
  0x42   :  { %3984 = vmatprep.subr.bf16.mxu1 %v4295_v20  ;;  %v4336_v19 = vld [vmem:[%s5627_s1 + $0x310] sm:$0xff]   ;;  %v4338_v20 = vld [vmem:[%s5627_s1 + $0x358] sm:$0xff]  }
  0x43   :  { %1292 = vmatmul.mubr.bf16.vlgmr.msra.gmra.mrb[4].mxu0 %v4769_v17 }
  0x44   :  { %3963 = vmatpush3.bf16.msra.mxu0 %v4296_v21  ;;  %1332 = vmatmul.mubr.bf16.vlgmr.msra.gmra.mrb[4].mxu1 %v4785_v22  ;;  %v4337_v21 = vld [vmem:[%s5627_s1 + $0x390] sm:$0xff]  }
  0x45   :  { %3964 = vmatprep.subr.bf16.mxu0 %v4298_v23  ;;  %3985 = vmatpush3.bf16.msra.mxu1 %v4297_v24  ;;  %v4339_v23 = vld [vmem:[%s5627_s1 + $0x3d8] sm:$0xff]  }
  0x46   :  { %3986 = vmatprep.subr.bf16.mxu1 %v4299_v25  ;;  %1371 = vmatprep.mubr.bf16.mxu0 %v4893_v4  ;;  %v4340_v24 = vld [vmem:[%s5627_s1 + $0x318] sm:$0xff]   ;;  %v4342_v25 = vld [vmem:[%s5627_s1 + $0x360] sm:$0xff]  }
  0x47   :  { %1411 = vmatprep.mubr.bf16.mxu1 %v4910_v9 }
  0x48   :  { %3965 = vmatpush3.bf16.msra.mxu0 %v4300_v26  ;;  %v4341_v26 = vld [vmem:[%s5627_s1 + $0x398] sm:$0xff]  }
  0x49   :  { %3966 = vmatprep.subr.bf16.mxu0 %v4302_v27  ;;  %3987 = vmatpush3.bf16.msra.mxu1 %v4301_v28  ;;  %v4343_v27 = vld [vmem:[%s5627_s1 + $0x3e0] sm:$0xff]  }
  0x4a   :  { %3988 = vmatprep.subr.bf16.mxu1 %v4303_v29  ;;  %v4344_v28 = vld [vmem:[%s5627_s1 + $0x320] sm:$0xff]   ;;  %v4346_v29 = vld [vmem:[%s5627_s1 + $0x368] sm:$0xff]  }
  0x4c   :  { %3967 = vmatpush3.bf16.msra.mxu0 %v4304_v31  ;;  %v4345_v31 = vld [vmem:[%s5627_s1 + $0x3a0] sm:$0xff]  }
  0x4d   :  { %3968 = vmatprep.subr.bf16.mxu0 %v4306_v32  ;;  %3989 = vmatpush3.bf16.msra.mxu1 %v4305_v33  ;;  %v4347_v32 = vld [vmem:[%s5627_s1 + $0x3e8] sm:$0xff]  }
  0x4e   :  { %3990 = vmatprep.subr.bf16.mxu1 %v4307_v34  ;;  %v4348_v33 = vld [vmem:[%s5627_s1 + $0x328] sm:$0xff]   ;;  %v4350_v34 = vld [vmem:[%s5627_s1 + $0x370] sm:$0xff]  }
  0x50   :  { %3969 = vmatpush3.bf16.msra.mxu0 %v4308_v36  ;;  %v4349_v36 = vld [vmem:[%s5627_s1 + $0x3a8] sm:$0xff]  }
  0x51   :  { %3970 = vmatprep.subr.bf16.mxu0 %v4310_v37  ;;  %3991 = vmatpush3.bf16.msra.mxu1 %v4309_v38  ;;  %v4351_v37 = vld [vmem:[%s5627_s1 + $0x3f0] sm:$0xff]  }
  0x52   :  { %3992 = vmatprep.subr.bf16.mxu1 %v4311_v39  ;;  %v4352_v38 = vld [vmem:[%s5627_s1 + $0x330] sm:$0xff]   ;;  %v4354_v39 = vld [vmem:[%s5627_s1 + $0x378] sm:$0xff]  }
  0x54   :  { %3971 = vmatpush3.bf16.msra.mxu0 %v4312_v40  ;;  %v4353_v40 = vld [vmem:[%s5627_s1 + $0x3b0] sm:$0xff]  }
  0x55   :  { %3972 = vmatprep.subr.bf16.mxu0 %v4314_v41  ;;  %3993 = vmatpush3.bf16.msra.mxu1 %v4313_v42  ;;  %v4355_v41 = vld [vmem:[%s5627_s1 + $0x3f8] sm:$0xff]  }
  0x56   :  { %3994 = vmatprep.subr.bf16.mxu1 %v4315_v43  ;;  %v4356_v42 = vld [vmem:[%s5627_s1 + $0x338] sm:$0xff]   ;;  %v5007_v43 = vrot.slane %v4887_v2, %v4630_v35  ;;  %v4361_v35 = vld [vmem:[%s5629_s3] sm:$0xff]  }
  0x57   :  { %v4374_v2 = vld [vmem:[%s5629_s3 + $0x98] sm:$0xff]  }
  0x58   :  { %3973 = vmatpush3.bf16.msra.mxu0 %v4316_v45  ;;  %v4359_v45 = vld [vmem:[%s5629_s3 + $0x40] sm:$0xff]  }
  0x59   :  { %3974 = vmatprep.subr.bf16.mxu0 %v4318_v47  ;;  %3995 = vmatpush3.bf16.msra.mxu1 %v4317_v48  ;;  %v4357_v47 = vld [vmem:[%s5627_s1 + $0x3b8] sm:$0xff]   ;;  %v4360_v48 = vld [vmem:[%s5629_s3 + $0xc0] sm:$0xff]  }
  0x5a   :  { %3996 = vmatprep.subr.bf16.mxu1 %v4319_v50  ;;  %v5023_v50 = vcombine.high %v5007_v43, %v5007_v43 }
  0x5c   :  { %3975 = vmatpush3.bf16.msra.mxu0 %v4320_v52  ;;  %v4363_v52 = vld [vmem:[%s5629_s3 + $0x48] sm:$0xff]  }
  0x5d   :  { %3976 = vmatprep.subr.bf16.mxu0 %v4322_v54  ;;  %3997 = vmatpush3.bf16.msra.mxu1 %v4321_v55  ;;  %v4362_v54 = vld [vmem:[%s5629_s3 + $0x80] sm:$0xff]   ;;  %v4364_v55 = vld [vmem:[%s5629_s3 + $0xc8] sm:$0xff]  }
  0x5e   :  { %3998 = vmatprep.subr.bf16.mxu1 %v4323_v57  ;;  %v4365_v57 = vld [vmem:[%s5629_s3 + $0x8] sm:$0xff]  }
  0x60   :  { %3977 = vmatpush3.bf16.msra.mxu0 %v4324_v59  ;;  %v4366_v59 = vld [vmem:[%s5629_s3 + $0x88] sm:$0xff]  }
  0x61   :  { %4006 = vmatprep.subr.bf16.mxu0 %v4326_v62  ;;  %3999 = vmatpush3.bf16.msra.mxu1 %v4325_v63  ;;  %v4372_v62 = vld [vmem:[%s5629_s3 + $0xd8] sm:$0xff]  }
  0x62   :  { %4028 = vmatprep.subr.bf16.mxu1 %v4327_v3  ;;  %v4373_v63 = vld [vmem:[%s5629_s3 + $0x18] sm:$0xff]   ;;  %v4376_v3 = vld [vmem:[%s5629_s3 + $0xe0] sm:$0xff]  }
  0x63   :  { %1372 = vmatmul.mubr.bf16.vlgmr.msra.gmra.mrb[8].mxu0 %v4884_v1 }
  0x64   :  { %4007 = vmatpush3.bf16.msra.mxu0 %v4328_v5  ;;  %1412 = vmatmul.mubr.bf16.vlgmr.msra.gmra.mrb[8].mxu1 %v4902_v7  ;;  %v4377_v5 = vld [vmem:[%s5629_s3 + $0x20] sm:$0xff]  }
  0x65   :  { %4008 = vmatprep.subr.bf16.mxu0 %v4330_v8  ;;  %4029 = vmatpush3.bf16.msra.mxu1 %v4329_v10  ;;  %v4378_v8 = vld [vmem:[%s5629_s3 + $0xa0] sm:$0xff]   ;;  %v4380_v10 = vld [vmem:[%s5629_s3 + $0xe8] sm:$0xff]  }
  0x66   :  { %1451 = vmatprep.mubr.bf16.mxu0 %v4916_v11  ;;  %4030 = vmatprep.subr.bf16.mxu1 %v4331_v12  ;;  %v4381_v12 = vld [vmem:[%s5629_s3 + $0x28] sm:$0xff]  }
  0x67   :  { %1491 = vmatprep.mubr.bf16.mxu1 %v4928_v14 }
  0x68   :  { %4009 = vmatpush3.bf16.msra.mxu0 %v4332_v13  ;;  %v4383_v13 = vld [vmem:[%s5629_s3 + $0x70] sm:$0xff]  }
  0x69   :  { %4010 = vmatprep.subr.bf16.mxu0 %v4334_v15  ;;  %4031 = vmatpush3.bf16.msra.mxu1 %v4333_v16  ;;  %v4382_v15 = vld [vmem:[%s5629_s3 + $0xa8] sm:$0xff]   ;;  %v4384_v16 = vld [vmem:[%s5629_s3 + $0xf0] sm:$0xff]  }
  0x6a   :  { %4032 = vmatprep.subr.bf16.mxu1 %v4335_v18  ;;  %v4385_v18 = vld [vmem:[%s5629_s3 + $0x30] sm:$0xff]  }
  0x6c   :  { %4011 = vmatpush3.bf16.msra.mxu0 %v4336_v19  ;;  %v4387_v19 = vld [vmem:[%s5629_s3 + $0x78] sm:$0xff]  }
  0x6d   :  { %4012 = vmatprep.subr.bf16.mxu0 %v4338_v20  ;;  %4033 = vmatpush3.bf16.msra.mxu1 %v4337_v21  ;;  %v4386_v20 = vld [vmem:[%s5629_s3 + $0xb0] sm:$0xff]   ;;  %v4388_v21 = vld [vmem:[%s5629_s3 + $0xf8] sm:$0xff]  }
  0x6e   :  { %4034 = vmatprep.subr.bf16.mxu1 %v4339_v23  ;;  %v4389_v23 = vld [vmem:[%s5629_s3 + $0x38] sm:$0xff]  }
  0x70   :  { %4013 = vmatpush3.bf16.msra.mxu0 %v4340_v24  ;;  %v4391_v24 = vld [vmem:[%s5629_s3 + $0x140] sm:$0xff]  }
  0x71   :  { %4014 = vmatprep.subr.bf16.mxu0 %v4342_v25  ;;  %4035 = vmatpush3.bf16.msra.mxu1 %v4341_v26  ;;  %v4390_v25 = vld [vmem:[%s5629_s3 + $0xb8] sm:$0xff]   ;;  %v4392_v26 = vld [vmem:[%s5629_s3 + $0x1c0] sm:$0xff]  }
  0x72   :  { %4036 = vmatprep.subr.bf16.mxu1 %v4343_v27  ;;  %v4393_v27 = vld [vmem:[%s5629_s3 + $0x100] sm:$0xff]  }
  0x74   :  { %4015 = vmatpush3.bf16.msra.mxu0 %v4344_v28  ;;  %v4395_v28 = vld [vmem:[%s5629_s3 + $0x148] sm:$0xff]  }
  0x75   :  { %4016 = vmatprep.subr.bf16.mxu0 %v4346_v29  ;;  %4037 = vmatpush3.bf16.msra.mxu1 %v4345_v31  ;;  %v4394_v29 = vld [vmem:[%s5629_s3 + $0x180] sm:$0xff]   ;;  %v4396_v31 = vld [vmem:[%s5629_s3 + $0x1c8] sm:$0xff]  }
  0x76   :  { %4038 = vmatprep.subr.bf16.mxu1 %v4347_v32  ;;  %v4397_v32 = vld [vmem:[%s5629_s3 + $0x108] sm:$0xff]  }
  0x78   :  { %4017 = vmatpush3.bf16.msra.mxu0 %v4348_v33  ;;  %v4399_v33 = vld [vmem:[%s5629_s3 + $0x150] sm:$0xff]  }
  0x79   :  { %4018 = vmatprep.subr.bf16.mxu0 %v4350_v34  ;;  %4039 = vmatpush3.bf16.msra.mxu1 %v4349_v36  ;;  %v4400_v34 = vld [vmem:[%s5629_s3 + $0x1d0] sm:$0xff]   ;;  %v4404_v36 = vld [vmem:[%s5629_s3 + $0x1d8] sm:$0xff]  }
  0x7a   :  { %4040 = vmatprep.subr.bf16.mxu1 %v4351_v37  ;;  %v4405_v37 = vld [vmem:[%s5629_s3 + $0x118] sm:$0xff]  }
  0x7c   :  { %4019 = vmatpush3.bf16.msra.mxu0 %v4352_v38  ;;  %v4407_v38 = vld [vmem:[%s5629_s3 + $0x160] sm:$0xff]  }
  0x7d   :  { %4020 = vmatprep.subr.bf16.mxu0 %v4354_v39  ;;  %4041 = vmatpush3.bf16.msra.mxu1 %v4353_v40  ;;  %v4406_v39 = vld [vmem:[%s5629_s3 + $0x198] sm:$0xff]   ;;  %v4408_v40 = vld [vmem:[%s5629_s3 + $0x1e0] sm:$0xff]  }
  0x7e   :  { %4042 = vmatprep.subr.bf16.mxu1 %v4355_v41  ;;  %v4409_v41 = vld [vmem:[%s5629_s3 + $0x120] sm:$0xff]  }
  0x80   :  { %4021 = vmatpush3.bf16.msra.mxu0 %v4356_v42  ;;  %v4411_v42 = vld [vmem:[%s5629_s3 + $0x168] sm:$0xff]  }
  0x81   :  { %4050 = vmatprep.subr.bf16.mxu0 %v4359_v45  ;;  %4043 = vmatpush3.bf16.msra.mxu1 %v4357_v47  ;;  %v4410_v45 = vld [vmem:[%s5629_s3 + $0x1a0] sm:$0xff]   ;;  %v4412_v47 = vld [vmem:[%s5629_s3 + $0x1e8] sm:$0xff]  }
  0x82   :  { %4072 = vmatprep.subr.bf16.mxu1 %v4360_v48  ;;  %v4413_v48 = vld [vmem:[%s5629_s3 + $0x128] sm:$0xff]  }
  0x83   :  { %1452 = vmatmul.mubr.bf16.vlgmr.msra.gmra.mrb[12].mxu0 %v5007_v43 }
  0x84   :  { %4051 = vmatpush3.bf16.msra.mxu0 %v4361_v35  ;;  %2562 = vmatprep.mubr.bf16.mxu0 %v4655_v46  ;;  %v4369_v46 = vld [vmem:[%s5629_s3 + $0x10] sm:$0xff]  }
  0x85   :  { %1492 = vmatmul.mubr.bf16.vlgmr.msra.gmra.mrb[12].mxu1 %v5023_v50  ;;  %4052 = vmatprep.subr.bf16.mxu0 %v4363_v52  ;;  %v4415_v35 = vld [vmem:[%s5629_s3 + $0x170] sm:$0xff]   ;;  %v4414_v52 = vld [vmem:[%s5629_s3 + $0x1a8] sm:$0xff]  }
  0x86   :  { %4073 = vmatpush3.bf16.msra.mxu1 %v4362_v54  ;;  %2602 = vmatprep.mubr.bf16.mxu1 %v4672_v51  ;;  %v4370_v51 = vld [vmem:[%s5629_s3 + $0x90] sm:$0xff]  }
  0x87   :  { %4074 = vmatprep.subr.bf16.mxu1 %v4364_v55  ;;  %v4416_v54 = vld [vmem:[%s5629_s3 + $0x1f0] sm:$0xff]  }
  0x88   :  { %4053 = vmatpush3.bf16.msra.mxu0 %v4365_v57  ;;  %v4417_v55 = vld [vmem:[%s5629_s3 + $0x130] sm:$0xff]   ;;  %v4419_v57 = vld [vmem:[%s5629_s3 + $0x178] sm:$0xff]  }
  0x89   :  { %4054 = vmatprep.subr.bf16.mxu0 %v4367_v58  ;;  %v4418_v58 = vld [vmem:[%s5629_s3 + $0x1b0] sm:$0xff]  }
  0x8a   :  { %4075 = vmatpush3.bf16.msra.mxu1 %v4366_v59  ;;  %v4420_v59 = vld [vmem:[%s5629_s3 + $0x1f8] sm:$0xff]  }
  0x8b   :  { %4076 = vmatprep.subr.bf16.mxu1 %v4368_v60  ;;  %v4421_v60 = vld [vmem:[%s5629_s3 + $0x138] sm:$0xff]  }
  0x8c   :  { %4055 = vmatpush3.bf16.msra.mxu0 %v4369_v46  ;;  %v4423_v46 = vld [vmem:[%s5629_s3 + $0x240] sm:$0xff]  }
  0x8d   :  { %4056 = vmatprep.subr.bf16.mxu0 %v4371_v61  ;;  %v4422_v61 = vld [vmem:[%s5629_s3 + $0x1b8] sm:$0xff]  }
  0x8e   :  { %4077 = vmatpush3.bf16.msra.mxu1 %v4370_v51  ;;  %v4424_v51 = vld [vmem:[%s5629_s3 + $0x2c0] sm:$0xff]  }
  0x8f   :  { %4078 = vmatprep.subr.bf16.mxu1 %v4372_v62  ;;  %v4425_v62 = vld [vmem:[%s5629_s3 + $0x200] sm:$0xff]  }
  0x90   :  { %4057 = vmatpush3.bf16.msra.mxu0 %v4373_v63  ;;  %v4427_v63 = vld [vmem:[%s5629_s3 + $0x248] sm:$0xff]  }
  0x91   :  { %4058 = vmatprep.subr.bf16.mxu0 %v4375_v0  ;;  %v4426_v0 = vld [vmem:[%s5629_s3 + $0x280] sm:$0xff]  }
  0x92   :  { %4079 = vmatpush3.bf16.msra.mxu1 %v4374_v2  ;;  %v4428_v2 = vld [vmem:[%s5629_s3 + $0x2c8] sm:$0xff]  }
  0x93   :  { %4080 = vmatprep.subr.bf16.mxu1 %v4376_v3  ;;  %v4429_v3 = vld [vmem:[%s5629_s3 + $0x208] sm:$0xff]  }
  0x94   :  { %4059 = vmatpush3.bf16.msra.mxu0 %v4377_v5  ;;  %v4431_v5 = vld [vmem:[%s5629_s3 + $0x250] sm:$0xff]  }
  0x95   :  { %4060 = vmatprep.subr.bf16.mxu0 %v4379_v6  ;;  %v4432_v6 = vld [vmem:[%s5629_s3 + $0x2d0] sm:$0xff]  }
  0x96   :  { %4081 = vmatpush3.bf16.msra.mxu1 %v4378_v8  ;;  %v4436_v8 = vld [vmem:[%s5629_s3 + $0x2d8] sm:$0xff]  }
  0x97   :  { %4082 = vmatprep.subr.bf16.mxu1 %v4380_v10  ;;  %v4437_v10 = vld [vmem:[%s5629_s3 + $0x218] sm:$0xff]  }
  0x98   :  { %4061 = vmatpush3.bf16.msra.mxu0 %v4381_v12  ;;  %v4439_v12 = vld [vmem:[%s5629_s3 + $0x260] sm:$0xff]  }
  0x99   :  { %4062 = vmatprep.subr.bf16.mxu0 %v4383_v13  ;;  %v4438_v13 = vld [vmem:[%s5629_s3 + $0x298] sm:$0xff]  }
  0x9a   :  { %4083 = vmatpush3.bf16.msra.mxu1 %v4382_v15  ;;  %v4440_v15 = vld [vmem:[%s5629_s3 + $0x2e0] sm:$0xff]  }
  0x9b   :  { %4084 = vmatprep.subr.bf16.mxu1 %v4384_v16  ;;  %v4441_v16 = vld [vmem:[%s5629_s3 + $0x220] sm:$0xff]  }
  0x9c   :  { %4063 = vmatpush3.bf16.msra.mxu0 %v4385_v18  ;;  %v4443_v18 = vld [vmem:[%s5629_s3 + $0x268] sm:$0xff]  }
  0x9d   :  { %4064 = vmatprep.subr.bf16.mxu0 %v4387_v19  ;;  %v4442_v19 = vld [vmem:[%s5629_s3 + $0x2a0] sm:$0xff]  }
  0x9e   :  { %4085 = vmatpush3.bf16.msra.mxu1 %v4386_v20  ;;  %v4444_v20 = vld [vmem:[%s5629_s3 + $0x2e8] sm:$0xff]  }
  0x9f   :  { %4086 = vmatprep.subr.bf16.mxu1 %v4388_v21  ;;  %v4445_v21 = vld [vmem:[%s5629_s3 + $0x228] sm:$0xff]  }
  0xa0   :  { %4065 = vmatpush3.bf16.msra.mxu0 %v4389_v23  ;;  %v4447_v23 = vld [vmem:[%s5629_s3 + $0x270] sm:$0xff]  }
  0xa1   :  { %4094 = vmatprep.subr.bf16.mxu0 %v4391_v24  ;;  %v4446_v24 = vld [vmem:[%s5629_s3 + $0x2a8] sm:$0xff]  }
  0xa2   :  { %4087 = vmatpush3.bf16.msra.mxu1 %v4390_v25  ;;  %v4448_v25 = vld [vmem:[%s5629_s3 + $0x2f0] sm:$0xff]  }
  0xa3   :  { %2563 = vmatmul.mubr.bf16.vlgmr.msra.gmra.mrb[16].mxu0 %v4649_v44  ;;  %4116 = vmatprep.subr.bf16.mxu1 %v4392_v26  ;;  %v4398_v44 = vld [vmem:[%s5629_s3 + $0x188] sm:$0xff]   ;;  %v4449_v26 = vld [vmem:[%s5629_s3 + $0x230] sm:$0xff]  }
  0xa4   :  { %4095 = vmatpush3.bf16.msra.mxu0 %v4393_v27  ;;  %2642 = vmatprep.mubr.bf16.mxu0 %v4678_v53  ;;  %v4403_v53 = vld [vmem:[%s5629_s3 + $0x158] sm:$0xff]  }
  0xa5   :  { %2603 = vmatmul.mubr.bf16.vlgmr.msra.gmra.mrb[16].mxu1 %v4664_v49  ;;  %4096 = vmatprep.subr.bf16.mxu0 %v4395_v28  ;;  %v4401_v49 = vld [vmem:[%s5629_s3 + $0x110] sm:$0xff]   ;;  %v4451_v27 = vld [vmem:[%s5629_s3 + $0x278] sm:$0xff]  }
  0xa6   :  { %4117 = vmatpush3.bf16.msra.mxu1 %v4394_v29  ;;  %2682 = vmatprep.mubr.bf16.mxu1 %v4690_v56  ;;  %v4402_v56 = vld [vmem:[%s5629_s3 + $0x190] sm:$0xff]   ;;  %v4452_v29 = vld [vmem:[%s5629_s3 + $0x2f8] sm:$0xff]  }
  0xa7   :  { %4118 = vmatprep.subr.bf16.mxu1 %v4396_v31  ;;  %v4450_v28 = vld [vmem:[%s5629_s3 + $0x2b0] sm:$0xff]   ;;  %v4453_v31 = vld [vmem:[%s5629_s3 + $0x238] sm:$0xff]  }
  0xa8   :  { %4097 = vmatpush3.bf16.msra.mxu0 %v4397_v32  ;;  %v4455_v32 = vld [vmem:[%s5629_s3 + $0x340] sm:$0xff]  }
  0xa9   :  { %4098 = vmatprep.subr.bf16.mxu0 %v4399_v33  ;;  %v4454_v33 = vld [vmem:[%s5629_s3 + $0x2b8] sm:$0xff]  }
  0xaa   :  { %4119 = vmatpush3.bf16.msra.mxu1 %v4398_v44  ;;  %v4456_v44 = vld [vmem:[%s5629_s3 + $0x3c0] sm:$0xff]  }
  0xab   :  { %4120 = vmatprep.subr.bf16.mxu1 %v4400_v34  ;;  %v4457_v34 = vld [vmem:[%s5629_s3 + $0x300] sm:$0xff]  }
  0xac   :  { %4099 = vmatpush3.bf16.msra.mxu0 %v4401_v49  ;;  %v4459_v49 = vld [vmem:[%s5629_s3 + $0x348] sm:$0xff]  }
  0xad   :  { %4100 = vmatprep.subr.bf16.mxu0 %v4403_v53  ;;  %v4458_v53 = vld [vmem:[%s5629_s3 + $0x380] sm:$0xff]  }
  0xae   :  { %4121 = vmatpush3.bf16.msra.mxu1 %v4402_v56  ;;  %v4460_v56 = vld [vmem:[%s5629_s3 + $0x3c8] sm:$0xff]  }
  0xaf   :  { %4122 = vmatprep.subr.bf16.mxu1 %v4404_v36  ;;  %v4461_v36 = vld [vmem:[%s5629_s3 + $0x308] sm:$0xff]  }
  0xb0   :  { %4101 = vmatpush3.bf16.msra.mxu0 %v4405_v37  ;;  %v4463_v37 = vld [vmem:[%s5629_s3 + $0x350] sm:$0xff]  }
  0xb1   :  { %4102 = vmatprep.subr.bf16.mxu0 %v4407_v38  ;;  %v4464_v38 = vld [vmem:[%s5629_s3 + $0x3d0] sm:$0xff]  }
  0xb2   :  { %4123 = vmatpush3.bf16.msra.mxu1 %v4406_v39  ;;  %v4468_v39 = vld [vmem:[%s5629_s3 + $0x3d8] sm:$0xff]  }
  0xb3   :  { %4124 = vmatprep.subr.bf16.mxu1 %v4408_v40  ;;  %v4469_v40 = vld [vmem:[%s5629_s3 + $0x318] sm:$0xff]  }
  0xb4   :  { %4103 = vmatpush3.bf16.msra.mxu0 %v4409_v41  ;;  %v4471_v41 = vld [vmem:[%s5629_s3 + $0x360] sm:$0xff]  }
  0xb5   :  { %4104 = vmatprep.subr.bf16.mxu0 %v4411_v42  ;;  %v4470_v42 = vld [vmem:[%s5629_s3 + $0x398] sm:$0xff]  }
  0xb6   :  { %4125 = vmatpush3.bf16.msra.mxu1 %v4410_v45  ;;  %v4472_v45 = vld [vmem:[%s5629_s3 + $0x3e0] sm:$0xff]  }
  0xb7   :  { %4126 = vmatprep.subr.bf16.mxu1 %v4412_v47  ;;  %v4473_v47 = vld [vmem:[%s5629_s3 + $0x320] sm:$0xff]  }
  0xb8   :  { %4105 = vmatpush3.bf16.msra.mxu0 %v4413_v48  ;;  %v4474_v48 = vld [vmem:[%s5629_s3 + $0x3a0] sm:$0xff]  }
  0xb9   :  { %4106 = vmatprep.subr.bf16.mxu0 %v4415_v35  ;;  %v4475_v35 = vld [vmem:[%s5629_s3 + $0x368] sm:$0xff]  }
  0xba   :  { %4127 = vmatpush3.bf16.msra.mxu1 %v4414_v52  ;;  %v4476_v52 = vld [vmem:[%s5629_s3 + $0x3e8] sm:$0xff]  }
  0xbb   :  { %4128 = vmatprep.subr.bf16.mxu1 %v4416_v54  ;;  %v4477_v54 = vld [vmem:[%s5629_s3 + $0x328] sm:$0xff]  }
  0xbc   :  { %4107 = vmatpush3.bf16.msra.mxu0 %v4417_v55  ;;  %v4478_v55 = vld [vmem:[%s5629_s3 + $0x3a8] sm:$0xff]  }
  0xbd   :  { %4108 = vmatprep.subr.bf16.mxu0 %v4419_v57  ;;  %v3576_v57 = vld [vmem:[%s5630_s2] ss:$0 sm:$0xff] }
  0xbe   :  { %4129 = vmatpush3.bf16.msra.mxu1 %v4418_v58  ;;  %v4479_v58 = vld [vmem:[%s5629_s3 + $0x370] sm:$0xff]  }
  0xbf   :  { %4130 = vmatprep.subr.bf16.mxu1 %v4420_v59 }
  0xc0   :  { %4109 = vmatpush3.bf16.msra.mxu0 %v4421_v60  ;;  %v4480_v60 = vld [vmem:[%s5629_s3 + $0x3f0] sm:$0xff]  }
  0xc1   :  { %4138 = vmatprep.subr.bf16.mxu0 %v4423_v46 }
  0xc2   :  { %4131 = vmatpush3.bf16.msra.mxu1 %v4422_v61  ;;  %v4481_v61 = vld [vmem:[%s5629_s3 + $0x330] sm:$0xff]  }
  0xc3   :  { %2643 = vmatmul.mubr.bf16.vlgmr.msra.gmra.mrb[20].mxu0 %v4769_v17  ;;  %4160 = vmatprep.subr.bf16.mxu1 %v4424_v51  ;;  %v4430_v17 = vld [vmem:[%s5629_s3 + $0x288] sm:$0xff]  }
  0xc4   :  { %4139 = vmatpush3.bf16.msra.mxu0 %v4425_v62  ;;  %2722 = vmatprep.mubr.bf16.mxu0 %v4893_v4  ;;  %v4435_v4 = vld [vmem:[%s5629_s3 + $0x258] sm:$0xff]  }
  0xc5   :  { %2683 = vmatmul.mubr.bf16.vlgmr.msra.gmra.mrb[20].mxu1 %v4785_v22  ;;  %4140 = vmatprep.subr.bf16.mxu0 %v4427_v63  ;;  %v4433_v22 = vld [vmem:[%s5629_s3 + $0x210] sm:$0xff]  }
  0xc6   :  { %4161 = vmatpush3.bf16.msra.mxu1 %v4426_v0  ;;  %2762 = vmatprep.mubr.bf16.mxu1 %v4910_v9  ;;  %v4434_v9 = vld [vmem:[%s5629_s3 + $0x290] sm:$0xff]  }
  0xc7   :  { %4162 = vmatprep.subr.bf16.mxu1 %v4428_v2 }
  0xc8   :  { %4141 = vmatpush3.bf16.msra.mxu0 %v4429_v3  ;;  %v4483_v3 = vld [vmem:[%s5629_s3 + $0x378] sm:$0xff]  }
  0xc9   :  { %4142 = vmatprep.subr.bf16.mxu0 %v4431_v5 }
  0xca   :  { %4163 = vmatpush3.bf16.msra.mxu1 %v4430_v17 }
  0xcb   :  { %4164 = vmatprep.subr.bf16.mxu1 %v4432_v6 }
  0xcc   :  { %4143 = vmatpush3.bf16.msra.mxu0 %v4433_v22  ;;  %v4482_v22 = vld [vmem:[%s5629_s3 + $0x3b0] sm:$0xff]  }
  0xcd   :  { %4144 = vmatprep.subr.bf16.mxu0 %v4435_v4 }
  0xce   :  { %4165 = vmatpush3.bf16.msra.mxu1 %v4434_v9  ;;  %v4484_v9 = vld [vmem:[%s5629_s3 + $0x3f8] sm:$0xff]  }
  0xcf   :  { %4166 = vmatprep.subr.bf16.mxu1 %v4436_v8 }
  0xd0   :  { %4145 = vmatpush3.bf16.msra.mxu0 %v4437_v10  ;;  %v4485_v10 = vld [vmem:[%s5629_s3 + $0x338] sm:$0xff]  }
  0xd1   :  { %4146 = vmatprep.subr.bf16.mxu0 %v4439_v12  ;;  %v4486_v12 = vld [vmem:[%s5629_s3 + $0x3b8] sm:$0xff]  }
  0xd2   :  { %4167 = vmatpush3.bf16.msra.mxu1 %v4438_v13 }
  0xd3   :  { %4168 = vmatprep.subr.bf16.mxu1 %v4440_v15 }
  0xd4   :  { %4147 = vmatpush3.bf16.msra.mxu0 %v4441_v16 }
  0xd5   :  { %4148 = vmatprep.subr.bf16.mxu0 %v4443_v18 }
  0xd6   :  { %4169 = vmatpush3.bf16.msra.mxu1 %v4442_v19 }
  0xd7   :  { %4170 = vmatprep.subr.bf16.mxu1 %v4444_v20 }
  0xd8   :  { %4149 = vmatpush3.bf16.msra.mxu0 %v4445_v21 }
  0xd9   :  { %4150 = vmatprep.subr.bf16.mxu0 %v4447_v23 }
  0xda   :  { %4171 = vmatpush3.bf16.msra.mxu1 %v4446_v24 }
  0xdb   :  { %4172 = vmatprep.subr.bf16.mxu1 %v4448_v25 }
  0xdc   :  { %4151 = vmatpush3.bf16.msra.mxu0 %v4449_v26 }
  0xdd   :  { %4152 = vmatprep.subr.bf16.mxu0 %v4451_v27 }
  0xde   :  { %4173 = vmatpush3.bf16.msra.mxu1 %v4450_v28 }
  0xdf   :  { %4174 = vmatprep.subr.bf16.mxu1 %v4452_v29 }
  0xe0   :  { %4153 = vmatpush3.bf16.msra.mxu0 %v4453_v31 }
  0xe1   :  { %4182 = vmatprep.subr.bf16.mxu0 %v4455_v32 }
  0xe2   :  { %4175 = vmatpush3.bf16.msra.mxu1 %v4454_v33 }
  0xe3   :  { %2723 = vmatmul.mubr.bf16.vlgmr.msra.gmra.mrb[24].mxu0 %v4884_v1  ;;  %4204 = vmatprep.subr.bf16.mxu1 %v4456_v44  ;;  %v4462_v1 = vld [vmem:[%s5629_s3 + $0x388] sm:$0xff]  }
  0xe4   :  { %4183 = vmatpush3.bf16.msra.mxu0 %v4457_v34  ;;  %2802 = vmatprep.mubr.bf16.mxu0 %v4916_v11  ;;  %v4467_v11 = vld [vmem:[%s5629_s3 + $0x358] sm:$0xff]  }
  0xe5   :  { %2763 = vmatmul.mubr.bf16.vlgmr.msra.gmra.mrb[24].mxu1 %v4902_v7  ;;  %4184 = vmatprep.subr.bf16.mxu0 %v4459_v49  ;;  %v4465_v7 = vld [vmem:[%s5629_s3 + $0x310] sm:$0xff]  }
  0xe6   :  { %4205 = vmatpush3.bf16.msra.mxu1 %v4458_v53  ;;  %2842 = vmatprep.mubr.bf16.mxu1 %v4928_v14  ;;  %v4466_v14 = vld [vmem:[%s5629_s3 + $0x390] sm:$0xff]  }
  0xe7   :  { %4206 = vmatprep.subr.bf16.mxu1 %v4460_v56 }
  0xe8   :  { %4185 = vmatpush3.bf16.msra.mxu0 %v4461_v36 }
  0xe9   :  { %4186 = vmatprep.subr.bf16.mxu0 %v4463_v37 }
  0xea   :  { %4207 = vmatpush3.bf16.msra.mxu1 %v4462_v1 }
  0xeb   :  { %4208 = vmatprep.subr.bf16.mxu1 %v4464_v38 }
  0xec   :  { %4187 = vmatpush3.bf16.msra.mxu0 %v4465_v7 }
  0xed   :  { %4188 = vmatprep.subr.bf16.mxu0 %v4467_v11 }
  0xee   :  { %4209 = vmatpush3.bf16.msra.mxu1 %v4466_v14 }
  0xef   :  { %4210 = vmatprep.subr.bf16.mxu1 %v4468_v39 }
  0xf0   :  { %4189 = vmatpush3.bf16.msra.mxu0 %v4469_v40 }
  0xf1   :  { %4190 = vmatprep.subr.bf16.mxu0 %v4471_v41 }
  0xf2   :  { %4211 = vmatpush3.bf16.msra.mxu1 %v4470_v42 }
  0xf3   :  { %4212 = vmatprep.subr.bf16.mxu1 %v4472_v45 }
  0xf4   :  { %4191 = vmatpush3.bf16.msra.mxu0 %v4473_v47  ;;  %v2856_v47 = vld [vmem:[%s5631_s6] sm:$0xff] }
  0xf5   :  { %4192 = vmatprep.subr.bf16.mxu0 %v4475_v35  ;;  %v2857_v35 = vld [vmem:[%s5631_s6 + $0x8] sm:$0xff] }
  0xf6   :  { %4213 = vmatpush3.bf16.msra.mxu1 %v4474_v48  ;;  %v3890_v59 = vpop.f32.mrb[0].mxu0  ;;  %v2864_v48 = vld [vmem:[%s5631_s6 + $0x40] sm:$0xff] }
  0xf7   :  { %v3891_v46 = vpop.f32.mrb[1].mxu0  ;;  %4214 = vmatprep.subr.bf16.mxu1 %v4476_v52  ;;  %v3912_v51 = vpop.f32.mrb[0].mxu1  ;;  %v3835_v52 = vcombine.high %v2856_v47, %v2864_v48 }
  0xf8   :  { %v3892_v62 = vadd.f32 %v3891_v46, %v3890_v59  ;;  %v3893_v63 = vpop.f32.mrb[2].mxu0  ;;  %4193 = vmatpush3.bf16.msra.mxu0 %v4477_v54  ;;  %v3913_v0 = vpop.f32.mrb[1].mxu1  ;;  %v2865_v54 = vld [vmem:[%s5631_s6 + $0x48] sm:$0xff]  ;;  %v2872_v59 = vld [vmem:[%s5631_s6 + $0x80] sm:$0xff] }
  0xf9   :  { %v3894_v2 = vpop.f32.mrb[3].mxu0  ;;  %4194 = vmatprep.subr.bf16.mxu0 %v4479_v58  ;;  %v3914_v17 = vadd.f32 %v3913_v0, %v3912_v51  ;;  %v3915_v6 = vpop.f32.mrb[2].mxu1  ;;  %v3837_v58 = vcombine.high %v2857_v35, %v2865_v54  ;;  %v2873_v46 = vld [vmem:[%s5631_s6 + $0x88] sm:$0xff] }
  0xfa   :  { %v1214_v5 = vadd.f32 %v3892_v62, %v3576_v57  ;;  %4215 = vmatpush3.bf16.msra.mxu1 %v4478_v55  ;;  %v3916_v4 = vpop.f32.mrb[3].mxu1  ;;  %v3834_v55 = vcombine.low %v2856_v47, %v2864_v48  ;;  %v3836_v57 = vcombine.low %v2857_v35, %v2865_v54  ;;  %v2881_v51 = vld [vmem:[%s5631_s6 + $0xc8] sm:$0xff]  ;;  %v5450_v2 = vld [vmem:[%s5631_s6 + $0x10] sm:$0xff] }
  0xfb   :  { %4216 = vmatprep.subr.bf16.mxu1 %v4480_v60  ;;  %v2880_v60 = vld [vmem:[%s5631_s6 + $0xc0] sm:$0xff]  ;;  %v3852_v63 = vcombine.low %v2873_v46, %v2881_v51  ;;  %v3853_v0 = vcombine.high %v2873_v46, %v2881_v51  ;;  %v4490_v4 = vmov 0  }
  0xfc   :  { %v1254_v8 = vadd.f32 %v3914_v17, %v1214_v5  ;;  %4195 = vmatpush3.bf16.msra.mxu0 %v4481_v61  ;;  %v3851_v61 = vcombine.high %v2872_v59, %v2880_v60  ;;  %v3850_v62 = vcombine.low %v2872_v59, %v2880_v60  ;;  %v5460_v5 = vld [vmem:[%s5631_s6 + $0x18] sm:$0xff] }
  0xfd   :  { %4196 = vmatprep.subr.bf16.mxu0 %v4483_v3  ;;  %v5455_v3 = vld [vmem:[%s5631_s6 + $0x50] sm:$0xff] }
  0xfe   :  { %4217 = vmatpush3.bf16.msra.mxu1 %v4482_v22  ;;  %v3838_v17 = vcombine.low %v5450_v2, %v5455_v3  ;;  %v3839_v6 = vcombine.high %v5450_v2, %v5455_v3  ;;  %v5469_v22 = vld [vmem:[%s5631_s6 + $0x58] sm:$0xff]  ;;  %v2884_v2 = vld [vmem:[%s5631_s6 + $0xe0] sm:$0xff]  ;;  %v2877_v3 = vld [vmem:[%s5631_s6 + $0xa8] sm:$0xff] }
  0xff   :  { %4218 = vmatprep.subr.bf16.mxu1 %v4484_v9  ;;  %v3840_v9 = vcombine.low %v5460_v5, %v5469_v22 }
 0x100   :  { %4197 = vmatpush3.bf16.msra.mxu0 %v4485_v10 }
 0x101   :  { %3136 = vmatprep.subr.bf16.mxu0 %v3835_v52 }
 0x102   :  { %4219 = vmatpush3.bf16.msra.mxu1 %v4486_v12  ;;  %v3705_v12 = vld [vmem:[%s5632_s4] ss:$0 sm:$0xff] }
 0x103   :  { %2803 = vmatmul.mubr.bf16.vlgmr.msra.gmra.mrb[28].mxu0 %v5007_v43  ;;  %3177 = vmatprep.subr.bf16.mxu1 %v3837_v58 }
 0x104   :  { %3137 = vmatpush1.bf16.msra.mxu0 %v3834_v55  ;;  %3168 = vmatprep.mubr.bf16.mxu0 %v4490_v4 }
 0x105   :  { %2843 = vmatmul.mubr.bf16.vlgmr.msra.gmra.mrb[28].mxu1 %v5023_v50  ;;  %3138 = vmatprep.subr.bf16.mxu0 %v3851_v61 }
 0x106   :  { %3178 = vmatpush1.bf16.msra.mxu1 %v3836_v57  ;;  %3209 = vmatprep.mubr.bf16.mxu1 %v4490_v4 }
 0x107   :  { %3179 = vmatprep.subr.bf16.mxu1 %v3853_v0 }
 0x108   :  { %3139 = vmatpush1.bf16.msra.mxu0 %v3850_v62  ;;  %v2852_v62 = vld [vmem:[%s5633_s5] sm:$0x3] }
 0x109   :  { %3218 = vmatprep.subr.bf16.mxu0 %v3839_v6  ;;  %v2874_v6 = vld [vmem:[%s5631_s6 + $0x90] sm:$0xff] }
 0x10a   :  { %3180 = vmatpush1.bf16.msra.mxu1 %v3852_v63 }
 0x116   :  { %v3934_v13 = vpop.f32.mrb[4].mxu0 }
 0x117   :  { %v3935_v15 = vpop.f32.mrb[5].mxu0  ;;  %v3956_v16 = vpop.f32.mrb[4].mxu1 }
 0x118   :  { %v3936_v18 = vadd.f32 %v3935_v15, %v3934_v13  ;;  %v3937_v19 = vpop.f32.mrb[6].mxu0  ;;  %v3957_v20 = vpop.f32.mrb[5].mxu1 }
 0x119   :  { %v3938_v21 = vpop.f32.mrb[7].mxu0  ;;  %v3958_v24 = vadd.f32 %v3957_v20, %v3956_v16  ;;  %v3959_v25 = vpop.f32.mrb[6].mxu1 }
 0x11a   :  { %v1294_v23 = vadd.f32 %v3936_v18, %v1254_v8  ;;  %v3960_v26 = vpop.f32.mrb[7].mxu1  ;;  %v3841_v8 = vcombine.high %v5460_v5, %v5469_v22  ;;  %v2885_v5 = vld [vmem:[%s5631_s6 + $0xe8] sm:$0xff] }
 0x11c   :  { %v1334_v27 = vadd.f32 %v3958_v24, %v1294_v23  ;;  %3259 = vmatprep.subr.bf16.mxu1 %v3841_v8  ;;  %v2882_v8 = vld [vmem:[%s5631_s6 + $0xd0] sm:$0xff] }
 0x136   :  { %v3978_v28 = vpop.f32.mrb[8].mxu0 }
 0x137   :  { %v3979_v29 = vpop.f32.mrb[9].mxu0  ;;  %v4000_v31 = vpop.f32.mrb[8].mxu1 }
 0x138   :  { %v3980_v32 = vadd.f32 %v3979_v29, %v3978_v28  ;;  %v3981_v33 = vpop.f32.mrb[10].mxu0  ;;  %v4001_v43 = vpop.f32.mrb[9].mxu1 }
 0x139   :  { %v3982_v44 = vpop.f32.mrb[11].mxu0  ;;  %v4002_v34 = vadd.f32 %v4001_v43, %v4000_v31  ;;  %v4003_v49 = vpop.f32.mrb[10].mxu1 }
 0x13a   :  { %v1374_v50 = vadd.f32 %v3980_v32, %v1334_v27  ;;  %v4004_v53 = vpop.f32.mrb[11].mxu1 }
 0x13c   :  { %v1414_v56 = vadd.f32 %v4002_v34, %v1374_v50 }
 0x156   :  { %v4022_v36 = vpop.f32.mrb[12].mxu0 }
 0x157   :  { %v4023_v37 = vpop.f32.mrb[13].mxu0 }
 0x158   :  { %v4044_v1 = vpop.f32.mrb[12].mxu1  ;;  %v4024_v38 = vadd.f32 %v4023_v37, %v4022_v36  ;;  %v4025_v7 = vpop.f32.mrb[14].mxu0 }
 0x159   :  { %v4045_v11 = vpop.f32.mrb[13].mxu1  ;;  %v4026_v14 = vpop.f32.mrb[15].mxu0 }
 0x15a   :  { %v1454_v39 = vadd.f32 %v4024_v38, %v1414_v56  ;;  %v4046_v40 = vadd.f32 %v4045_v11, %v4044_v1  ;;  %v4047_v41 = vpop.f32.mrb[14].mxu1 }
 0x15b   :  { %v4048_v42 = vpop.f32.mrb[15].mxu1 }
 0x15c   :  { %v5421_v45 = vadd.f32 %v4046_v40, %v1454_v39 }
 0x176   :  { %v4066_v10 = vpop.f32.mrb[16].mxu0 }
 0x177   :  { %v4067_v13 = vpop.f32.mrb[17].mxu0 }
 0x178   :  { %v4088_v15 = vpop.f32.mrb[16].mxu1  ;;  %v4068_v16 = vadd.f32 %v4067_v13, %v4066_v10  ;;  %v4069_v18 = vpop.f32.mrb[18].mxu0  ;;  %v2875_v10 = vld [vmem:[%s5631_s6 + $0x98] sm:$0xff] }
 0x179   :  { %v4089_v19 = vpop.f32.mrb[17].mxu1  ;;  %v4070_v20 = vpop.f32.mrb[19].mxu0 }
 0x17a   :  { %v2565_v21 = vadd.f32 %v4068_v16, %v3705_v12  ;;  %v4090_v23 = vadd.f32 %v4089_v19, %v4088_v15  ;;  %v4091_v24 = vpop.f32.mrb[18].mxu1  ;;  %v2883_v12 = vld [vmem:[%s5631_s6 + $0xd8] sm:$0xff]  ;;  %v3855_v16 = vcombine.high %v2874_v6, %v2882_v8  ;;  %v2860_v19 = vld [vmem:[%s5631_s6 + $0x20] sm:$0xff] }
 0x17b   :  { %v4092_v25 = vpop.f32.mrb[19].mxu1  ;;  %v3857_v18 = vcombine.high %v2875_v10, %v2883_v12  ;;  %v2868_v20 = vld [vmem:[%s5631_s6 + $0x60] sm:$0xff]  ;;  %v3856_v24 = vcombine.low %v2875_v10, %v2883_v12  ;;  %v2914_v12 = vsub.s32 5, %v4615_v30 }
 0x17c   :  { %v2605_v26 = vadd.f32 %v4090_v23, %v2565_v21  ;;  %v2861_v21 = vld [vmem:[%s5631_s6 + $0x28] sm:$0xff]  ;;  %v3854_v23 = vcombine.low %v2874_v6, %v2882_v8  ;;  %v3843_v25 = vcombine.high %v2860_v19, %v2868_v20 }
 0x196   :  { %v4110_v27 = vpop.f32.mrb[20].mxu0 }
 0x197   :  { %v4111_v28 = vpop.f32.mrb[21].mxu0 }
 0x198   :  { %v4132_v29 = vpop.f32.mrb[20].mxu1  ;;  %v4112_v31 = vadd.f32 %v4111_v28, %v4110_v27  ;;  %v4113_v32 = vpop.f32.mrb[22].mxu0  ;;  %v2876_v27 = vld [vmem:[%s5631_s6 + $0xa0] sm:$0xff]  ;;  %v3861_v28 = vcombine.high %v2877_v3, %v2885_v5 }
 0x199   :  { %v4133_v33 = vpop.f32.mrb[21].mxu1  ;;  %v4114_v43 = vpop.f32.mrb[23].mxu0  ;;  %v2863_v32 = vld [vmem:[%s5631_s6 + $0x38] sm:$0xff] }
 0x19a   :  { %v2645_v44 = vadd.f32 %v4112_v31, %v2605_v26  ;;  %v4134_v50 = vadd.f32 %v4133_v33, %v4132_v29  ;;  %v4135_v34 = vpop.f32.mrb[22].mxu1  ;;  %v2862_v29 = vld [vmem:[%s5631_s6 + $0x30] sm:$0xff]  ;;  %v2871_v33 = vld [vmem:[%s5631_s6 + $0x78] sm:$0xff]  ;;  %v3858_v43 = vcombine.low %v2876_v27, %v2884_v2 }
 0x19b   :  { %v4136_v49 = vpop.f32.mrb[23].mxu1  ;;  %v2870_v31 = vld [vmem:[%s5631_s6 + $0x70] sm:$0xff]  ;;  %v3849_v34 = vcombine.high %v2863_v32, %v2871_v33 }
 0x19c   :  { %v2685_v53 = vadd.f32 %v4134_v50, %v2645_v44  ;;  %v3860_v44 = vcombine.low %v2877_v3, %v2885_v5  ;;  %v3847_v50 = vcombine.high %v2862_v29, %v2870_v31  ;;  %v2878_v49 = vld [vmem:[%s5631_s6 + $0xb0] sm:$0xff] }
 0x1b6   :  { %v4154_v56 = vpop.f32.mrb[24].mxu0 }
 0x1b7   :  { %v4155_v36 = vpop.f32.mrb[25].mxu0 }
 0x1b8   :  { %v4176_v37 = vpop.f32.mrb[24].mxu1  ;;  %v4156_v1 = vadd.f32 %v4155_v36, %v4154_v56  ;;  %v4157_v38 = vpop.f32.mrb[26].mxu0  ;;  %v2879_v56 = vld [vmem:[%s5631_s6 + $0xb8] sm:$0xff] }
 0x1b9   :  { %v4177_v7 = vpop.f32.mrb[25].mxu1  ;;  %v4158_v11 = vpop.f32.mrb[27].mxu0  ;;  %v2887_v36 = vld [vmem:[%s5631_s6 + $0xf8] sm:$0xff] }
 0x1ba   :  { %v2725_v14 = vadd.f32 %v4156_v1, %v2685_v53  ;;  %v4178_v39 = vadd.f32 %v4177_v7, %v4176_v37  ;;  %v4179_v40 = vpop.f32.mrb[26].mxu1  ;;  %v2886_v53 = vld [vmem:[%s5631_s6 + $0xf0] sm:$0xff]  ;;  %v3846_v37 = vcombine.low %v2862_v29, %v2870_v31  ;;  %v3848_v1 = vcombine.low %v2863_v32, %v2871_v33 }
 0x1bb   :  { %v4180_v41 = vpop.f32.mrb[27].mxu1  ;;  %v3863_v38 = vcombine.high %v2878_v49, %v2886_v53  ;;  %v3865_v7 = vcombine.high %v2879_v56, %v2887_v36  ;;  %v3862_v11 = vcombine.low %v2878_v49, %v2886_v53  ;;  %v2902_v40 = vsub.s32 2, %v4615_v30 }
 0x1bc   :  { %v2765_v42 = vadd.f32 %v4178_v39, %v2725_v14  ;;  %v3864_v14 = vcombine.low %v2879_v56, %v2887_v36  ;;  %v2894_v39 = vsub.s32 0, %v4615_v30  ;;  %v2888_v41 = vld [vmem:[%s5634_s7] sm:$0xff] }
 0x1d6   :  { %v4198_v47 = vpop.f32.mrb[28].mxu0 }
 0x1d7   :  { %v4199_v48 = vpop.f32.mrb[29].mxu0 }
 0x1d8   :  { %v4220_v35 = vpop.f32.mrb[28].mxu1  ;;  %v4200_v52 = vadd.f32 %v4199_v48, %v4198_v47  ;;  %v4201_v54 = vpop.f32.mrb[30].mxu0  ;;  %v4491_v47 = vmov 1983009808  }
 0x1d9   :  { %v4221_v55 = vpop.f32.mrb[29].mxu1  ;;  %v4202_v57 = vpop.f32.mrb[31].mxu0  ;;  %v3499_v48 = vunpack.c.l.s4 %v4491_v47 }
 0x1da   :  { %v2805_v58 = vadd.f32 %v4200_v52, %v2765_v42  ;;  %v4222_v59 = vadd.f32 %v4221_v55, %v4220_v35  ;;  %v4223_v60 = vpop.f32.mrb[30].mxu1  ;;  %v2898_v42 = vsub.s32 1, %v4615_v30  ;;  %v2895_v35 = vrot.slane %v2888_v41, %v2894_v39 }
 0x1db   :  { %v4224_v46 = vpop.f32.mrb[31].mxu1  ;;  %v2903_v52 = vrot.slane %v2888_v41, %v2902_v40 }
 0x1dc   :  { %v2845_v61 = vadd.f32 %v4222_v59, %v2805_v58  ;;  %v2899_v54 = vrot.slane %v2888_v41, %v2898_v42  ;;  %v3500_v59 = vunpack.c.0.s8 %v3499_v48 }
 0x1de   :  { %v2850_v51 = vmul.f32 1.442695, %v2845_v61 }
 0x1e0   :  { %4487 = vpow2.f32 %v2850_v51 }
 0x1ea   :  { %v4488_v63 = vpop.eup %4487 }
 0x1eb   :  { %v2853_v0 = vmul.f32 %v4488_v63, %v2852_v62  ;;  %v2910_v62 = vsub.s32 4, %v4615_v30  ;;  %v2918_v63 = vsub.s32 6, %v4615_v30 }
 0x1ed   :  { %v2854_v13 = vadd.f32 %v2853_v0, %v5421_v45  ;;  %v2869_v45 = vld [vmem:[%s5631_s6 + $0x68] sm:$0xff] }
 0x1ee   :  { %v3845_v26 = vcombine.high %v2861_v21, %v2869_v45  ;;  %v3844_v22 = vcombine.low %v2861_v21, %v2869_v45  ;;  %v5586_v21 = vsub.s32 %v3500_v59, %v4615_v30 }
 0x1ef   :  { %v5496_v15 = vpack.c.bf16 %v2854_v13, %v2854_v13  ;;  %v2922_v13 = vsub.s32 7, %v4615_v30 }
 0x1f1   :  { %3866 = vmatmul.mubr.msk.bf16.vlgmr.msra.gmra.mrb[32].mxu0 %vm3132_vm0, %v5496_v15  ;;  %3867 = vmatmul.mubr.msk.bf16.vlgmr.msra.gmra.mrb[32].mxu1 %vm3132_vm0, %v5496_v15 }
 0x1f2   :  { %3219 = vmatpush1.bf16.msra.mxu0 %v3838_v17  ;;  %3260 = vmatpush1.bf16.msra.mxu1 %v3840_v9  ;;  %v3842_v17 = vcombine.low %v2860_v19, %v2868_v20  ;;  %v3859_v9 = vcombine.high %v2876_v27, %v2884_v2  ;;  %v2915_v27 = vrot.slane %v2888_v41, %v2914_v12 }
 0x1f3   :  { %3220 = vmatprep.subr.bf16.mxu0 %v3855_v16  ;;  %3261 = vmatprep.subr.bf16.mxu1 %v3857_v18  ;;  %v2923_v2 = vrot.slane %v2888_v41, %v2922_v13 }
 0x1f4   :  { %3250 = vmatprep.mubr.bf16.mxu0 %v4490_v4  ;;  %3291 = vmatprep.mubr.bf16.mxu1 %v4490_v4 }
 0x1f6   :  { %3221 = vmatpush1.bf16.msra.mxu0 %v3854_v23  ;;  %3262 = vmatpush1.bf16.msra.mxu1 %v3856_v24  ;;  %v2911_v23 = vrot.slane %v2888_v41, %v2910_v62  ;;  %v2919_v24 = vrot.slane %v2888_v41, %v2918_v63 }
 0x1f7   :  { %3300 = vmatprep.subr.bf16.mxu0 %v3843_v25  ;;  %3341 = vmatprep.subr.bf16.mxu1 %v3845_v26 }
 0x1f9   :  { %3868 = vmatmul.mubr.msk.bf16.vlgmr.msra.gmra.mrb[36].mxu0 %vm3132_vm0, %v5496_v15  ;;  %3869 = vmatmul.mubr.msk.bf16.vlgmr.msra.gmra.mrb[36].mxu1 %vm3132_vm0, %v5496_v15 }
 0x1fa   :  { %3301 = vmatpush1.bf16.msra.mxu0 %v3842_v17  ;;  %3342 = vmatpush1.bf16.msra.mxu1 %v3844_v22 }
 0x1fb   :  { %3302 = vmatprep.subr.bf16.mxu0 %v3859_v9  ;;  %3343 = vmatprep.subr.bf16.mxu1 %v3861_v28 }
 0x1fc   :  { %3332 = vmatprep.mubr.bf16.mxu0 %v4490_v4  ;;  %3373 = vmatprep.mubr.bf16.mxu1 %v4490_v4 }
 0x1fe   :  { %3303 = vmatpush1.bf16.msra.mxu0 %v3858_v43  ;;  %3344 = vmatpush1.bf16.msra.mxu1 %v3860_v44 }
 0x1ff   :  { %3382 = vmatprep.subr.bf16.mxu0 %v3847_v50  ;;  %3423 = vmatprep.subr.bf16.mxu1 %v3849_v34  ;;  %v2889_v34 = vld [vmem:[%s5634_s7 + $0x8] sm:$0xff] }
 0x201   :  { %3870 = vmatmul.mubr.msk.bf16.vlgmr.msra.gmra.mrb[40].mxu0 %vm3132_vm0, %v5496_v15  ;;  %3871 = vmatmul.mubr.msk.bf16.vlgmr.msra.gmra.mrb[40].mxu1 %vm3132_vm0, %v5496_v15 }
 0x202   :  { %3383 = vmatpush1.bf16.msra.mxu0 %v3846_v37  ;;  %3424 = vmatpush1.bf16.msra.mxu1 %v3848_v1 }
 0x203   :  { %3384 = vmatprep.subr.bf16.mxu0 %v3863_v38  ;;  %3425 = vmatprep.subr.bf16.mxu1 %v3865_v7  ;;  %v2927_v38 = vrot.slane %v2889_v34, %v2894_v39  ;;  %v2935_v7 = vrot.slane %v2889_v34, %v2902_v40 }
 0x204   :  { %3414 = vmatprep.mubr.bf16.mxu0 %v4490_v4  ;;  %3455 = vmatprep.mubr.bf16.mxu1 %v4490_v4  ;;  %v2906_v4 = vsub.s32 3, %v4615_v30 }
 0x206   :  { %3385 = vmatpush1.bf16.msra.mxu0 %v3862_v11  ;;  %3426 = vmatpush1.bf16.msra.mxu1 %v3864_v14  ;;  %v2907_v55 = vrot.slane %v2888_v41, %v2906_v4  ;;  %v2931_v41 = vrot.slane %v2889_v34, %v2898_v42  ;;  %v2939_v47 = vrot.slane %v2889_v34, %v2906_v4 }
 0x209   :  { %3872 = vmatmul.mubr.msk.bf16.vlgmr.msra.gmra.mrb[44].mxu0 %vm3132_vm0, %v5496_v15  ;;  %3873 = vmatmul.mubr.msk.bf16.vlgmr.msra.gmra.mrb[44].mxu1 %vm3132_vm0, %v5496_v15 }
 0x2c4   :  { %v3170_v57 = vpop.f32.mrb[32].mxu0  ;;  %v3211_v58 = vpop.f32.mrb[32].mxu1 }
 0x2c5   :  { %v3171_v60 = vadd.f32 %v3170_v57, %v2895_v35  ;;  %v3212_v46 = vadd.f32 %v3211_v58, %v2903_v52  ;;  %v3172_v61 = vpop.f32.mrb[33].mxu0  ;;  %v3213_v51 = vpop.f32.mrb[33].mxu1 }
 0x2c6   :  { %v3173_v0 = vadd.f32 %v3172_v61, %v2899_v54  ;;  %v3214_v6 = vadd.f32 %v3213_v51, %v2907_v55  ;;  %v3174_v8 = vpop.f32.mrb[34].mxu0  ;;  %v3215_v10 = vpop.f32.mrb[34].mxu1 }
 0x2c7   :  { %v3464_v15 = vmax.f32 %v3171_v60, 0.0  ;;  %v3466_v16 = vmax.f32 %v3212_v46, 0.0  ;;  %v3175_v18 = vpop.f32.mrb[35].mxu0  ;;  %v3216_v19 = vpop.f32.mrb[35].mxu1  ;;  %v2943_v10 = vrot.slane %v2889_v34, %v2910_v62 }
 0x2c8   :  { %v3465_v20 = vmax.f32 %v3173_v0, 0.0  ;;  %v3467_v45 = vmax.f32 %v3214_v6, 0.0  ;;  %v2947_v19 = vrot.slane %v2889_v34, %v2914_v12 }
 0x2ca   :  { %v3496_v25 = vcombine.low %v3464_v15, %v3465_v20  ;;  %v3497_v26 = vcombine.low %v3466_v16, %v3467_v45  ;;  %v2951_v15 = vrot.slane %v2889_v34, %v2918_v63  ;;  %v2955_v20 = vrot.slane %v2889_v34, %v2922_v13 }
 0x2cc   :  { %v3504_v3 = vrot.slane %v3496_v25, %v5586_v21  ;;  %v3511_v5 = vrot.slane %v3497_v26, %v5586_v21  ;;  %v3252_v17 = vpop.f32.mrb[36].mxu0  ;;  %v3293_v22 = vpop.f32.mrb[36].mxu1 }
 0x2cd   :  { %v3253_v9 = vadd.f32 %v3252_v17, %v2911_v23  ;;  %v3294_v28 = vadd.f32 %v3293_v22, %v2919_v24  ;;  %v3254_v29 = vpop.f32.mrb[37].mxu0  ;;  %v3295_v31 = vpop.f32.mrb[37].mxu1 }
 0x2ce   :  { %v3512_v32 = vcombine.low %v3504_v3, %v3511_v5  ;;  %v3255_v33 = vadd.f32 %v3254_v29, %v2915_v27  ;;  %v3296_v43 = vadd.f32 %v3295_v31, %v2923_v2  ;;  %v3256_v44 = vpop.f32.mrb[38].mxu0  ;;  %v3297_v50 = vpop.f32.mrb[38].mxu1 }
 0x2cf   :  { %v3468_v49 = vmax.f32 %v3253_v9, 0.0  ;;  %v3470_v53 = vmax.f32 %v3294_v28, 0.0  ;;  %v3257_v56 = vpop.f32.mrb[39].mxu0  ;;  %v3298_v36 = vpop.f32.mrb[39].mxu1 }
 0x2d0   :  { %3568 = vst [vmem:[%s5635_s8] sm:$0xff] %v3512_v32  ;;  %v3469_v37 = vmax.f32 %v3255_v33, 0.0  ;;  %v3471_v1 = vmax.f32 %v3296_v43, 0.0 }
 0x2d2   :  { %v3513_v11 = vcombine.low %v3468_v49, %v3469_v37  ;;  %v3514_v14 = vcombine.low %v3470_v53, %v3471_v1 }
 0x2d4   :  { %v3521_v48 = vrot.slane %v3513_v11, %v5586_v21  ;;  %v3528_v35 = vrot.slane %v3514_v14, %v5586_v21  ;;  %v3334_v52 = vpop.f32.mrb[40].mxu0  ;;  %v3375_v54 = vpop.f32.mrb[40].mxu1 }
 0x2d5   :  { %v3335_v55 = vadd.f32 %v3334_v52, %v2927_v38  ;;  %v3376_v57 = vadd.f32 %v3375_v54, %v2935_v7  ;;  %v3336_v58 = vpop.f32.mrb[41].mxu0  ;;  %v3377_v59 = vpop.f32.mrb[41].mxu1 }
 0x2d6   :  { %v3529_v60 = vcombine.low %v3521_v48, %v3528_v35  ;;  %v3337_v46 = vadd.f32 %v3336_v58, %v2931_v41  ;;  %v3378_v61 = vadd.f32 %v3377_v59, %v2939_v47  ;;  %v3338_v51 = vpop.f32.mrb[42].mxu0  ;;  %v3379_v39 = vpop.f32.mrb[42].mxu1 }
 0x2d7   :  { %v3472_v40 = vmax.f32 %v3335_v55, 0.0  ;;  %v3474_v0 = vmax.f32 %v3376_v57, 0.0  ;;  %v3339_v6 = vpop.f32.mrb[43].mxu0  ;;  %v3380_v42 = vpop.f32.mrb[43].mxu1 }
 0x2d8   :  { %3569 = vst [vmem:[%s5635_s8 + $0x8] sm:$0xff] %v3529_v60  ;;  %v3473_v4 = vmax.f32 %v3337_v46, 0.0  ;;  %v3475_v8 = vmax.f32 %v3378_v61, 0.0 }
 0x2da   :  { %v3530_v16 = vcombine.low %v3472_v40, %v3473_v4  ;;  %v3531_v18 = vcombine.low %v3474_v0, %v3475_v8 }
 0x2dc   :  { %v3538_v45 = vrot.slane %v3530_v16, %v5586_v21  ;;  %v3545_v23 = vrot.slane %v3531_v18, %v5586_v21  ;;  %v3416_v24 = vpop.f32.mrb[44].mxu0  ;;  %v3457_v25 = vpop.f32.mrb[44].mxu1 }
 0x2dd   :  { %v3417_v26 = vadd.f32 %v3416_v24, %v2943_v10  ;;  %v3458_v27 = vadd.f32 %v3457_v25, %v2951_v15  ;;  %v3418_v62 = vpop.f32.mrb[45].mxu0  ;;  %v3459_v2 = vpop.f32.mrb[45].mxu1 }
 0x2de   :  { %v3546_v3 = vcombine.low %v3538_v45, %v3545_v23  ;;  %v3419_v63 = vadd.f32 %v3418_v62, %v2947_v19  ;;  %v3460_v5 = vadd.f32 %v3459_v2, %v2955_v20  ;;  %v3420_v17 = vpop.f32.mrb[46].mxu0  ;;  %v3461_v22 = vpop.f32.mrb[46].mxu1 }
 0x2df   :  { %v3476_v9 = vmax.f32 %v3417_v26, 0.0  ;;  %v3478_v12 = vmax.f32 %v3458_v27, 0.0  ;;  %v3421_v28 = vpop.f32.mrb[47].mxu0  ;;  %v3462_v30 = vpop.f32.mrb[47].mxu1 }
 0x2e0   :  { %3570 = vst [vmem:[%s5635_s8 + $0x10] sm:$0xff] %v3546_v3  ;;  %v3477_v13 = vmax.f32 %v3419_v63, 0.0  ;;  %v3479_v29 = vmax.f32 %v3460_v5, 0.0 }
 0x2e2   :  { %v3547_v31 = vcombine.low %v3476_v9, %v3477_v13  ;;  %v3548_v32 = vcombine.low %v3478_v12, %v3479_v29 }
 0x2e4   :  { %v3555_v33 = vrot.slane %v3547_v31, %v5586_v21  ;;  %v3562_v43 = vrot.slane %v3548_v32, %v5586_v21 }
 0x2e6   :  { %v3563_v44 = vcombine.low %v3555_v33, %v3562_v43 }
 0x2e8   :  { %3571 = vst [vmem:[%s5635_s8 + $0x18] sm:$0xff] %v3563_v44 }

// kernel: tile.18
= control target key start
LH: loop header
LB: loop body
LE: loop exit
PB: predicated region body
PF: predicated region fallthrough
CT: control target
= control target key end

     0   :  { %s22_s0 = inlined_call_operand.vmem [shape: f32[64], index: 0, kind: input, shape index: {}]   ;;  %s23_s1 = inlined_call_operand.vmem [shape: f32[4,64], index: 1, kind: output, shape index: {}]  }
   0x1   :  { %v4_v0 = vld [vmem:[%s22_s0] ss:$0 sm:$0xff] }
   0x2   :  { %5 = vst [vmem:[%s23_s1] sm:$0xf] %v4_v0 }

// kernel: tile.19
= control target key start
LH: loop header
LB: loop body
LE: loop exit
PB: predicated region body
PF: predicated region fallthrough
CT: control target
= control target key end

     0   :  { %s6_s8 = smov 3  ;;  %vm8_vm0 = vcmask 523264   ;;  %s30_s9 = smov 64   ;;  %vm15_vm1 = vcmask 1048064   ;;  %s50_s0 = inlined_call_operand.vmem [shape: f32[4,64], index: 0, kind: input, shape index: {}]   ;;  %s51_s1 = inlined_call_operand.vmem [shape: f32[1,256], index: 1, kind: output, shape index: {}]  }
   0x1   :  { %v4_v0 = vld [vmem:[%s50_s0] sm:$0xf]  ;;  %s11_s0 = smov 3 }
   0x2   :  { %5 = vst [vmem:[#allocation1] sm:$0xf] %v4_v0 }
   0x9   :  { %v12_v1 = vld [vmem:[#allocation1 + $0x1] ss:$2 sm:%s11_s0]   ;;  %v7_v2 = vld [vmem:[#allocation1] ss:$2 sm:%s6_s8]  }
   0xa   :  { %13 = vrot.lane.b32.xlu0 %v12_v1, %s30_s9  ;;  %9 = vst.msk [vmem:[#allocation0] ss:$8 sm:$0x3] %vm8_vm0, %v7_v2  }
  0x7c   :  { %v14_v3 = vpop.permute.xlu0 %13  }
  0x7d   :  { %16 = vst.msk [vmem:[#allocation0] ss:$8 sm:$0x3] %vm15_vm1, %v14_v3  }
  0x84   :  { %v20_v4 = vld [vmem:[#allocation0] sm:$0x1]  ;;  %v24_v5 = vld [vmem:[#allocation0 + $0x8] sm:$0x1] }
  0x85   :  { %22 = vst [vmem:[%s51_s1] sm:$0x1] %v20_v4  ;;  %28 = vst [vmem:[%s51_s1 + $0x1] sm:$0x1] %v24_v5 }

// kernel: vae_cifar_forward.11
= control target key start
LH: loop header
LB: loop body
LE: loop exit
PB: predicated region body
PF: predicated region fallthrough
CT: control target
= control target key end

     0   :  { %s2283_s1 = inlined_call_operand.vmem [shape: bf16[1152,256], index: 1, kind: input, shape index: {}]   ;;  %s2284_s0 = inlined_call_operand.vmem [shape: bf16[32,1152], index: 0, kind: input, shape index: {}]   ;;  %s2285_s2 = inlined_call_operand.vmem [shape: f32[1,256], index: 2, kind: input, shape index: {}]   ;;  %s2286_s3 = inlined_call_operand.vmem [shape: f32[32,256], index: 3, kind: output, shape index: {}]  }
   0x1   :  { %v1507_v0 = vld [vmem:[%s2283_s1 + $0x4] ss:$8 sps:$4 sm:$0xff]   ;;  %v1511_v2 = vld [vmem:[%s2283_s1] ss:$8 sps:$4 sm:$0xff]   ;;  %v1513_v4 = vld [vmem:[%s2283_s1 + $0x14] ss:$8 sps:$4 sm:$0xff]  }
   0x2   :  { %v1509_v1 = vld [vmem:[%s2283_s1 + $0x204] ss:$8 sps:$4 sm:$0xff]   ;;  %1003 = vmatprep.subr.bf16.mxu1 %v1507_v0  ;;  %v1512_v3 = vld [vmem:[%s2283_s1 + $0x200] ss:$8 sps:$4 sm:$0xff]   ;;  %v1515_v5 = vld [vmem:[%s2283_s1 + $0x214] ss:$8 sps:$4 sm:$0xff]  }
   0x3   :  { %1109 = vmatprep.subr.bf16.mxu0 %v1509_v1  ;;  %1004 = vmatpush1.bf16.msra.mxu1 %v1511_v2  ;;  %v1517_v6 = vld [vmem:[%s2283_s1 + $0x10] ss:$8 sps:$4 sm:$0xff]   ;;  %v1519_v8 = vld [vmem:[%s2283_s1 + $0x24] ss:$8 sps:$4 sm:$0xff]   ;;  %v1523_v10 = vld [vmem:[%s2283_s1 + $0x20] ss:$8 sps:$4 sm:$0xff]  }
   0x4   :  { %1110 = vmatpush1.bf16.msra.mxu0 %v1512_v3  ;;  %1005 = vmatprep.subr.bf16.mxu1 %v1513_v4  ;;  %v1518_v7 = vld [vmem:[%s2283_s1 + $0x210] ss:$8 sps:$4 sm:$0xff]   ;;  %v1521_v9 = vld [vmem:[%s2283_s1 + $0x224] ss:$8 sps:$4 sm:$0xff]   ;;  %v1524_v11 = vld [vmem:[%s2283_s1 + $0x220] ss:$8 sps:$4 sm:$0xff]  }
   0x5   :  { %1111 = vmatprep.subr.bf16.mxu0 %v1515_v5  ;;  %v1525_v12 = vld [vmem:[%s2283_s1 + $0x34] ss:$8 sps:$4 sm:$0xff]   ;;  %v1529_v14 = vld [vmem:[%s2283_s1 + $0x30] ss:$8 sps:$4 sm:$0xff]   ;;  %v1531_v16 = vld [vmem:[%s2283_s1 + $0x44] ss:$8 sps:$4 sm:$0xff]  }
   0x6   :  { %v1527_v13 = vld [vmem:[%s2283_s1 + $0x234] ss:$8 sps:$4 sm:$0xff]   ;;  %v1530_v15 = vld [vmem:[%s2283_s1 + $0x230] ss:$8 sps:$4 sm:$0xff]   ;;  %v1533_v17 = vld [vmem:[%s2283_s1 + $0x244] ss:$8 sps:$4 sm:$0xff]  }
   0x7   :  { %1006 = vmatpush1.bf16.msra.mxu1 %v1517_v6  ;;  %v1535_v18 = vld [vmem:[%s2283_s1 + $0x40] ss:$8 sps:$4 sm:$0xff]   ;;  %v1537_v20 = vld [vmem:[%s2283_s1 + $0x54] ss:$8 sps:$4 sm:$0xff]   ;;  %v1541_v22 = vld [vmem:[%s2283_s1 + $0x50] ss:$8 sps:$4 sm:$0xff]  }
   0x8   :  { %1112 = vmatpush1.bf16.msra.mxu0 %v1518_v7  ;;  %1007 = vmatprep.subr.bf16.mxu1 %v1519_v8  ;;  %v1536_v19 = vld [vmem:[%s2283_s1 + $0x240] ss:$8 sps:$4 sm:$0xff]   ;;  %v1539_v21 = vld [vmem:[%s2283_s1 + $0x254] ss:$8 sps:$4 sm:$0xff]   ;;  %v1542_v23 = vld [vmem:[%s2283_s1 + $0x250] ss:$8 sps:$4 sm:$0xff]  }
   0x9   :  { %1113 = vmatprep.subr.bf16.mxu0 %v1521_v9  ;;  %v1543_v24 = vld [vmem:[%s2283_s1 + $0x64] ss:$8 sps:$4 sm:$0xff]   ;;  %v1547_v26 = vld [vmem:[%s2283_s1 + $0x60] ss:$8 sps:$4 sm:$0xff]   ;;  %v1549_v28 = vld [vmem:[%s2283_s1 + $0x74] ss:$8 sps:$4 sm:$0xff]  }
   0xa   :  { %v1545_v25 = vld [vmem:[%s2283_s1 + $0x264] ss:$8 sps:$4 sm:$0xff]   ;;  %v1548_v27 = vld [vmem:[%s2283_s1 + $0x260] ss:$8 sps:$4 sm:$0xff]   ;;  %v1551_v29 = vld [vmem:[%s2283_s1 + $0x274] ss:$8 sps:$4 sm:$0xff]  }
   0xb   :  { %1008 = vmatpush1.bf16.msra.mxu1 %v1523_v10  ;;  %v1553_v30 = vld [vmem:[%s2283_s1 + $0x70] ss:$8 sps:$4 sm:$0xff]   ;;  %v1555_v32 = vld [vmem:[%s2283_s1 + $0x84] ss:$8 sps:$4 sm:$0xff]   ;;  %v1559_v34 = vld [vmem:[%s2283_s1 + $0x80] ss:$8 sps:$4 sm:$0xff]  }
   0xc   :  { %1114 = vmatpush1.bf16.msra.mxu0 %v1524_v11  ;;  %1009 = vmatprep.subr.bf16.mxu1 %v1525_v12  ;;  %v1554_v31 = vld [vmem:[%s2283_s1 + $0x270] ss:$8 sps:$4 sm:$0xff]   ;;  %v1557_v33 = vld [vmem:[%s2283_s1 + $0x284] ss:$8 sps:$4 sm:$0xff]   ;;  %v1560_v35 = vld [vmem:[%s2283_s1 + $0x280] ss:$8 sps:$4 sm:$0xff]  }
   0xd   :  { %1115 = vmatprep.subr.bf16.mxu0 %v1527_v13  ;;  %v1561_v36 = vld [vmem:[%s2283_s1 + $0x94] ss:$8 sps:$4 sm:$0xff]   ;;  %v1565_v38 = vld [vmem:[%s2283_s1 + $0x90] ss:$8 sps:$4 sm:$0xff]   ;;  %v1567_v40 = vld [vmem:[%s2283_s1 + $0xa4] ss:$8 sps:$4 sm:$0xff]  }
   0xe   :  { %v1563_v37 = vld [vmem:[%s2283_s1 + $0x294] ss:$8 sps:$4 sm:$0xff]   ;;  %v1566_v39 = vld [vmem:[%s2283_s1 + $0x290] ss:$8 sps:$4 sm:$0xff]   ;;  %v1569_v41 = vld [vmem:[%s2283_s1 + $0x2a4] ss:$8 sps:$4 sm:$0xff]  }
   0xf   :  { %1010 = vmatpush1.bf16.msra.mxu1 %v1529_v14  ;;  %v1571_v42 = vld [vmem:[%s2283_s1 + $0xa0] ss:$8 sps:$4 sm:$0xff]   ;;  %v1573_v44 = vld [vmem:[%s2283_s1 + $0xb4] ss:$8 sps:$4 sm:$0xff]   ;;  %v1577_v46 = vld [vmem:[%s2283_s1 + $0xb0] ss:$8 sps:$4 sm:$0xff]  }
  0x10   :  { %1116 = vmatpush1.bf16.msra.mxu0 %v1530_v15  ;;  %1011 = vmatprep.subr.bf16.mxu1 %v1531_v16  ;;  %v1572_v43 = vld [vmem:[%s2283_s1 + $0x2a0] ss:$8 sps:$4 sm:$0xff]   ;;  %v1575_v45 = vld [vmem:[%s2283_s1 + $0x2b4] ss:$8 sps:$4 sm:$0xff]   ;;  %v1578_v47 = vld [vmem:[%s2283_s1 + $0x2b0] ss:$8 sps:$4 sm:$0xff]  }
  0x11   :  { %1117 = vmatprep.subr.bf16.mxu0 %v1533_v17  ;;  %v1605_v48 = vld [vmem:[%s2284_s0 + $0x4] ss:$36 sps:$4 sm:$0xff]   ;;  %v1611_v51 = vld [vmem:[%s2284_s0 + $0x14] ss:$36 sps:$4 sm:$0xff]  }
  0x12   :  { %v1579_v49 = vld [vmem:[%s2283_s1 + $0xc4] ss:$8 sps:$4 sm:$0xff]   ;;  %1035 = vmatprep.mubr.bf16.mxu1 %v1605_v48  ;;  %v1583_v52 = vld [vmem:[%s2283_s1 + $0xc0] ss:$8 sps:$4 sm:$0xff]   ;;  %v1585_v54 = vld [vmem:[%s2283_s1 + $0xd4] ss:$8 sps:$4 sm:$0xff]   ;;  %1141 = vmatprep.mubr.bf16.mxu0 %v1611_v51 }
  0x13   :  { %1012 = vmatpush1.bf16.msra.mxu1 %v1535_v18  ;;  %v1581_v50 = vld [vmem:[%s2283_s1 + $0x2c4] ss:$8 sps:$4 sm:$0xff]   ;;  %v1584_v53 = vld [vmem:[%s2283_s1 + $0x2c0] ss:$8 sps:$4 sm:$0xff]   ;;  %v1587_v55 = vld [vmem:[%s2283_s1 + $0x2d4] ss:$8 sps:$4 sm:$0xff]  }
  0x14   :  { %1118 = vmatpush1.bf16.msra.mxu0 %v1536_v19  ;;  %1013 = vmatprep.subr.bf16.mxu1 %v1537_v20  ;;  %v1589_v56 = vld [vmem:[%s2283_s1 + $0xd0] ss:$8 sps:$4 sm:$0xff]   ;;  %v1591_v58 = vld [vmem:[%s2283_s1 + $0xe4] ss:$8 sps:$4 sm:$0xff]   ;;  %v1595_v60 = vld [vmem:[%s2283_s1 + $0xe0] ss:$8 sps:$4 sm:$0xff]  }
  0x15   :  { %1119 = vmatprep.subr.bf16.mxu0 %v1539_v21  ;;  %v1590_v57 = vld [vmem:[%s2283_s1 + $0x2d0] ss:$8 sps:$4 sm:$0xff]   ;;  %v1593_v59 = vld [vmem:[%s2283_s1 + $0x2e4] ss:$8 sps:$4 sm:$0xff]   ;;  %v1596_v61 = vld [vmem:[%s2283_s1 + $0x2e0] ss:$8 sps:$4 sm:$0xff]  }
  0x16   :  { %v1597_v62 = vld [vmem:[%s2283_s1 + $0xf4] ss:$8 sps:$4 sm:$0xff]   ;;  %v1601_v0 = vld [vmem:[%s2283_s1 + $0xf0] ss:$8 sps:$4 sm:$0xff]   ;;  %v1608_v2 = vld [vmem:[%s2283_s1 + $0x104] ss:$8 sps:$4 sm:$0xff]  }
  0x17   :  { %1014 = vmatpush1.bf16.msra.mxu1 %v1541_v22  ;;  %v1599_v63 = vld [vmem:[%s2283_s1 + $0x2f4] ss:$8 sps:$4 sm:$0xff]   ;;  %v1602_v1 = vld [vmem:[%s2283_s1 + $0x2f0] ss:$8 sps:$4 sm:$0xff]   ;;  %v1614_v3 = vld [vmem:[%s2283_s1 + $0x304] ss:$8 sps:$4 sm:$0xff]  }
  0x18   :  { %1120 = vmatpush1.bf16.msra.mxu0 %v1542_v23  ;;  %1015 = vmatprep.subr.bf16.mxu1 %v1543_v24  ;;  %v1603_v4 = vld [vmem:[%s2284_s0] ss:$36 sps:$4 sm:$0xff]   ;;  %v1609_v6 = vld [vmem:[%s2284_s0 + $0x10] ss:$36 sps:$4 sm:$0xff]  }
  0x19   :  { %1121 = vmatprep.subr.bf16.mxu0 %v1545_v25  ;;  %v1606_v5 = vld [vmem:[%s2283_s1 + $0x100] ss:$8 sps:$4 sm:$0xff]   ;;  %v1617_v8 = vld [vmem:[%s2283_s1 + $0x114] ss:$8 sps:$4 sm:$0xff]   ;;  %v1615_v10 = vld [vmem:[%s2283_s1 + $0x110] ss:$8 sps:$4 sm:$0xff]  }
  0x1a   :  { %v1612_v7 = vld [vmem:[%s2283_s1 + $0x300] ss:$8 sps:$4 sm:$0xff]   ;;  %v1620_v9 = vld [vmem:[%s2283_s1 + $0x314] ss:$8 sps:$4 sm:$0xff]   ;;  %v1618_v11 = vld [vmem:[%s2283_s1 + $0x310] ss:$8 sps:$4 sm:$0xff]  }
  0x1b   :  { %1016 = vmatpush1.bf16.msra.mxu1 %v1547_v26  ;;  %v1623_v12 = vld [vmem:[%s2283_s1 + $0x124] ss:$8 sps:$4 sm:$0xff]   ;;  %v1621_v14 = vld [vmem:[%s2283_s1 + $0x120] ss:$8 sps:$4 sm:$0xff]   ;;  %v1629_v16 = vld [vmem:[%s2283_s1 + $0x134] ss:$8 sps:$4 sm:$0xff]  }
  0x1c   :  { %1122 = vmatpush1.bf16.msra.mxu0 %v1548_v27  ;;  %1017 = vmatprep.subr.bf16.mxu1 %v1549_v28  ;;  %v1626_v13 = vld [vmem:[%s2283_s1 + $0x324] ss:$8 sps:$4 sm:$0xff]   ;;  %v1624_v15 = vld [vmem:[%s2283_s1 + $0x320] ss:$8 sps:$4 sm:$0xff]   ;;  %v1632_v17 = vld [vmem:[%s2283_s1 + $0x334] ss:$8 sps:$4 sm:$0xff]  }
  0x1d   :  { %1123 = vmatprep.subr.bf16.mxu0 %v1551_v29  ;;  %v1627_v18 = vld [vmem:[%s2283_s1 + $0x130] ss:$8 sps:$4 sm:$0xff]   ;;  %v1635_v20 = vld [vmem:[%s2283_s1 + $0x144] ss:$8 sps:$4 sm:$0xff]   ;;  %v1633_v22 = vld [vmem:[%s2283_s1 + $0x140] ss:$8 sps:$4 sm:$0xff]  }
  0x1e   :  { %v1630_v19 = vld [vmem:[%s2283_s1 + $0x330] ss:$8 sps:$4 sm:$0xff]   ;;  %v1638_v21 = vld [vmem:[%s2283_s1 + $0x344] ss:$8 sps:$4 sm:$0xff]   ;;  %v1636_v23 = vld [vmem:[%s2283_s1 + $0x340] ss:$8 sps:$4 sm:$0xff]  }
  0x1f   :  { %1018 = vmatpush1.bf16.msra.mxu1 %v1553_v30  ;;  %v1641_v24 = vld [vmem:[%s2283_s1 + $0x154] ss:$8 sps:$4 sm:$0xff]   ;;  %v1639_v26 = vld [vmem:[%s2283_s1 + $0x150] ss:$8 sps:$4 sm:$0xff]   ;;  %v1647_v28 = vld [vmem:[%s2283_s1 + $0x164] ss:$8 sps:$4 sm:$0xff]  }
  0x20   :  { %1124 = vmatpush1.bf16.msra.mxu0 %v1554_v31  ;;  %1019 = vmatprep.subr.bf16.mxu1 %v1555_v32  ;;  %v1644_v25 = vld [vmem:[%s2283_s1 + $0x354] ss:$8 sps:$4 sm:$0xff]   ;;  %v1642_v27 = vld [vmem:[%s2283_s1 + $0x350] ss:$8 sps:$4 sm:$0xff]   ;;  %v1697_v31 = vld [vmem:[%s2284_s0 + $0x48] ss:$36 sps:$4 sm:$0xff]  }
  0x21   :  { %1125 = vmatprep.subr.bf16.mxu0 %v1557_v33  ;;  %v1693_v29 = vld [vmem:[%s2284_s0 + $0x4c] ss:$36 sps:$4 sm:$0xff]   ;;  %v1695_v30 = vld [vmem:[%s2284_s0 + $0x5c] ss:$36 sps:$4 sm:$0xff]  }
  0x22   :  { %v1650_v32 = vld [vmem:[%s2283_s1 + $0x364] ss:$8 sps:$4 sm:$0xff]   ;;  %v1701_v33 = vld [vmem:[%s2284_s0 + $0x58] ss:$36 sps:$4 sm:$0xff]  }
  0x23   :  { %1020 = vmatpush1.bf16.msra.mxu1 %v1559_v34  ;;  %v1645_v34 = vld [vmem:[%s2283_s1 + $0x160] ss:$8 sps:$4 sm:$0xff]   ;;  %v1663_v48 = vld [vmem:[%s2283_s1 + $0x190] ss:$8 sps:$4 sm:$0xff]   ;;  %v1674_v51 = vld [vmem:[%s2283_s1 + $0x3a4] ss:$8 sps:$4 sm:$0xff]  }
  0x24   :  { %1126 = vmatpush1.bf16.msra.mxu0 %v1560_v35  ;;  %1021 = vmatprep.subr.bf16.mxu1 %v1561_v36  ;;  %v1648_v35 = vld [vmem:[%s2283_s1 + $0x360] ss:$8 sps:$4 sm:$0xff]   ;;  %v1653_v36 = vld [vmem:[%s2283_s1 + $0x174] ss:$8 sps:$4 sm:$0xff]  }
  0x25   :  { %1127 = vmatprep.subr.bf16.mxu0 %v1563_v37  ;;  %v1656_v37 = vld [vmem:[%s2283_s1 + $0x374] ss:$8 sps:$4 sm:$0xff]  }
  0x27   :  { %1022 = vmatpush1.bf16.msra.mxu1 %v1565_v38  ;;  %v1651_v38 = vld [vmem:[%s2283_s1 + $0x170] ss:$8 sps:$4 sm:$0xff]  }
  0x28   :  { %1128 = vmatpush1.bf16.msra.mxu0 %v1566_v39  ;;  %1023 = vmatprep.subr.bf16.mxu1 %v1567_v40  ;;  %v1654_v39 = vld [vmem:[%s2283_s1 + $0x370] ss:$8 sps:$4 sm:$0xff]   ;;  %v1659_v40 = vld [vmem:[%s2283_s1 + $0x184] ss:$8 sps:$4 sm:$0xff]  }
  0x29   :  { %1129 = vmatprep.subr.bf16.mxu0 %v1569_v41  ;;  %v1713_v41 = vld [vmem:[%s2284_s0 + $0xc] ss:$36 sps:$4 sm:$0xff]  }
  0x2b   :  { %1024 = vmatpush1.bf16.msra.mxu1 %v1571_v42  ;;  %v1662_v42 = vld [vmem:[%s2283_s1 + $0x384] ss:$8 sps:$4 sm:$0xff]  }
  0x2c   :  { %1130 = vmatpush1.bf16.msra.mxu0 %v1572_v43  ;;  %1025 = vmatprep.subr.bf16.mxu1 %v1573_v44  ;;  %v1716_v43 = vld [vmem:[%s2284_s0 + $0x1c] ss:$36 sps:$4 sm:$0xff]  }
  0x2d   :  { %1131 = vmatprep.subr.bf16.mxu0 %v1575_v45  ;;  %v1657_v44 = vld [vmem:[%s2283_s1 + $0x180] ss:$8 sps:$4 sm:$0xff]  }
  0x2e   :  { %v1660_v45 = vld [vmem:[%s2283_s1 + $0x380] ss:$8 sps:$4 sm:$0xff]  }
  0x2f   :  { %1026 = vmatpush1.bf16.msra.mxu1 %v1577_v46  ;;  %v1665_v46 = vld [vmem:[%s2283_s1 + $0x194] ss:$8 sps:$4 sm:$0xff]  }
  0x30   :  { %1132 = vmatpush1.bf16.msra.mxu0 %v1578_v47  ;;  %1027 = vmatprep.subr.bf16.mxu1 %v1579_v49  ;;  %v1668_v47 = vld [vmem:[%s2283_s1 + $0x394] ss:$8 sps:$4 sm:$0xff]   ;;  %v1666_v49 = vld [vmem:[%s2283_s1 + $0x390] ss:$8 sps:$4 sm:$0xff]  }
  0x31   :  { %1133 = vmatprep.subr.bf16.mxu0 %v1581_v50  ;;  %v1671_v50 = vld [vmem:[%s2283_s1 + $0x1a4] ss:$8 sps:$4 sm:$0xff]  }
  0x33   :  { %1028 = vmatpush1.bf16.msra.mxu1 %v1583_v52  ;;  %v1669_v52 = vld [vmem:[%s2283_s1 + $0x1a0] ss:$8 sps:$4 sm:$0xff]  }
  0x34   :  { %1134 = vmatpush1.bf16.msra.mxu0 %v1584_v53  ;;  %1029 = vmatprep.subr.bf16.mxu1 %v1585_v54  ;;  %v1672_v53 = vld [vmem:[%s2283_s1 + $0x3a0] ss:$8 sps:$4 sm:$0xff]   ;;  %v1677_v54 = vld [vmem:[%s2283_s1 + $0x1b4] ss:$8 sps:$4 sm:$0xff]  }
  0x35   :  { %1135 = vmatprep.subr.bf16.mxu0 %v1587_v55  ;;  %v1680_v55 = vld [vmem:[%s2283_s1 + $0x3b4] ss:$8 sps:$4 sm:$0xff]  }
  0x37   :  { %1030 = vmatpush1.bf16.msra.mxu1 %v1589_v56  ;;  %v1675_v56 = vld [vmem:[%s2283_s1 + $0x1b0] ss:$8 sps:$4 sm:$0xff]  }
  0x38   :  { %1136 = vmatpush1.bf16.msra.mxu0 %v1590_v57  ;;  %1031 = vmatprep.subr.bf16.mxu1 %v1591_v58  ;;  %v1678_v57 = vld [vmem:[%s2283_s1 + $0x3b0] ss:$8 sps:$4 sm:$0xff]   ;;  %v1683_v58 = vld [vmem:[%s2283_s1 + $0x1c4] ss:$8 sps:$4 sm:$0xff]  }
  0x39   :  { %1137 = vmatprep.subr.bf16.mxu0 %v1593_v59  ;;  %v1686_v59 = vld [vmem:[%s2283_s1 + $0x3c4] ss:$8 sps:$4 sm:$0xff]  }
  0x3b   :  { %1032 = vmatpush1.bf16.msra.mxu1 %v1595_v60  ;;  %v1681_v60 = vld [vmem:[%s2283_s1 + $0x1c0] ss:$8 sps:$4 sm:$0xff]  }
  0x3c   :  { %1138 = vmatpush1.bf16.msra.mxu0 %v1596_v61  ;;  %1033 = vmatprep.subr.bf16.mxu1 %v1597_v62  ;;  %v1684_v61 = vld [vmem:[%s2283_s1 + $0x3c0] ss:$8 sps:$4 sm:$0xff]   ;;  %v1689_v62 = vld [vmem:[%s2283_s1 + $0x1d4] ss:$8 sps:$4 sm:$0xff]  }
  0x3d   :  { %1139 = vmatprep.subr.bf16.mxu0 %v1599_v63  ;;  %v1692_v63 = vld [vmem:[%s2283_s1 + $0x3d4] ss:$8 sps:$4 sm:$0xff]  }
  0x3f   :  { %1034 = vmatpush1.bf16.msra.mxu1 %v1601_v0  ;;  %v1687_v0 = vld [vmem:[%s2283_s1 + $0x1d0] ss:$8 sps:$4 sm:$0xff]  }
  0x40   :  { %1140 = vmatpush1.bf16.msra.mxu0 %v1602_v1  ;;  %1056 = vmatprep.subr.bf16.mxu1 %v1608_v2  ;;  %v1690_v1 = vld [vmem:[%s2283_s1 + $0x3d0] ss:$8 sps:$4 sm:$0xff]   ;;  %v1700_v2 = vld [vmem:[%s2283_s1 + $0x1e4] ss:$8 sps:$4 sm:$0xff]  }
  0x41   :  { %1162 = vmatprep.subr.bf16.mxu0 %v1614_v3  ;;  %v1704_v3 = vld [vmem:[%s2283_s1 + $0x3e4] ss:$8 sps:$4 sm:$0xff]  }
  0x42   :  { %1036 = vmatmul.mubr.bf16.vlgmr.msra.gmra.mrb[0].mxu1 %v1603_v4  ;;  %v1698_v4 = vld [vmem:[%s2283_s1 + $0x1e0] ss:$8 sps:$4 sm:$0xff]  }
  0x43   :  { %1142 = vmatmul.mubr.bf16.vlgmr.msra.gmra.mrb[0].mxu0 %v1609_v6  ;;  %1057 = vmatpush1.bf16.msra.mxu1 %v1606_v5  ;;  %v1702_v5 = vld [vmem:[%s2283_s1 + $0x3e0] ss:$8 sps:$4 sm:$0xff]   ;;  %v1707_v6 = vld [vmem:[%s2283_s1 + $0x1f4] ss:$8 sps:$4 sm:$0xff]  }
  0x44   :  { %1163 = vmatpush1.bf16.msra.mxu0 %v1612_v7  ;;  %1058 = vmatprep.subr.bf16.mxu1 %v1617_v8  ;;  %v1710_v7 = vld [vmem:[%s2283_s1 + $0x3f4] ss:$8 sps:$4 sm:$0xff]   ;;  %v1705_v8 = vld [vmem:[%s2283_s1 + $0x1f0] ss:$8 sps:$4 sm:$0xff]  }
  0x45   :  { %1164 = vmatprep.subr.bf16.mxu0 %v1620_v9  ;;  %1045 = vmatprep.mubr.bf16.mxu1 %v1693_v29  ;;  %v1708_v9 = vld [vmem:[%s2283_s1 + $0x3f0] ss:$8 sps:$4 sm:$0xff]   ;;  %v1743_v29 = vld [vmem:[%s2283_s1 + $0x464] ss:$8 sps:$4 sm:$0xff]  }
  0x46   :  { %1151 = vmatprep.mubr.bf16.mxu0 %v1695_v30  ;;  %v1741_v30 = vld [vmem:[%s2283_s1 + $0x460] ss:$8 sps:$4 sm:$0xff]  }
  0x47   :  { %1059 = vmatpush1.bf16.msra.mxu1 %v1615_v10  ;;  %v1719_v10 = vld [vmem:[%s2283_s1 + $0x404] ss:$8 sps:$4 sm:$0xff]  }
  0x48   :  { %1165 = vmatpush1.bf16.msra.mxu0 %v1618_v11  ;;  %1060 = vmatprep.subr.bf16.mxu1 %v1623_v12  ;;  %v1711_v11 = vld [vmem:[%s2284_s0 + $0x8] ss:$36 sps:$4 sm:$0xff]   ;;  %v1714_v12 = vld [vmem:[%s2284_s0 + $0x18] ss:$36 sps:$4 sm:$0xff]  }
  0x49   :  { %1166 = vmatprep.subr.bf16.mxu0 %v1626_v13  ;;  %v1717_v13 = vld [vmem:[%s2283_s1 + $0x400] ss:$8 sps:$4 sm:$0xff]  }
  0x4a   :  { %1046 = vmatmul.mubr.bf16.gmra.mrb[4].mxu1 %v1697_v31  ;;  %v1746_v31 = vld [vmem:[%s2283_s1 + $0x474] ss:$8 sps:$4 sm:$0xff]  }
  0x4b   :  { %1061 = vmatpush1.bf16.msra.mxu1 %v1621_v14  ;;  %1152 = vmatmul.mubr.bf16.gmra.mrb[4].mxu0 %v1701_v33  ;;  %v1722_v14 = vld [vmem:[%s2283_s1 + $0x414] ss:$8 sps:$4 sm:$0xff]   ;;  %v1747_v33 = vld [vmem:[%s2284_s0 + $0x20] ss:$36 sps:$4 sm:$0xff]  }
  0x4c   :  { %1167 = vmatpush1.bf16.msra.mxu0 %v1624_v15  ;;  %1062 = vmatprep.subr.bf16.mxu1 %v1629_v16  ;;  %v1723_v15 = vld [vmem:[%s2284_s0 + $0x54] ss:$36 sps:$4 sm:$0xff]   ;;  %v1725_v16 = vld [vmem:[%s2284_s0 + $0x64] ss:$36 sps:$4 sm:$0xff]  }
  0x4d   :  { %1168 = vmatprep.subr.bf16.mxu0 %v1632_v17  ;;  %1088 = vmatprep.mubr.bf16.mxu1 %v1713_v41  ;;  %v1720_v17 = vld [vmem:[%s2283_s1 + $0x410] ss:$8 sps:$4 sm:$0xff]  }
  0x4e   :  { %1194 = vmatprep.mubr.bf16.mxu0 %v1716_v43 }
  0x4f   :  { %1063 = vmatpush1.bf16.msra.mxu1 %v1627_v18  ;;  %v1731_v18 = vld [vmem:[%s2283_s1 + $0x424] ss:$8 sps:$4 sm:$0xff]  }
  0x50   :  { %1169 = vmatpush1.bf16.msra.mxu0 %v1630_v19  ;;  %1064 = vmatprep.subr.bf16.mxu1 %v1635_v20  ;;  %v1727_v19 = vld [vmem:[%s2284_s0 + $0x50] ss:$36 sps:$4 sm:$0xff]   ;;  %v1728_v20 = vld [vmem:[%s2284_s0 + $0x60] ss:$36 sps:$4 sm:$0xff]  }
  0x51   :  { %1170 = vmatprep.subr.bf16.mxu0 %v1638_v21  ;;  %v1729_v21 = vld [vmem:[%s2283_s1 + $0x420] ss:$8 sps:$4 sm:$0xff]  }
  0x53   :  { %1065 = vmatpush1.bf16.msra.mxu1 %v1633_v22  ;;  %v1734_v22 = vld [vmem:[%s2283_s1 + $0x434] ss:$8 sps:$4 sm:$0xff]  }
  0x54   :  { %1171 = vmatpush1.bf16.msra.mxu0 %v1636_v23  ;;  %1066 = vmatprep.subr.bf16.mxu1 %v1641_v24  ;;  %v1732_v23 = vld [vmem:[%s2283_s1 + $0x430] ss:$8 sps:$4 sm:$0xff]   ;;  %v1737_v24 = vld [vmem:[%s2283_s1 + $0x444] ss:$8 sps:$4 sm:$0xff]  }
  0x55   :  { %1172 = vmatprep.subr.bf16.mxu0 %v1644_v25  ;;  %v1749_v25 = vmov 0  }
  0x57   :  { %1067 = vmatpush1.bf16.msra.mxu1 %v1639_v26  ;;  %v1735_v26 = vld [vmem:[%s2283_s1 + $0x440] ss:$8 sps:$4 sm:$0xff]  }
  0x58   :  { %1173 = vmatpush1.bf16.msra.mxu0 %v1642_v27  ;;  %1068 = vmatprep.subr.bf16.mxu1 %v1647_v28  ;;  %v1740_v27 = vld [vmem:[%s2283_s1 + $0x454] ss:$8 sps:$4 sm:$0xff]   ;;  %v1738_v28 = vld [vmem:[%s2283_s1 + $0x450] ss:$8 sps:$4 sm:$0xff]  }
  0x59   :  { %1174 = vmatprep.subr.bf16.mxu0 %v1650_v32  ;;  %v1744_v32 = vld [vmem:[%s2283_s1 + $0x470] ss:$8 sps:$4 sm:$0xff]  }
  0x5b   :  { %1069 = vmatpush1.bf16.msra.mxu1 %v1645_v34  ;;  %v1748_v34 = vld [vmem:[%s2284_s0 + $0x68] ss:$36 sps:$4 sm:$0xff]  }
  0x5c   :  { %1175 = vmatpush1.bf16.msra.mxu0 %v1648_v35  ;;  %1070 = vmatprep.subr.bf16.mxu1 %v1653_v36  ;;  %v181_v35 = vlaneseq }
  0x5d   :  { %1176 = vmatprep.subr.bf16.mxu0 %v1656_v37 }
  0x5e   :  { %v182_v36 = vshrl.u32 %v181_v35, 7 }
  0x5f   :  { %1071 = vmatpush1.bf16.msra.mxu1 %v1651_v38 }
  0x60   :  { %1177 = vmatpush1.bf16.msra.mxu0 %v1654_v39  ;;  %1072 = vmatprep.subr.bf16.mxu1 %v1659_v40  ;;  %v183_v40 = vsub.s32 0, %v182_v36  ;;  %v187_v43 = vsub.s32 1, %v182_v36 }
  0x61   :  { %1178 = vmatprep.subr.bf16.mxu0 %v1662_v42  ;;  %v179_v42 = vld [vmem:[%s2285_s2] sm:$0x3] }
  0x63   :  { %1073 = vmatpush1.bf16.msra.mxu1 %v1657_v44  ;;  %v184_v44 = vrot.slane %v179_v42, %v183_v40 }
  0x64   :  { %1179 = vmatpush1.bf16.msra.mxu0 %v1660_v45  ;;  %1074 = vmatprep.subr.bf16.mxu1 %v1665_v46  ;;  %v188_v45 = vrot.slane %v179_v42, %v187_v43 }
  0x65   :  { %1180 = vmatprep.subr.bf16.mxu0 %v1668_v47 }
  0x67   :  { %1075 = vmatpush1.bf16.msra.mxu1 %v1663_v48 }
  0x68   :  { %1181 = vmatpush1.bf16.msra.mxu0 %v1666_v49  ;;  %1076 = vmatprep.subr.bf16.mxu1 %v1671_v50 }
  0x69   :  { %1182 = vmatprep.subr.bf16.mxu0 %v1674_v51 }
  0x6b   :  { %1077 = vmatpush1.bf16.msra.mxu1 %v1669_v52 }
  0x6c   :  { %1183 = vmatpush1.bf16.msra.mxu0 %v1672_v53  ;;  %1078 = vmatprep.subr.bf16.mxu1 %v1677_v54 }
  0x6d   :  { %1184 = vmatprep.subr.bf16.mxu0 %v1680_v55 }
  0x6f   :  { %1079 = vmatpush1.bf16.msra.mxu1 %v1675_v56 }
  0x70   :  { %1185 = vmatpush1.bf16.msra.mxu0 %v1678_v57  ;;  %1080 = vmatprep.subr.bf16.mxu1 %v1683_v58 }
  0x71   :  { %1186 = vmatprep.subr.bf16.mxu0 %v1686_v59 }
  0x73   :  { %1081 = vmatpush1.bf16.msra.mxu1 %v1681_v60 }
  0x74   :  { %1187 = vmatpush1.bf16.msra.mxu0 %v1684_v61  ;;  %1082 = vmatprep.subr.bf16.mxu1 %v1689_v62 }
  0x75   :  { %1188 = vmatprep.subr.bf16.mxu0 %v1692_v63 }
  0x77   :  { %1083 = vmatpush1.bf16.msra.mxu1 %v1687_v0 }
  0x78   :  { %1189 = vmatpush1.bf16.msra.mxu0 %v1690_v1  ;;  %1084 = vmatprep.subr.bf16.mxu1 %v1700_v2 }
  0x79   :  { %1190 = vmatprep.subr.bf16.mxu0 %v1704_v3 }
  0x7b   :  { %1085 = vmatpush1.bf16.msra.mxu1 %v1698_v4 }
  0x7c   :  { %1191 = vmatpush1.bf16.msra.mxu0 %v1702_v5  ;;  %1086 = vmatprep.subr.bf16.mxu1 %v1707_v6 }
  0x7d   :  { %1192 = vmatprep.subr.bf16.mxu0 %v1710_v7 }
  0x7f   :  { %1087 = vmatpush1.bf16.msra.mxu1 %v1705_v8 }
  0x80   :  { %1193 = vmatpush1.bf16.msra.mxu0 %v1708_v9  ;;  %1450 = vmatprep.subr.bf16.mxu1 %v1719_v10 }
  0x81   :  { %1215 = vmatprep.subr.bf16.mxu0 %v1719_v10 }
  0x82   :  { %1089 = vmatmul.mubr.bf16.vlgmr.msra.gmra.mrb[0].mxu1 %v1711_v11 }
  0x83   :  { %1195 = vmatmul.mubr.bf16.vlgmr.msra.gmra.mrb[0].mxu0 %v1714_v12  ;;  %1458 = vmatpush1.bf16.msra.mxu1 %v1717_v13 }
  0x84   :  { %1216 = vmatpush1.bf16.msra.mxu0 %v1717_v13  ;;  %1451 = vmatprep.subr.bf16.mxu1 %v1722_v14 }
  0x85   :  { %1217 = vmatprep.subr.bf16.mxu0 %v1722_v14  ;;  %1098 = vmatprep.mubr.bf16.mxu1 %v1723_v15 }
  0x86   :  { %1204 = vmatprep.mubr.bf16.mxu0 %v1725_v16 }
  0x87   :  { %1459 = vmatpush1.bf16.msra.mxu1 %v1720_v17 }
  0x88   :  { %1218 = vmatpush1.bf16.msra.mxu0 %v1720_v17  ;;  %1452 = vmatprep.subr.bf16.mxu1 %v1731_v18 }
  0x89   :  { %1219 = vmatprep.subr.bf16.mxu0 %v1731_v18 }
  0x8a   :  { %1099 = vmatmul.mubr.bf16.gmra.mrb[4].mxu1 %v1727_v19 }
  0x8b   :  { %1205 = vmatmul.mubr.bf16.gmra.mrb[4].mxu0 %v1728_v20  ;;  %1460 = vmatpush1.bf16.msra.mxu1 %v1729_v21 }
  0x8c   :  { %1220 = vmatpush1.bf16.msra.mxu0 %v1729_v21  ;;  %1453 = vmatprep.subr.bf16.mxu1 %v1734_v22 }
  0x8d   :  { %1221 = vmatprep.subr.bf16.mxu0 %v1734_v22  ;;  %1247 = vmatprep.mubr.bf16.mxu0 %v1749_v25 }
  0x8e   :  { %1257 = vmatprep.mubr.bf16.mxu1 %v1749_v25 }
  0x8f   :  { %1461 = vmatpush1.bf16.msra.mxu1 %v1732_v23 }
  0x90   :  { %1222 = vmatpush1.bf16.msra.mxu0 %v1732_v23  ;;  %1454 = vmatprep.subr.bf16.mxu1 %v1737_v24 }
  0x91   :  { %1223 = vmatprep.subr.bf16.mxu0 %v1737_v24 }
  0x93   :  { %1462 = vmatpush1.bf16.msra.mxu1 %v1735_v26 }
  0x94   :  { %1224 = vmatpush1.bf16.msra.mxu0 %v1735_v26  ;;  %1455 = vmatprep.subr.bf16.mxu1 %v1740_v27 }
  0x95   :  { %1225 = vmatprep.subr.bf16.mxu0 %v1740_v27 }
  0x97   :  { %1463 = vmatpush1.bf16.msra.mxu1 %v1738_v28 }
  0x98   :  { %1226 = vmatpush1.bf16.msra.mxu0 %v1738_v28  ;;  %1456 = vmatprep.subr.bf16.mxu1 %v1743_v29 }
  0x99   :  { %1227 = vmatprep.subr.bf16.mxu0 %v1743_v29 }
  0x9b   :  { %1464 = vmatpush1.bf16.msra.mxu1 %v1741_v30 }
  0x9c   :  { %1228 = vmatpush1.bf16.msra.mxu0 %v1741_v30  ;;  %1457 = vmatprep.subr.bf16.mxu1 %v1746_v31 }
  0x9d   :  { %1229 = vmatprep.subr.bf16.mxu0 %v1746_v31 }
  0x9f   :  { %1465 = vmatpush1.bf16.msra.mxu1 %v1744_v32 }
  0xa0   :  { %1230 = vmatpush1.bf16.msra.mxu0 %v1744_v32 }
  0xa2   :  { %1258 = vmatmul.mubr.bf16.vlgmr.msra.gmra.mrb[8].mxu1 %v1748_v34 }
  0xa3   :  { %1248 = vmatmul.mubr.bf16.vlgmr.msra.gmra.mrb[0].mxu0 %v1747_v33 }
 0x155   :  { %v1090_v37 = vpop.f32.mrb[0].mxu1 }
 0x156   :  { %v1092_v38 = vpop.f32.mrb[1].mxu1  ;;  %v1466_v62 = vadd.f32 %v1090_v37, %v184_v44 }
 0x157   :  { %v1094_v39 = vpop.f32.mrb[2].mxu1  ;;  %v1468_v63 = vadd.f32 %v1092_v38, %v188_v45 }
 0x158   :  { %v1096_v41 = vpop.f32.mrb[3].mxu1  ;;  %v1470_v2 = vadd.f32 %v1094_v39, %v184_v44 }
 0x159   :  { %v1472_v7 = vadd.f32 %v1096_v41, %v188_v45 }
 0x15d   :  { %v1100_v46 = vpop.f32.mrb[4].mxu1 }
 0x15e   :  { %v1206_v47 = vpop.f32.mrb[4].mxu0  ;;  %v1474_v48 = vadd.f32 %v1100_v46, %v184_v44  ;;  %v1102_v49 = vpop.f32.mrb[5].mxu1 }
 0x15f   :  { %v1208_v50 = vpop.f32.mrb[5].mxu0  ;;  %v1477_v51 = vadd.f32 %v1102_v49, %v188_v45  ;;  %v1104_v52 = vpop.f32.mrb[6].mxu1 }
 0x160   :  { %v1210_v53 = vpop.f32.mrb[6].mxu0  ;;  %v1475_v54 = vadd.f32 %v1474_v48, %v1206_v47  ;;  %v1480_v55 = vadd.f32 %v1104_v52, %v184_v44  ;;  %v1106_v56 = vpop.f32.mrb[7].mxu1 }
 0x161   :  { %v1212_v57 = vpop.f32.mrb[7].mxu0  ;;  %v1478_v58 = vadd.f32 %v1477_v51, %v1208_v50  ;;  %v1483_v59 = vadd.f32 %v1106_v56, %v188_v45 }
 0x162   :  { %v1481_v60 = vadd.f32 %v1480_v55, %v1210_v53 }
 0x163   :  { %v1484_v61 = vadd.f32 %v1483_v59, %v1212_v57 }
 0x175   :  { %v1259_v1 = vpop.f32.mrb[8].mxu1 }
 0x176   :  { %v1249_v0 = vpop.f32.mrb[0].mxu0  ;;  %v1476_v4 = vadd.f32 %v1475_v54, %v1259_v1  ;;  %v1261_v6 = vpop.f32.mrb[9].mxu1 }
 0x177   :  { %v1467_v3 = vadd.f32 %v1466_v62, %v1249_v0  ;;  %v1251_v5 = vpop.f32.mrb[1].mxu0  ;;  %v1479_v9 = vadd.f32 %v1478_v58, %v1261_v6  ;;  %v1263_v11 = vpop.f32.mrb[10].mxu1 }
 0x178   :  { %v1469_v8 = vadd.f32 %v1468_v63, %v1251_v5  ;;  %v1253_v10 = vpop.f32.mrb[2].mxu0  ;;  %v1272_v13 = vmax.f32 %v1476_v4, 0.0  ;;  %v1482_v15 = vadd.f32 %v1481_v60, %v1263_v11  ;;  %v1265_v17 = vpop.f32.mrb[11].mxu1 }
 0x179   :  { %v1268_v12 = vmax.f32 %v1467_v3, 0.0  ;;  %v1471_v14 = vadd.f32 %v1470_v2, %v1253_v10  ;;  %v1255_v16 = vpop.f32.mrb[3].mxu0  ;;  %v1273_v19 = vmax.f32 %v1479_v9, 0.0  ;;  %v1485_v21 = vadd.f32 %v1484_v61, %v1265_v17 }
 0x17a   :  { %v1269_v18 = vmax.f32 %v1469_v8, 0.0  ;;  %v1473_v20 = vadd.f32 %v1472_v7, %v1255_v16  ;;  %1280 = vst [vmem:[%s2286_s3 + $0x20] sm:$0xff] %v1272_v13  ;;  %v1274_v23 = vmax.f32 %v1482_v15, 0.0 }
 0x17b   :  { %1276 = vst [vmem:[%s2286_s3] sm:$0xff] %v1268_v12  ;;  %v1270_v22 = vmax.f32 %v1471_v14, 0.0  ;;  %1281 = vst [vmem:[%s2286_s3 + $0x28] sm:$0xff] %v1273_v19  ;;  %v1275_v25 = vmax.f32 %v1485_v21, 0.0 }
 0x17c   :  { %1277 = vst [vmem:[%s2286_s3 + $0x8] sm:$0xff] %v1269_v18  ;;  %v1271_v24 = vmax.f32 %v1473_v20, 0.0  ;;  %1282 = vst [vmem:[%s2286_s3 + $0x30] sm:$0xff] %v1274_v23 }
 0x17d   :  { %1278 = vst [vmem:[%s2286_s3 + $0x10] sm:$0xff] %v1270_v22  ;;  %1283 = vst [vmem:[%s2286_s3 + $0x38] sm:$0xff] %v1275_v25 }
 0x17e   :  { %1279 = vst [vmem:[%s2286_s3 + $0x18] sm:$0xff] %v1271_v24 }

// kernel: tile.23
= control target key start
LH: loop header
LB: loop body
LE: loop exit
PB: predicated region body
PF: predicated region fallthrough
CT: control target
= control target key end

     0   :  { %s22_s0 = inlined_call_operand.vmem [shape: f32[32], index: 0, kind: input, shape index: {}]   ;;  %s23_s1 = inlined_call_operand.vmem [shape: f32[4,32], index: 1, kind: output, shape index: {}]  }
   0x1   :  { %v4_v0 = vld [vmem:[%s22_s0] ss:$0 sm:$0xff] }
   0x2   :  { %5 = vst [vmem:[%s23_s1] sm:$0xf] %v4_v0 }

// kernel: tile.24
= control target key start
LH: loop header
LB: loop body
LE: loop exit
PB: predicated region body
PF: predicated region fallthrough
CT: control target
= control target key end

     0   :  { %vm7_vm0 = vcmask 261120   ;;  %s37_s8 = smov 32   ;;  %s38_s9 = smov 64   ;;  %vm13_vm1 = vcmask 1048320   ;;  %vm19_vm2 = vcmask 785920   ;;  %vm25_vm3 = vcmask 523520   ;;  %s55_s0 = inlined_call_operand.vmem [shape: f32[4,32], index: 0, kind: input, shape index: {}]   ;;  %s56_s1 = inlined_call_operand.vmem [shape: f32[1,128], index: 1, kind: output, shape index: {}]  }
   0x1   :  { %v4_v0 = vld [vmem:[%s55_s0] sm:$0xf]  ;;  %s36_s0 = smov 96  }
   0x2   :  { %5 = vst [vmem:[#allocation1] sm:$0xf] %v4_v0 }
   0x9   :  { %v10_v1 = vld [vmem:[#allocation1 + $0x3] sm:$0x1]   ;;  %v22_v2 = vld [vmem:[#allocation1 + $0x1] sm:$0x1]   ;;  %v6_v3 = vld [vmem:[#allocation1] sm:$0x1]  }
   0xa   :  { %11 = vrot.lane.b32.xlu0 %v10_v1, %s36_s0  ;;  %23 = vrot.lane.b32.xlu1 %v22_v2, %s37_s8  ;;  %v16_v4 = vld [vmem:[#allocation1 + $0x2] sm:$0x1]   ;;  %8 = vst.msk [vmem:[#allocation0] sm:$0x1] %vm7_vm0, %v6_v3  }
   0xe   :  { %17 = vrot.lane.b32.xlu0 %v16_v4, %s38_s9 }
  0x7c   :  { %v12_v5 = vpop.permute.xlu0 %11   ;;  %v24_v6 = vpop.permute.xlu1 %23  }
  0x7d   :  { %14 = vst.msk [vmem:[#allocation0] sm:$0x1] %vm13_vm1, %v12_v5  }
  0x80   :  { %v18_v7 = vpop.permute.xlu0 %17  }
  0x81   :  { %20 = vst.msk [vmem:[#allocation0] sm:$0x1] %vm19_vm2, %v18_v7  }
  0x82   :  { %26 = vst.msk [vmem:[#allocation0] sm:$0x1] %vm25_vm3, %v24_v6  }
  0x89   :  { %v30_v8 = vld [vmem:[#allocation0] sm:$0x1] }
  0x8a   :  { %32 = vst [vmem:[%s56_s1] sm:$0x1] %v30_v8 }

// kernel: vae_cifar_forward.12
= control target key start
LH: loop header
LB: loop body
LE: loop exit
PB: predicated region body
PF: predicated region fallthrough
CT: control target
= control target key end

     0   :  { %vm558_vm0 = vcmask 523264   ;;  %s1614_s1 = inlined_call_operand.vmem [shape: bf16[576,128], index: 1, kind: input, shape index: {}]   ;;  %s1615_s0 = inlined_call_operand.vmem [shape: bf16[128,576], index: 0, kind: input, shape index: {}]   ;;  %s1616_s2 = inlined_call_operand.vmem [shape: f32[1,128], index: 2, kind: input, shape index: {}]   ;;  %s1617_s3 = inlined_call_operand.vmem [shape: f32[128,128], index: 3, kind: output, shape index: {}]  }
   0x1   :  { %v1167_v0 = vld [vmem:[%s1614_s1 + $0x40] sm:$0xff]   ;;  %v1171_v4 = vld [vmem:[%s1614_s1 + $0x48] sm:$0xff]   ;;  %v1175_v8 = vld [vmem:[%s1614_s1 + $0x50] sm:$0xff]  }
   0x2   :  { %v1168_v1 = vld [vmem:[%s1614_s1 + $0xc0] sm:$0xff]   ;;  %995 = vmatprep.subr.bf16.mxu0 %v1167_v0  ;;  %v1172_v5 = vld [vmem:[%s1614_s1 + $0xc8] sm:$0xff]   ;;  %v1176_v9 = vld [vmem:[%s1614_s1 + $0xd0] sm:$0xff]  }
   0x3   :  { %v1169_v2 = vld [vmem:[%s1614_s1] sm:$0xff]   ;;  %1059 = vmatprep.subr.bf16.mxu1 %v1168_v1  ;;  %v1173_v6 = vld [vmem:[%s1614_s1 + $0x8] sm:$0xff]   ;;  %v1177_v10 = vld [vmem:[%s1614_s1 + $0x10] sm:$0xff]  }
   0x4   :  { %v1170_v3 = vld [vmem:[%s1614_s1 + $0x80] sm:$0xff]   ;;  %996 = vmatpush3.bf16.msra.mxu0 %v1169_v2  ;;  %v1174_v7 = vld [vmem:[%s1614_s1 + $0x88] sm:$0xff]   ;;  %v1178_v11 = vld [vmem:[%s1614_s1 + $0x90] sm:$0xff]  }
   0x5   :  { %1060 = vmatpush3.bf16.msra.mxu1 %v1170_v3  ;;  %997 = vmatprep.subr.bf16.mxu0 %v1171_v4  ;;  %v1179_v12 = vld [vmem:[%s1614_s1 + $0x58] sm:$0xff]   ;;  %v1183_v16 = vld [vmem:[%s1614_s1 + $0x60] sm:$0xff]   ;;  %v1187_v20 = vld [vmem:[%s1614_s1 + $0x68] sm:$0xff]  }
   0x6   :  { %1061 = vmatprep.subr.bf16.mxu1 %v1172_v5  ;;  %v1180_v13 = vld [vmem:[%s1614_s1 + $0xd8] sm:$0xff]   ;;  %v1184_v17 = vld [vmem:[%s1614_s1 + $0xe0] sm:$0xff]   ;;  %v1188_v21 = vld [vmem:[%s1614_s1 + $0xe8] sm:$0xff]  }
   0x7   :  { %v1181_v14 = vld [vmem:[%s1614_s1 + $0x18] sm:$0xff]   ;;  %v1185_v18 = vld [vmem:[%s1614_s1 + $0x20] sm:$0xff]   ;;  %v1189_v22 = vld [vmem:[%s1614_s1 + $0x28] sm:$0xff]  }
   0x8   :  { %998 = vmatpush3.bf16.msra.mxu0 %v1173_v6  ;;  %v1182_v15 = vld [vmem:[%s1614_s1 + $0x98] sm:$0xff]   ;;  %v1186_v19 = vld [vmem:[%s1614_s1 + $0xa0] sm:$0xff]   ;;  %v1190_v23 = vld [vmem:[%s1614_s1 + $0xa8] sm:$0xff]  }
   0x9   :  { %1062 = vmatpush3.bf16.msra.mxu1 %v1174_v7  ;;  %999 = vmatprep.subr.bf16.mxu0 %v1175_v8  ;;  %v1191_v24 = vld [vmem:[%s1614_s1 + $0x70] sm:$0xff]   ;;  %v1195_v28 = vld [vmem:[%s1614_s1 + $0x78] sm:$0xff]   ;;  %v1204_v35 = vld [vmem:[%s1615_s0 + $0xc] ss:$20 sps:$4 sm:$0xff]  }
   0xa   :  { %1063 = vmatprep.subr.bf16.mxu1 %v1176_v9  ;;  %v1192_v25 = vld [vmem:[%s1614_s1 + $0xf0] sm:$0xff]   ;;  %v1196_v29 = vld [vmem:[%s1614_s1 + $0xf8] sm:$0xff]   ;;  %v1205_v36 = vld [vmem:[%s1614_s1 + $0x100] sm:$0xff]   ;;  %712 = vmatprep.mubr.bf16.mxu1 %v1204_v35 }
   0xb   :  { %v1193_v26 = vld [vmem:[%s1614_s1 + $0x30] sm:$0xff]   ;;  %v1197_v30 = vld [vmem:[%s1614_s1 + $0x38] sm:$0xff]   ;;  %v1206_v37 = vld [vmem:[%s1615_s0 + $0x2c] ss:$20 sps:$4 sm:$0xff]  }
   0xc   :  { %1000 = vmatpush3.bf16.msra.mxu0 %v1177_v10  ;;  %v1194_v27 = vld [vmem:[%s1614_s1 + $0xb0] sm:$0xff]   ;;  %v1198_v31 = vld [vmem:[%s1614_s1 + $0xb8] sm:$0xff]   ;;  %v1218_v42 = vld [vmem:[%s1614_s1 + $0x108] sm:$0xff]  }
   0xd   :  { %1064 = vmatpush3.bf16.msra.mxu1 %v1178_v11  ;;  %1001 = vmatprep.subr.bf16.mxu0 %v1179_v12  ;;  %v1199_v32 = vld [vmem:[%s1615_s0] ss:$20 sps:$4 sm:$0xff]   ;;  %v1201_v33 = vld [vmem:[%s1615_s0 + $0x4] ss:$20 sps:$4 sm:$0xff]   ;;  %v1202_v34 = vld [vmem:[%s1615_s0 + $0x8] ss:$20 sps:$4 sm:$0xff]  }
   0xe   :  { %1065 = vmatprep.subr.bf16.mxu1 %v1180_v13  ;;  %615 = vmatprep.mubr.bf16.mxu0 %v1201_v33  ;;  %v1208_v38 = vld [vmem:[%s1615_s0 + $0x34] ss:$20 sps:$4 sm:$0xff]   ;;  %v1211_v40 = vld [vmem:[%s1615_s0 + $0x30] ss:$20 sps:$4 sm:$0xff]   ;;  %v1217_v45 = vld [vmem:[%s1615_s0 + $0x58] ss:$20 sps:$4 sm:$0xff]  }
   0xf   :  { %v1210_v39 = vld [vmem:[%s1615_s0 + $0x28] ss:$20 sps:$4 sm:$0xff]   ;;  %v1216_v44 = vld [vmem:[%s1615_s0 + $0x50] ss:$20 sps:$4 sm:$0xff]   ;;  %v1223_v50 = vld [vmem:[%s1615_s0 + $0x78] ss:$20 sps:$4 sm:$0xff]  }
  0x10   :  { %1002 = vmatpush3.bf16.msra.mxu0 %v1181_v14  ;;  %v1212_v41 = vld [vmem:[%s1615_s0 + $0x54] ss:$20 sps:$4 sm:$0xff]   ;;  %v1214_v43 = vld [vmem:[%s1615_s0 + $0x5c] ss:$20 sps:$4 sm:$0xff]   ;;  %v1221_v48 = vld [vmem:[%s1615_s0 + $0x84] ss:$20 sps:$4 sm:$0xff]  }
  0x11   :  { %1066 = vmatpush3.bf16.msra.mxu1 %v1182_v15  ;;  %1003 = vmatprep.subr.bf16.mxu0 %v1183_v16  ;;  %v1231_v46 = vld [vmem:[%s1614_s1 + $0x110] sm:$0xff]   ;;  %v1244_v49 = vld [vmem:[%s1614_s1 + $0x118] sm:$0xff]   ;;  %v1227_v53 = vld [vmem:[%s1615_s0 + $0xac] ss:$20 sps:$4 sm:$0xff]  }
  0x12   :  { %1067 = vmatprep.subr.bf16.mxu1 %v1184_v17  ;;  %v1219_v47 = vld [vmem:[%s1615_s0 + $0x7c] ss:$20 sps:$4 sm:$0xff]   ;;  %v1224_v51 = vld [vmem:[%s1615_s0 + $0x80] ss:$20 sps:$4 sm:$0xff]   ;;  %v1225_v52 = vld [vmem:[%s1615_s0 + $0xa4] ss:$20 sps:$4 sm:$0xff]  }
  0x13   :  { %v1229_v54 = vld [vmem:[%s1615_s0 + $0xa0] ss:$20 sps:$4 sm:$0xff]   ;;  %v1230_v55 = vld [vmem:[%s1615_s0 + $0xa8] ss:$20 sps:$4 sm:$0xff]   ;;  %v1237_v59 = vld [vmem:[%s1615_s0 + $0xd0] ss:$20 sps:$4 sm:$0xff]  }
  0x14   :  { %1004 = vmatpush3.bf16.msra.mxu0 %v1185_v18  ;;  %v1232_v56 = vld [vmem:[%s1615_s0 + $0xcc] ss:$20 sps:$4 sm:$0xff]   ;;  %v1234_v57 = vld [vmem:[%s1615_s0 + $0xd4] ss:$20 sps:$4 sm:$0xff]   ;;  %v1240_v61 = vld [vmem:[%s1615_s0 + $0xfc] ss:$20 sps:$4 sm:$0xff]  }
  0x15   :  { %1068 = vmatpush3.bf16.msra.mxu1 %v1186_v19  ;;  %1005 = vmatprep.subr.bf16.mxu0 %v1187_v20  ;;  %v1236_v58 = vld [vmem:[%s1615_s0 + $0xc8] ss:$20 sps:$4 sm:$0xff]   ;;  %v1242_v62 = vld [vmem:[%s1615_s0 + $0xf0] ss:$20 sps:$4 sm:$0xff]   ;;  %v1243_v63 = vld [vmem:[%s1615_s0 + $0xf8] ss:$20 sps:$4 sm:$0xff]  }
  0x16   :  { %1069 = vmatprep.subr.bf16.mxu1 %v1188_v21  ;;  %v1238_v60 = vld [vmem:[%s1615_s0 + $0xf4] ss:$20 sps:$4 sm:$0xff]   ;;  %v1245_v0 = vld [vmem:[%s1615_s0 + $0x11c] ss:$20 sps:$4 sm:$0xff]   ;;  %v1247_v1 = vld [vmem:[%s1615_s0 + $0x124] ss:$20 sps:$4 sm:$0xff]  }
  0x17   :  { %v1249_v2 = vld [vmem:[%s1615_s0 + $0x118] ss:$20 sps:$4 sm:$0xff]   ;;  %v1250_v3 = vld [vmem:[%s1615_s0 + $0x120] ss:$20 sps:$4 sm:$0xff]   ;;  %v1251_v4 = vld [vmem:[%s1615_s0 + $0x10] ss:$20 sps:$4 sm:$0xff]  }
  0x18   :  { %1006 = vmatpush3.bf16.msra.mxu0 %v1189_v22  ;;  %v1252_v5 = vld [vmem:[%s1615_s0 + $0xb0] ss:$20 sps:$4 sm:$0xff]   ;;  %v1253_v6 = vld [vmem:[%s1615_s0 + $0x38] ss:$20 sps:$4 sm:$0xff]   ;;  %v1255_v8 = vld [vmem:[%s1615_s0 + $0x60] ss:$20 sps:$4 sm:$0xff]  }
  0x19   :  { %1070 = vmatpush3.bf16.msra.mxu1 %v1190_v23  ;;  %1007 = vmatprep.subr.bf16.mxu0 %v1191_v24  ;;  %v1254_v7 = vld [vmem:[%s1615_s0 + $0xd8] ss:$20 sps:$4 sm:$0xff]   ;;  %v1256_v9 = vld [vmem:[%s1615_s0 + $0x100] ss:$20 sps:$4 sm:$0xff]   ;;  %v1257_v10 = vld [vmem:[%s1615_s0 + $0x88] ss:$20 sps:$4 sm:$0xff]  }
  0x1a   :  { %1071 = vmatprep.subr.bf16.mxu1 %v1192_v25  ;;  %v1258_v11 = vld [vmem:[%s1615_s0 + $0x128] ss:$20 sps:$4 sm:$0xff]   ;;  %v1518_v14 = vld [vmem:[%s1616_s2] ss:$0 sm:$0xff] }
  0x1c   :  { %1008 = vmatpush3.bf16.msra.mxu0 %v1193_v26 }
  0x1d   :  { %1072 = vmatpush3.bf16.msra.mxu1 %v1194_v27  ;;  %1009 = vmatprep.subr.bf16.mxu0 %v1195_v28 }
  0x1e   :  { %1073 = vmatprep.subr.bf16.mxu1 %v1196_v29 }
  0x20   :  { %1010 = vmatpush3.bf16.msra.mxu0 %v1197_v30 }
  0x21   :  { %1074 = vmatpush3.bf16.msra.mxu1 %v1198_v31  ;;  %1135 = vmatprep.subr.bf16.mxu0 %v1205_v36 }
  0x22   :  { %1159 = vmatprep.subr.bf16.mxu1 %v1205_v36 }
  0x23   :  { %616 = vmatmul.mubr.bf16.vlgmr.msra.gmra.mrb[0].mxu0 %v1199_v32 }
  0x24   :  { %713 = vmatmul.mubr.bf16.vlgmr.msra.gmra.mrb[0].mxu1 %v1202_v34  ;;  %1136 = vmatpush3.bf16.msra.mxu0 %v1205_v36 }
  0x25   :  { %1163 = vmatpush3.bf16.msra.mxu1 %v1205_v36  ;;  %623 = vmatprep.mubr.bf16.mxu0 %v1206_v37 }
  0x26   :  { %720 = vmatprep.mubr.bf16.mxu1 %v1208_v38  ;;  %1137 = vmatprep.subr.bf16.mxu0 %v1218_v42 }
  0x27   :  { %1160 = vmatprep.subr.bf16.mxu1 %v1218_v42 }
  0x28   :  { %1138 = vmatpush3.bf16.msra.mxu0 %v1218_v42 }
  0x29   :  { %1164 = vmatpush3.bf16.msra.mxu1 %v1218_v42  ;;  %1139 = vmatprep.subr.bf16.mxu0 %v1231_v46 }
  0x2a   :  { %1161 = vmatprep.subr.bf16.mxu1 %v1231_v46 }
  0x2b   :  { %624 = vmatmul.mubr.bf16.gmra.mrb[4].mxu0 %v1210_v39 }
  0x2c   :  { %721 = vmatmul.mubr.bf16.gmra.mrb[4].mxu1 %v1211_v40  ;;  %631 = vmatprep.mubr.bf16.mxu0 %v1212_v41 }
  0x2d   :  { %728 = vmatprep.mubr.bf16.mxu1 %v1214_v43  ;;  %1140 = vmatpush3.bf16.msra.mxu0 %v1231_v46 }
  0x2e   :  { %1165 = vmatpush3.bf16.msra.mxu1 %v1231_v46  ;;  %1141 = vmatprep.subr.bf16.mxu0 %v1244_v49 }
  0x2f   :  { %1162 = vmatprep.subr.bf16.mxu1 %v1244_v49 }
  0x31   :  { %1142 = vmatpush3.bf16.msra.mxu0 %v1244_v49 }
  0x32   :  { %1166 = vmatpush3.bf16.msra.mxu1 %v1244_v49 }
  0x33   :  { %632 = vmatmul.mubr.bf16.gmra.mrb[8].mxu0 %v1216_v44 }
  0x34   :  { %729 = vmatmul.mubr.bf16.gmra.mrb[8].mxu1 %v1217_v45  ;;  %639 = vmatprep.mubr.bf16.mxu0 %v1219_v47 }
  0x35   :  { %736 = vmatprep.mubr.bf16.mxu1 %v1221_v48 }
  0x3b   :  { %640 = vmatmul.mubr.bf16.gmra.mrb[12].mxu0 %v1223_v50 }
  0x3c   :  { %737 = vmatmul.mubr.bf16.gmra.mrb[12].mxu1 %v1224_v51  ;;  %647 = vmatprep.mubr.bf16.mxu0 %v1225_v52 }
  0x3d   :  { %744 = vmatprep.mubr.bf16.mxu1 %v1227_v53 }
  0x43   :  { %648 = vmatmul.mubr.bf16.gmra.mrb[16].mxu0 %v1229_v54 }
  0x44   :  { %745 = vmatmul.mubr.bf16.gmra.mrb[16].mxu1 %v1230_v55  ;;  %655 = vmatprep.mubr.bf16.mxu0 %v1232_v56 }
  0x45   :  { %752 = vmatprep.mubr.bf16.mxu1 %v1234_v57 }
  0x4b   :  { %656 = vmatmul.mubr.bf16.gmra.mrb[20].mxu0 %v1236_v58 }
  0x4c   :  { %753 = vmatmul.mubr.bf16.gmra.mrb[20].mxu1 %v1237_v59  ;;  %663 = vmatprep.mubr.bf16.mxu0 %v1238_v60 }
  0x4d   :  { %760 = vmatprep.mubr.bf16.mxu1 %v1240_v61 }
  0x53   :  { %664 = vmatmul.mubr.bf16.gmra.mrb[24].mxu0 %v1242_v62 }
  0x54   :  { %761 = vmatmul.mubr.bf16.gmra.mrb[24].mxu1 %v1243_v63  ;;  %671 = vmatprep.mubr.bf16.mxu0 %v1245_v0 }
  0x55   :  { %768 = vmatprep.mubr.bf16.mxu1 %v1247_v1 }
  0x5b   :  { %672 = vmatmul.mubr.bf16.gmra.mrb[28].mxu0 %v1249_v2 }
  0x5c   :  { %769 = vmatmul.mubr.bf16.gmra.mrb[28].mxu1 %v1250_v3  ;;  %1143 = vmatprep.mubr.msk.bf16.mxu0 %vm558_vm0, %v1251_v4 }
  0x5d   :  { %1151 = vmatprep.mubr.msk.bf16.mxu1 %vm558_vm0, %v1252_v5 }
  0x63   :  { %1144 = vmatmul.mubr.msk.bf16.vlgmr.msra.gmra.mrb[32].mxu0 %vm558_vm0, %v1253_v6 }
  0x64   :  { %1152 = vmatmul.mubr.msk.bf16.vlgmr.msra.gmra.mrb[32].mxu1 %vm558_vm0, %v1254_v7  ;;  %1147 = vmatprep.mubr.msk.bf16.mxu0 %vm558_vm0, %v1255_v8 }
  0x65   :  { %1155 = vmatprep.mubr.msk.bf16.mxu1 %vm558_vm0, %v1256_v9 }
  0x6b   :  { %1148 = vmatmul.mubr.msk.bf16.gmra.mrb[36].mxu0 %vm558_vm0, %v1257_v10 }
  0x6c   :  { %1156 = vmatmul.mubr.msk.bf16.gmra.mrb[36].mxu1 %vm558_vm0, %v1258_v11 }
  0xf6   :  { %v1011_v12 = vpop.f32.mrb[0].mxu0 }
  0xf7   :  { %v1075_v13 = vpop.f32.mrb[0].mxu1  ;;  %v1012_v15 = vpop.f32.mrb[1].mxu0 }
  0xf8   :  { %v1013_v16 = vadd.f32 %v1012_v15, %v1011_v12  ;;  %v1076_v17 = vpop.f32.mrb[1].mxu1  ;;  %v1014_v18 = vpop.f32.mrb[2].mxu0 }
  0xf9   :  { %v1077_v19 = vadd.f32 %v1076_v17, %v1075_v13  ;;  %v1078_v20 = vpop.f32.mrb[2].mxu1  ;;  %v1015_v21 = vpop.f32.mrb[3].mxu0 }
  0xfa   :  { %v618_v22 = vadd.f32 %v1013_v16, %v1518_v14  ;;  %v1016_v23 = vadd.f32 %v1015_v21, %v1014_v18  ;;  %v1079_v24 = vpop.f32.mrb[3].mxu1 }
  0xfb   :  { %v1080_v25 = vadd.f32 %v1079_v24, %v1078_v20 }
  0xfc   :  { %v621_v26 = vadd.f32 %v1016_v23, %v1518_v14  ;;  %v1522_v27 = vadd.f32 %v1077_v19, %v618_v22 }
  0xfe   :  { %v1017_v28 = vpop.f32.mrb[4].mxu0  ;;  %v1524_v29 = vadd.f32 %v1080_v25, %v621_v26 }
  0xff   :  { %v1081_v30 = vpop.f32.mrb[4].mxu1  ;;  %v1018_v31 = vpop.f32.mrb[5].mxu0 }
 0x100   :  { %v1019_v32 = vadd.f32 %v1018_v31, %v1017_v28  ;;  %v1082_v33 = vpop.f32.mrb[5].mxu1  ;;  %v1020_v34 = vpop.f32.mrb[6].mxu0 }
 0x101   :  { %v1083_v35 = vadd.f32 %v1082_v33, %v1081_v30  ;;  %v1084_v36 = vpop.f32.mrb[6].mxu1  ;;  %v1021_v37 = vpop.f32.mrb[7].mxu0 }
 0x102   :  { %v626_v38 = vadd.f32 %v1019_v32, %v1518_v14  ;;  %v1022_v39 = vadd.f32 %v1021_v37, %v1020_v34  ;;  %v1085_v40 = vpop.f32.mrb[7].mxu1 }
 0x103   :  { %v1086_v41 = vadd.f32 %v1085_v40, %v1084_v36 }
 0x104   :  { %v629_v42 = vadd.f32 %v1022_v39, %v1518_v14  ;;  %v1528_v43 = vadd.f32 %v1083_v35, %v626_v38 }
 0x106   :  { %v1023_v44 = vpop.f32.mrb[8].mxu0  ;;  %v1530_v45 = vadd.f32 %v1086_v41, %v629_v42 }
 0x107   :  { %v1087_v46 = vpop.f32.mrb[8].mxu1  ;;  %v1024_v47 = vpop.f32.mrb[9].mxu0 }
 0x108   :  { %v1025_v48 = vadd.f32 %v1024_v47, %v1023_v44  ;;  %v1088_v49 = vpop.f32.mrb[9].mxu1  ;;  %v1026_v50 = vpop.f32.mrb[10].mxu0 }
 0x109   :  { %v1089_v51 = vadd.f32 %v1088_v49, %v1087_v46  ;;  %v1090_v52 = vpop.f32.mrb[10].mxu1  ;;  %v1027_v53 = vpop.f32.mrb[11].mxu0 }
 0x10a   :  { %v634_v54 = vadd.f32 %v1025_v48, %v1518_v14  ;;  %v1028_v55 = vadd.f32 %v1027_v53, %v1026_v50  ;;  %v1091_v56 = vpop.f32.mrb[11].mxu1 }
 0x10b   :  { %v1092_v57 = vadd.f32 %v1091_v56, %v1090_v52 }
 0x10c   :  { %v637_v58 = vadd.f32 %v1028_v55, %v1518_v14  ;;  %v1534_v59 = vadd.f32 %v1089_v51, %v634_v54 }
 0x10e   :  { %v1029_v60 = vpop.f32.mrb[12].mxu0  ;;  %v1536_v61 = vadd.f32 %v1092_v57, %v637_v58 }
 0x10f   :  { %v1093_v62 = vpop.f32.mrb[12].mxu1  ;;  %v1030_v63 = vpop.f32.mrb[13].mxu0 }
 0x110   :  { %v1031_v0 = vadd.f32 %v1030_v63, %v1029_v60  ;;  %v1094_v1 = vpop.f32.mrb[13].mxu1  ;;  %v1032_v2 = vpop.f32.mrb[14].mxu0 }
 0x111   :  { %v1095_v3 = vadd.f32 %v1094_v1, %v1093_v62  ;;  %v1096_v4 = vpop.f32.mrb[14].mxu1  ;;  %v1033_v5 = vpop.f32.mrb[15].mxu0 }
 0x112   :  { %v642_v6 = vadd.f32 %v1031_v0, %v1518_v14  ;;  %v1034_v7 = vadd.f32 %v1033_v5, %v1032_v2  ;;  %v1097_v8 = vpop.f32.mrb[15].mxu1 }
 0x113   :  { %v1098_v9 = vadd.f32 %v1097_v8, %v1096_v4 }
 0x114   :  { %v645_v10 = vadd.f32 %v1034_v7, %v1518_v14  ;;  %v1540_v11 = vadd.f32 %v1095_v3, %v642_v6 }
 0x116   :  { %v1035_v12 = vpop.f32.mrb[16].mxu0  ;;  %v1542_v13 = vadd.f32 %v1098_v9, %v645_v10 }
 0x117   :  { %v1099_v15 = vpop.f32.mrb[16].mxu1  ;;  %v1036_v16 = vpop.f32.mrb[17].mxu0 }
 0x118   :  { %v1037_v17 = vadd.f32 %v1036_v16, %v1035_v12  ;;  %v1100_v18 = vpop.f32.mrb[17].mxu1  ;;  %v1038_v19 = vpop.f32.mrb[18].mxu0 }
 0x119   :  { %v1101_v20 = vadd.f32 %v1100_v18, %v1099_v15  ;;  %v1102_v21 = vpop.f32.mrb[18].mxu1  ;;  %v1039_v22 = vpop.f32.mrb[19].mxu0 }
 0x11a   :  { %v650_v23 = vadd.f32 %v1037_v17, %v1518_v14  ;;  %v1040_v24 = vadd.f32 %v1039_v22, %v1038_v19  ;;  %v1103_v25 = vpop.f32.mrb[19].mxu1 }
 0x11b   :  { %v1104_v26 = vadd.f32 %v1103_v25, %v1102_v21 }
 0x11c   :  { %v653_v28 = vadd.f32 %v1040_v24, %v1518_v14  ;;  %v747_v30 = vadd.f32 %v1101_v20, %v650_v23 }
 0x11e   :  { %v1041_v31 = vpop.f32.mrb[20].mxu0  ;;  %v1546_v32 = vadd.f32 %v1104_v26, %v653_v28 }
 0x11f   :  { %v1105_v33 = vpop.f32.mrb[20].mxu1  ;;  %v1042_v34 = vpop.f32.mrb[21].mxu0 }
 0x120   :  { %v1043_v35 = vadd.f32 %v1042_v34, %v1041_v31  ;;  %v1106_v36 = vpop.f32.mrb[21].mxu1  ;;  %v1044_v37 = vpop.f32.mrb[22].mxu0 }
 0x121   :  { %v1107_v38 = vadd.f32 %v1106_v36, %v1105_v33  ;;  %v1108_v39 = vpop.f32.mrb[22].mxu1  ;;  %v1045_v40 = vpop.f32.mrb[23].mxu0 }
 0x122   :  { %v658_v41 = vadd.f32 %v1043_v35, %v1518_v14  ;;  %v1046_v42 = vadd.f32 %v1045_v40, %v1044_v37  ;;  %v1109_v44 = vpop.f32.mrb[23].mxu1 }
 0x123   :  { %v1110_v46 = vadd.f32 %v1109_v44, %v1108_v39 }
 0x124   :  { %v661_v47 = vadd.f32 %v1046_v42, %v1518_v14  ;;  %v755_v48 = vadd.f32 %v1107_v38, %v658_v41 }
 0x126   :  { %v1047_v49 = vpop.f32.mrb[24].mxu0  ;;  %v758_v50 = vadd.f32 %v1110_v46, %v661_v47 }
 0x127   :  { %v1111_v51 = vpop.f32.mrb[24].mxu1  ;;  %v1048_v52 = vpop.f32.mrb[25].mxu0 }
 0x128   :  { %v1049_v53 = vadd.f32 %v1048_v52, %v1047_v49  ;;  %v1112_v54 = vpop.f32.mrb[25].mxu1  ;;  %v1050_v55 = vpop.f32.mrb[26].mxu0 }
 0x129   :  { %v1113_v56 = vadd.f32 %v1112_v54, %v1111_v51  ;;  %v1114_v57 = vpop.f32.mrb[26].mxu1  ;;  %v1051_v58 = vpop.f32.mrb[27].mxu0 }
 0x12a   :  { %v666_v60 = vadd.f32 %v1049_v53, %v1518_v14  ;;  %v1052_v62 = vadd.f32 %v1051_v58, %v1050_v55  ;;  %v1115_v63 = vpop.f32.mrb[27].mxu1 }
 0x12b   :  { %v1116_v0 = vadd.f32 %v1115_v63, %v1114_v57 }
 0x12c   :  { %v669_v1 = vadd.f32 %v1052_v62, %v1518_v14  ;;  %v763_v2 = vadd.f32 %v1113_v56, %v666_v60 }
 0x12e   :  { %v1053_v3 = vpop.f32.mrb[28].mxu0  ;;  %v1552_v4 = vadd.f32 %v1116_v0, %v669_v1 }
 0x12f   :  { %v1117_v5 = vpop.f32.mrb[28].mxu1  ;;  %v1054_v6 = vpop.f32.mrb[29].mxu0 }
 0x130   :  { %v1055_v7 = vadd.f32 %v1054_v6, %v1053_v3  ;;  %v1118_v8 = vpop.f32.mrb[29].mxu1  ;;  %v1056_v9 = vpop.f32.mrb[30].mxu0 }
 0x131   :  { %v1119_v10 = vadd.f32 %v1118_v8, %v1117_v5  ;;  %v1120_v12 = vpop.f32.mrb[30].mxu1  ;;  %v1057_v15 = vpop.f32.mrb[31].mxu0 }
 0x132   :  { %v674_v16 = vadd.f32 %v1055_v7, %v1518_v14  ;;  %v1058_v17 = vadd.f32 %v1057_v15, %v1056_v9  ;;  %v1121_v18 = vpop.f32.mrb[31].mxu1 }
 0x133   :  { %v1122_v19 = vadd.f32 %v1121_v18, %v1120_v12 }
 0x134   :  { %v677_v20 = vadd.f32 %v1058_v17, %v1518_v14  ;;  %v771_v21 = vadd.f32 %v1119_v10, %v674_v16 }
 0x136   :  { %v1145_v22 = vpop.f32.mrb[32].mxu0  ;;  %v774_v23 = vadd.f32 %v1122_v19, %v677_v20 }
 0x137   :  { %v820_v24 = vadd.f32 %v1145_v22, %v1528_v43  ;;  %v1153_v25 = vpop.f32.mrb[32].mxu1  ;;  %v811_v26 = vpop.f32.mrb[33].mxu0 }
 0x138   :  { %v852_v28 = vadd.f32 %v1153_v25, %v755_v48  ;;  %v812_v31 = vadd.f32 %v811_v26, %v1522_v27  ;;  %v843_v33 = vpop.f32.mrb[33].mxu1  ;;  %v1146_v34 = vpop.f32.mrb[34].mxu0 }
 0x139   :  { %v876_v35 = vmax.f32 %v820_v24, 0.0  ;;  %v844_v36 = vadd.f32 %v843_v33, %v747_v30  ;;  %v823_v37 = vadd.f32 %v1146_v34, %v1530_v45  ;;  %v1154_v38 = vpop.f32.mrb[34].mxu1  ;;  %v814_v39 = vpop.f32.mrb[35].mxu0 }
 0x13a   :  { %v884_v40 = vmax.f32 %v852_v28, 0.0  ;;  %v874_v14 = vmax.f32 %v812_v31, 0.0  ;;  %v855_v41 = vadd.f32 %v1154_v38, %v758_v50  ;;  %v815_v42 = vadd.f32 %v814_v39, %v1524_v29  ;;  %v846_v44 = vpop.f32.mrb[35].mxu1 }
 0x13b   :  { %892 = vst [vmem:[%s1617_s3 + $0x10] sm:$0xff] %v876_v35  ;;  %v882_v43 = vmax.f32 %v844_v36, 0.0  ;;  %v877_v27 = vmax.f32 %v823_v37, 0.0  ;;  %v847_v46 = vadd.f32 %v846_v44, %v1546_v32 }
 0x13c   :  { %900 = vst [vmem:[%s1617_s3 + $0x50] sm:$0xff] %v884_v40  ;;  %890 = vst [vmem:[%s1617_s3] sm:$0xff] %v874_v14  ;;  %v885_v45 = vmax.f32 %v855_v41, 0.0  ;;  %v875_v30 = vmax.f32 %v815_v42, 0.0 }
 0x13d   :  { %898 = vst [vmem:[%s1617_s3 + $0x40] sm:$0xff] %v882_v43  ;;  %893 = vst [vmem:[%s1617_s3 + $0x18] sm:$0xff] %v877_v27  ;;  %v883_v29 = vmax.f32 %v847_v46, 0.0 }
 0x13e   :  { %901 = vst [vmem:[%s1617_s3 + $0x58] sm:$0xff] %v885_v45  ;;  %891 = vst [vmem:[%s1617_s3 + $0x8] sm:$0xff] %v875_v30  ;;  %v1149_v32 = vpop.f32.mrb[36].mxu0 }
 0x13f   :  { %899 = vst [vmem:[%s1617_s3 + $0x48] sm:$0xff] %v883_v29  ;;  %v836_v47 = vadd.f32 %v1149_v32, %v1540_v11  ;;  %v1157_v48 = vpop.f32.mrb[36].mxu1  ;;  %v827_v49 = vpop.f32.mrb[37].mxu0 }
 0x140   :  { %v868_v50 = vadd.f32 %v1157_v48, %v771_v21  ;;  %v828_v51 = vadd.f32 %v827_v49, %v1534_v59  ;;  %v859_v52 = vpop.f32.mrb[37].mxu1  ;;  %v1150_v53 = vpop.f32.mrb[38].mxu0 }
 0x141   :  { %v880_v54 = vmax.f32 %v836_v47, 0.0  ;;  %v860_v55 = vadd.f32 %v859_v52, %v763_v2  ;;  %v839_v56 = vadd.f32 %v1150_v53, %v1542_v13  ;;  %v1158_v57 = vpop.f32.mrb[38].mxu1  ;;  %v830_v58 = vpop.f32.mrb[39].mxu0 }
 0x142   :  { %v888_v60 = vmax.f32 %v868_v50, 0.0  ;;  %v878_v62 = vmax.f32 %v828_v51, 0.0  ;;  %v871_v63 = vadd.f32 %v1158_v57, %v774_v23  ;;  %v831_v0 = vadd.f32 %v830_v58, %v1536_v61  ;;  %v862_v1 = vpop.f32.mrb[39].mxu1 }
 0x143   :  { %896 = vst [vmem:[%s1617_s3 + $0x30] sm:$0xff] %v880_v54  ;;  %v886_v11 = vmax.f32 %v860_v55, 0.0  ;;  %v881_v59 = vmax.f32 %v839_v56, 0.0  ;;  %v863_v3 = vadd.f32 %v862_v1, %v1552_v4 }
 0x144   :  { %904 = vst [vmem:[%s1617_s3 + $0x70] sm:$0xff] %v888_v60  ;;  %894 = vst [vmem:[%s1617_s3 + $0x20] sm:$0xff] %v878_v62  ;;  %v889_v13 = vmax.f32 %v871_v63, 0.0  ;;  %v879_v2 = vmax.f32 %v831_v0, 0.0 }
 0x145   :  { %902 = vst [vmem:[%s1617_s3 + $0x60] sm:$0xff] %v886_v11  ;;  %897 = vst [vmem:[%s1617_s3 + $0x38] sm:$0xff] %v881_v59  ;;  %v887_v61 = vmax.f32 %v863_v3, 0.0 }
 0x146   :  { %905 = vst [vmem:[%s1617_s3 + $0x78] sm:$0xff] %v889_v13  ;;  %895 = vst [vmem:[%s1617_s3 + $0x28] sm:$0xff] %v879_v2 }
 0x147   :  { %903 = vst [vmem:[%s1617_s3 + $0x68] sm:$0xff] %v887_v61 }

// kernel: vae_cifar_forward.13
= control target key start
LH: loop header
LB: loop body
LE: loop exit
PB: predicated region body
PF: predicated region fallthrough
CT: control target
= control target key end

     0   :  { %v2650_v0 = vmov 0   ;;  %vm774_vm0 = vcmask 261120   ;;  %s3499_s1 = inlined_call_operand.vmem [shape: bf16[288,128], index: 1, kind: input, shape index: {}]   ;;  %s3500_s0 = inlined_call_operand.vmem [shape: bf16[512,288], index: 0, kind: input, shape index: {}]   ;;  %s3501_s2 = inlined_call_operand.vmem [shape: f32[1,128], index: 2, kind: input, shape index: {}]   ;;  %s3502_s3 = inlined_call_operand.vmem [shape: f32[512,128], index: 3, kind: output, shape index: {}]  }
   0x1   :  { %871 = vmatprep.subr.bf16.mxu0 %v2650_v0  ;;  %2214 = vmatprep.subr.bf16.mxu1 %v2650_v0  ;;  %v2247_v1 = vld [vmem:[%s3499_s1] sm:$0xff]   ;;  %v2248_v2 = vld [vmem:[%s3499_s1 + $0x8] sm:$0xff]   ;;  %v2249_v3 = vld [vmem:[%s3499_s1 + $0x10] sm:$0xff]  }
   0x2   :  { %872 = vmatpush1.bf16.msra.mxu0 %v2247_v1  ;;  %2230 = vmatpush1.bf16.msra.mxu1 %v2247_v1  ;;  %v2250_v4 = vld [vmem:[%s3499_s1 + $0x18] sm:$0xff]   ;;  %v2251_v5 = vld [vmem:[%s3499_s1 + $0x20] sm:$0xff]   ;;  %v2252_v7 = vld [vmem:[%s3499_s1 + $0x28] sm:$0xff]  }
   0x3   :  { %873 = vmatprep.subr.bf16.mxu0 %v2650_v0  ;;  %2215 = vmatprep.subr.bf16.mxu1 %v2650_v0  ;;  %v2265_v6 = vld [vmem:[%s3500_s0 + $0x4] ss:$12 sps:$4 sm:$0xff]   ;;  %v2254_v10 = vld [vmem:[%s3499_s1 + $0x38] sm:$0xff]   ;;  %v2256_v12 = vld [vmem:[%s3499_s1 + $0x48] sm:$0xff]  }
   0x4   :  { %v2268_v8 = vld [vmem:[%s3500_s0 + $0x244] ss:$12 sps:$4 sm:$0xff]   ;;  %903 = vmatprep.mubr.bf16.mxu0 %v2265_v6  ;;  %v2258_v14 = vld [vmem:[%s3499_s1 + $0x58] sm:$0xff]   ;;  %v2260_v16 = vld [vmem:[%s3499_s1 + $0x68] sm:$0xff]  }
   0x5   :  { %1095 = vmatprep.mubr.bf16.mxu1 %v2268_v8  ;;  %v2253_v9 = vld [vmem:[%s3499_s1 + $0x30] sm:$0xff]   ;;  %v2255_v11 = vld [vmem:[%s3499_s1 + $0x40] sm:$0xff]   ;;  %v2262_v18 = vld [vmem:[%s3499_s1 + $0x78] sm:$0xff]  }
   0x6   :  { %874 = vmatpush1.bf16.msra.mxu0 %v2248_v2  ;;  %2231 = vmatpush1.bf16.msra.mxu1 %v2248_v2  ;;  %v2257_v13 = vld [vmem:[%s3499_s1 + $0x50] sm:$0xff]   ;;  %v2259_v15 = vld [vmem:[%s3499_s1 + $0x60] sm:$0xff]   ;;  %v2270_v22 = vld [vmem:[%s3500_s0 + $0x1c] ss:$12 sps:$4 sm:$0xff]  }
   0x7   :  { %875 = vmatprep.subr.bf16.mxu0 %v2650_v0  ;;  %2216 = vmatprep.subr.bf16.mxu1 %v2650_v0  ;;  %v2261_v17 = vld [vmem:[%s3499_s1 + $0x70] sm:$0xff]   ;;  %v2269_v19 = vld [vmem:[%s3499_s1 + $0x80] sm:$0xff]   ;;  %v2272_v23 = vld [vmem:[%s3500_s0 + $0x25c] ss:$12 sps:$4 sm:$0xff]  }
   0x8   :  { %v2263_v20 = vld [vmem:[%s3500_s0] ss:$12 sps:$4 sm:$0xff]   ;;  %v2274_v25 = vld [vmem:[%s3500_s0 + $0x18] ss:$12 sps:$4 sm:$0xff]   ;;  %v2280_v29 = vld [vmem:[%s3500_s0 + $0x30] ss:$12 sps:$4 sm:$0xff]  }
   0x9   :  { %v2266_v21 = vld [vmem:[%s3500_s0 + $0x240] ss:$12 sps:$4 sm:$0xff]   ;;  %v2275_v26 = vld [vmem:[%s3500_s0 + $0x258] ss:$12 sps:$4 sm:$0xff]   ;;  %v2281_v30 = vld [vmem:[%s3500_s0 + $0x270] ss:$12 sps:$4 sm:$0xff]  }
   0xa   :  { %876 = vmatpush1.bf16.msra.mxu0 %v2249_v3  ;;  %2232 = vmatpush1.bf16.msra.mxu1 %v2249_v3  ;;  %v2294_v24 = vld [vmem:[%s3499_s1 + $0x88] sm:$0xff]   ;;  %v2276_v27 = vld [vmem:[%s3500_s0 + $0x34] ss:$12 sps:$4 sm:$0xff]   ;;  %v2288_v35 = vld [vmem:[%s3500_s0 + $0x64] ss:$12 sps:$4 sm:$0xff]  }
   0xb   :  { %877 = vmatprep.subr.bf16.mxu0 %v2650_v0  ;;  %2217 = vmatprep.subr.bf16.mxu1 %v2650_v0  ;;  %v2278_v28 = vld [vmem:[%s3500_s0 + $0x274] ss:$12 sps:$4 sm:$0xff]   ;;  %v2282_v31 = vld [vmem:[%s3500_s0 + $0x4c] ss:$12 sps:$4 sm:$0xff]   ;;  %v2290_v36 = vld [vmem:[%s3500_s0 + $0x2a4] ss:$12 sps:$4 sm:$0xff]  }
   0xc   :  { %v2284_v32 = vld [vmem:[%s3500_s0 + $0x28c] ss:$12 sps:$4 sm:$0xff]   ;;  %v2286_v33 = vld [vmem:[%s3500_s0 + $0x48] ss:$12 sps:$4 sm:$0xff]   ;;  %v2305_v45 = vld [vmem:[%s3500_s0 + $0x90] ss:$12 sps:$4 sm:$0xff]  }
   0xd   :  { %v2287_v34 = vld [vmem:[%s3500_s0 + $0x288] ss:$12 sps:$4 sm:$0xff]   ;;  %v2292_v37 = vld [vmem:[%s3500_s0 + $0x60] ss:$12 sps:$4 sm:$0xff]   ;;  %v2299_v41 = vld [vmem:[%s3500_s0 + $0x78] ss:$12 sps:$4 sm:$0xff]  }
   0xe   :  { %878 = vmatpush1.bf16.msra.mxu0 %v2250_v4  ;;  %2233 = vmatpush1.bf16.msra.mxu1 %v2250_v4  ;;  %v2293_v38 = vld [vmem:[%s3500_s0 + $0x2a0] ss:$12 sps:$4 sm:$0xff]   ;;  %v2295_v39 = vld [vmem:[%s3500_s0 + $0x7c] ss:$12 sps:$4 sm:$0xff]   ;;  %v2300_v42 = vld [vmem:[%s3500_s0 + $0x2b8] ss:$12 sps:$4 sm:$0xff]  }
   0xf   :  { %879 = vmatprep.subr.bf16.mxu0 %v2650_v0  ;;  %2218 = vmatprep.subr.bf16.mxu1 %v2650_v0  ;;  %v2297_v40 = vld [vmem:[%s3500_s0 + $0x2bc] ss:$12 sps:$4 sm:$0xff]   ;;  %v2301_v43 = vld [vmem:[%s3500_s0 + $0x94] ss:$12 sps:$4 sm:$0xff]   ;;  %v2307_v47 = vld [vmem:[%s3500_s0 + $0xac] ss:$12 sps:$4 sm:$0xff]  }
  0x10   :  { %v2303_v44 = vld [vmem:[%s3500_s0 + $0x2d4] ss:$12 sps:$4 sm:$0xff]   ;;  %v2306_v46 = vld [vmem:[%s3500_s0 + $0x2d0] ss:$12 sps:$4 sm:$0xff]   ;;  %v2309_v48 = vld [vmem:[%s3500_s0 + $0x2ec] ss:$12 sps:$4 sm:$0xff]  }
  0x11   :  { %v2311_v49 = vld [vmem:[%s3500_s0 + $0xa8] ss:$12 sps:$4 sm:$0xff]   ;;  %v2313_v51 = vld [vmem:[%s3500_s0 + $0xc4] ss:$12 sps:$4 sm:$0xff]   ;;  %v2316_v53 = vld [vmem:[%s3500_s0 + $0xc0] ss:$12 sps:$4 sm:$0xff]  }
  0x12   :  { %880 = vmatpush1.bf16.msra.mxu0 %v2251_v5  ;;  %2234 = vmatpush1.bf16.msra.mxu1 %v2251_v5  ;;  %v2312_v50 = vld [vmem:[%s3500_s0 + $0x2e8] ss:$12 sps:$4 sm:$0xff]   ;;  %v2317_v54 = vld [vmem:[%s3500_s0 + $0x20] ss:$12 sps:$4 sm:$0xff]   ;;  %v2320_v56 = vld [vmem:[%s3500_s0 + $0x38] ss:$12 sps:$4 sm:$0xff]  }
  0x13   :  { %881 = vmatprep.subr.bf16.mxu0 %v2650_v0  ;;  %2219 = vmatprep.subr.bf16.mxu1 %v2650_v0  ;;  %v2315_v52 = vld [vmem:[%s3500_s0 + $0x8] ss:$12 sps:$4 sm:$0xff]   ;;  %v2321_v57 = vld [vmem:[%s3500_s0 + $0xd8] ss:$12 sps:$4 sm:$0xff]   ;;  %v2322_v58 = vld [vmem:[%s3500_s0 + $0x50] ss:$12 sps:$4 sm:$0xff]  }
  0x14   :  { %v2318_v55 = vld [vmem:[%s3500_s0 + $0xdc] ss:$12 sps:$4 sm:$0xff]   ;;  %v2323_v59 = vld [vmem:[%s3500_s0 + $0xf4] ss:$12 sps:$4 sm:$0xff]   ;;  %v2328_v63 = vld [vmem:[%s3500_s0 + $0x10c] ss:$12 sps:$4 sm:$0xff]  }
  0x15   :  { %v2325_v60 = vld [vmem:[%s3500_s0 + $0x68] ss:$12 sps:$4 sm:$0xff]   ;;  %v2326_v61 = vld [vmem:[%s3500_s0 + $0xf0] ss:$12 sps:$4 sm:$0xff]   ;;  %v2327_v62 = vld [vmem:[%s3500_s0 + $0x80] ss:$12 sps:$4 sm:$0xff]  }
  0x16   :  { %882 = vmatpush1.bf16.msra.mxu0 %v2252_v7  ;;  %2235 = vmatpush1.bf16.msra.mxu1 %v2252_v7  ;;  %v2331_v1 = vld [vmem:[%s3500_s0 + $0x108] ss:$12 sps:$4 sm:$0xff]   ;;  %v2332_v2 = vld [vmem:[%s3500_s0 + $0xb0] ss:$12 sps:$4 sm:$0xff]   ;;  %v2336_v5 = vld [vmem:[%s3500_s0 + $0x120] ss:$12 sps:$4 sm:$0xff]  }
  0x17   :  { %883 = vmatprep.subr.bf16.mxu0 %v2650_v0  ;;  %2220 = vmatprep.subr.bf16.mxu1 %v2650_v0  ;;  %v2333_v3 = vld [vmem:[%s3500_s0 + $0x124] ss:$12 sps:$4 sm:$0xff]   ;;  %v2335_v4 = vld [vmem:[%s3500_s0 + $0xc8] ss:$12 sps:$4 sm:$0xff]   ;;  %v2337_v6 = vld [vmem:[%s3500_s0 + $0xe0] ss:$12 sps:$4 sm:$0xff]  }
  0x18   :  { %v2338_v7 = vld [vmem:[%s3500_s0 + $0x13c] ss:$12 sps:$4 sm:$0xff]   ;;  %v2340_v8 = vld [vmem:[%s3500_s0 + $0xf8] ss:$12 sps:$4 sm:$0xff]  }
  0x1a   :  { %884 = vmatpush1.bf16.msra.mxu0 %v2253_v9  ;;  %2236 = vmatpush1.bf16.msra.mxu1 %v2253_v9  ;;  %v2341_v9 = vld [vmem:[%s3500_s0 + $0x138] ss:$12 sps:$4 sm:$0xff]  }
  0x1b   :  { %885 = vmatprep.subr.bf16.mxu0 %v2650_v0  ;;  %2221 = vmatprep.subr.bf16.mxu1 %v2650_v0 }
  0x1e   :  { %886 = vmatpush1.bf16.msra.mxu0 %v2254_v10  ;;  %2237 = vmatpush1.bf16.msra.mxu1 %v2254_v10  ;;  %v2342_v10 = vld [vmem:[%s3500_s0 + $0x110] ss:$12 sps:$4 sm:$0xff]  }
  0x1f   :  { %887 = vmatprep.subr.bf16.mxu0 %v2650_v0  ;;  %2222 = vmatprep.subr.bf16.mxu1 %v2650_v0 }
  0x22   :  { %888 = vmatpush1.bf16.msra.mxu0 %v2255_v11  ;;  %2238 = vmatpush1.bf16.msra.mxu1 %v2255_v11  ;;  %v2343_v11 = vld [vmem:[%s3500_s0 + $0x154] ss:$12 sps:$4 sm:$0xff]  }
  0x23   :  { %889 = vmatprep.subr.bf16.mxu0 %v2650_v0  ;;  %2223 = vmatprep.subr.bf16.mxu1 %v2650_v0 }
  0x26   :  { %890 = vmatpush1.bf16.msra.mxu0 %v2256_v12  ;;  %2239 = vmatpush1.bf16.msra.mxu1 %v2256_v12  ;;  %v2345_v12 = vld [vmem:[%s3500_s0 + $0x128] ss:$12 sps:$4 sm:$0xff]  }
  0x27   :  { %891 = vmatprep.subr.bf16.mxu0 %v2650_v0  ;;  %2224 = vmatprep.subr.bf16.mxu1 %v2650_v0 }
  0x2a   :  { %892 = vmatpush1.bf16.msra.mxu0 %v2257_v13  ;;  %2240 = vmatpush1.bf16.msra.mxu1 %v2257_v13  ;;  %v2346_v13 = vld [vmem:[%s3500_s0 + $0x150] ss:$12 sps:$4 sm:$0xff]  }
  0x2b   :  { %893 = vmatprep.subr.bf16.mxu0 %v2650_v0  ;;  %2225 = vmatprep.subr.bf16.mxu1 %v2650_v0 }
  0x2e   :  { %894 = vmatpush1.bf16.msra.mxu0 %v2258_v14  ;;  %2241 = vmatpush1.bf16.msra.mxu1 %v2258_v14  ;;  %v2347_v14 = vld [vmem:[%s3500_s0 + $0x140] ss:$12 sps:$4 sm:$0xff]  }
  0x2f   :  { %895 = vmatprep.subr.bf16.mxu0 %v2650_v0  ;;  %2226 = vmatprep.subr.bf16.mxu1 %v2650_v0 }
  0x32   :  { %896 = vmatpush1.bf16.msra.mxu0 %v2259_v15  ;;  %2242 = vmatpush1.bf16.msra.mxu1 %v2259_v15  ;;  %v2348_v15 = vld [vmem:[%s3500_s0 + $0x16c] ss:$12 sps:$4 sm:$0xff]  }
  0x33   :  { %897 = vmatprep.subr.bf16.mxu0 %v2650_v0  ;;  %2227 = vmatprep.subr.bf16.mxu1 %v2650_v0 }
  0x36   :  { %898 = vmatpush1.bf16.msra.mxu0 %v2260_v16  ;;  %2243 = vmatpush1.bf16.msra.mxu1 %v2260_v16  ;;  %v2350_v16 = vld [vmem:[%s3500_s0 + $0x158] ss:$12 sps:$4 sm:$0xff]  }
  0x37   :  { %899 = vmatprep.subr.bf16.mxu0 %v2650_v0  ;;  %2228 = vmatprep.subr.bf16.mxu1 %v2650_v0 }
  0x3a   :  { %900 = vmatpush1.bf16.msra.mxu0 %v2261_v17  ;;  %2244 = vmatpush1.bf16.msra.mxu1 %v2261_v17  ;;  %v2351_v17 = vld [vmem:[%s3500_s0 + $0x168] ss:$12 sps:$4 sm:$0xff]  }
  0x3b   :  { %901 = vmatprep.subr.bf16.mxu0 %v2650_v0  ;;  %2229 = vmatprep.subr.bf16.mxu1 %v2650_v0  ;;  %v2330_v0 = vld [vmem:[%s3500_s0 + $0x98] ss:$12 sps:$4 sm:$0xff]  }
  0x3e   :  { %902 = vmatpush1.bf16.msra.mxu0 %v2262_v18  ;;  %2245 = vmatpush1.bf16.msra.mxu1 %v2262_v18  ;;  %v2352_v18 = vld [vmem:[%s3500_s0 + $0x170] ss:$12 sps:$4 sm:$0xff]  }
  0x3f   :  { %2146 = vmatprep.subr.bf16.mxu1 %v2269_v19 }
  0x41   :  { %904 = vmatmul.mubr.bf16.vlgmr.msra.gmra.mrb[0].mxu0 %v2263_v20  ;;  %1096 = vmatmul.mubr.bf16.vlgmr.msra.gmra.mrb[0].mxu1 %v2266_v21  ;;  %v2355_v20 = vld [vmem:[%s3500_s0 + $0x188] ss:$12 sps:$4 sm:$0xff]   ;;  %v2356_v21 = vld [vmem:[%s3500_s0 + $0x180] ss:$12 sps:$4 sm:$0xff]  }
  0x42   :  { %2147 = vmatpush3.bf16.msra.mxu1 %v2269_v19  ;;  %911 = vmatprep.mubr.bf16.mxu0 %v2270_v22  ;;  %v2353_v19 = vld [vmem:[%s3500_s0 + $0x184] ss:$12 sps:$4 sm:$0xff]   ;;  %v2357_v22 = vld [vmem:[%s3500_s0 + $0x1a0] ss:$12 sps:$4 sm:$0xff]  }
  0x43   :  { %1103 = vmatprep.mubr.bf16.mxu1 %v2272_v23  ;;  %2148 = vmatprep.subr.bf16.mxu1 %v2294_v24  ;;  %v2358_v23 = vld [vmem:[%s3500_s0 + $0x19c] ss:$12 sps:$4 sm:$0xff]  }
  0x46   :  { %2149 = vmatpush3.bf16.msra.mxu1 %v2294_v24  ;;  %v2360_v24 = vld [vmem:[%s3500_s0 + $0x1b8] ss:$12 sps:$4 sm:$0xff]  }
  0x49   :  { %912 = vmatmul.mubr.bf16.gmra.mrb[4].mxu0 %v2274_v25  ;;  %1104 = vmatmul.mubr.bf16.gmra.mrb[4].mxu1 %v2275_v26  ;;  %v2361_v25 = vld [vmem:[%s3500_s0 + $0x198] ss:$12 sps:$4 sm:$0xff]   ;;  %v2362_v26 = vld [vmem:[%s3500_s0 + $0x1d0] ss:$12 sps:$4 sm:$0xff]  }
  0x4a   :  { %919 = vmatprep.mubr.bf16.mxu0 %v2276_v27  ;;  %1111 = vmatprep.mubr.bf16.mxu1 %v2278_v28  ;;  %v2363_v27 = vld [vmem:[%s3500_s0 + $0x1b4] ss:$12 sps:$4 sm:$0xff]  }
  0x4b   :  { %v2365_v28 = vld [vmem:[%s3500_s0 + $0x1e8] ss:$12 sps:$4 sm:$0xff]  }
  0x51   :  { %920 = vmatmul.mubr.bf16.gmra.mrb[8].mxu0 %v2280_v29  ;;  %1112 = vmatmul.mubr.bf16.gmra.mrb[8].mxu1 %v2281_v30  ;;  %v2366_v29 = vld [vmem:[%s3500_s0 + $0x1b0] ss:$12 sps:$4 sm:$0xff]   ;;  %v2367_v30 = vld [vmem:[%s3500_s0 + $0x200] ss:$12 sps:$4 sm:$0xff]  }
  0x52   :  { %927 = vmatprep.mubr.bf16.mxu0 %v2282_v31  ;;  %1119 = vmatprep.mubr.bf16.mxu1 %v2284_v32  ;;  %v2368_v31 = vld [vmem:[%s3500_s0 + $0x1cc] ss:$12 sps:$4 sm:$0xff]  }
  0x53   :  { %v2370_v32 = vld [vmem:[%s3500_s0 + $0x218] ss:$12 sps:$4 sm:$0xff]  }
  0x59   :  { %928 = vmatmul.mubr.bf16.gmra.mrb[12].mxu0 %v2286_v33  ;;  %1120 = vmatmul.mubr.bf16.gmra.mrb[12].mxu1 %v2287_v34  ;;  %v2371_v33 = vld [vmem:[%s3500_s0 + $0x1c8] ss:$12 sps:$4 sm:$0xff]   ;;  %v2372_v34 = vld [vmem:[%s3500_s0 + $0x230] ss:$12 sps:$4 sm:$0xff]  }
  0x5a   :  { %935 = vmatprep.mubr.bf16.mxu0 %v2288_v35  ;;  %1127 = vmatprep.mubr.bf16.mxu1 %v2290_v36  ;;  %v2373_v35 = vld [vmem:[%s3500_s0 + $0x1e4] ss:$12 sps:$4 sm:$0xff]   ;;  %v2375_v36 = vld [vmem:[%s3500_s0 + $0x248] ss:$12 sps:$4 sm:$0xff]  }
  0x61   :  { %936 = vmatmul.mubr.bf16.gmra.mrb[16].mxu0 %v2292_v37  ;;  %1128 = vmatmul.mubr.bf16.gmra.mrb[16].mxu1 %v2293_v38  ;;  %v2376_v37 = vld [vmem:[%s3500_s0 + $0x1e0] ss:$12 sps:$4 sm:$0xff]  }
  0x62   :  { %943 = vmatprep.mubr.bf16.mxu0 %v2295_v39  ;;  %1135 = vmatprep.mubr.bf16.mxu1 %v2297_v40  ;;  %v2377_v38 = vld [vmem:[%s3500_s0 + $0x260] ss:$12 sps:$4 sm:$0xff]   ;;  %v2378_v39 = vld [vmem:[%s3500_s0 + $0x1fc] ss:$12 sps:$4 sm:$0xff]   ;;  %v2380_v40 = vld [vmem:[%s3500_s0 + $0x278] ss:$12 sps:$4 sm:$0xff]  }
  0x69   :  { %944 = vmatmul.mubr.bf16.gmra.mrb[20].mxu0 %v2299_v41  ;;  %1136 = vmatmul.mubr.bf16.gmra.mrb[20].mxu1 %v2300_v42  ;;  %v2381_v41 = vld [vmem:[%s3500_s0 + $0x1f8] ss:$12 sps:$4 sm:$0xff]   ;;  %v2382_v42 = vld [vmem:[%s3500_s0 + $0x290] ss:$12 sps:$4 sm:$0xff]  }
  0x6a   :  { %951 = vmatprep.mubr.bf16.mxu0 %v2301_v43  ;;  %1143 = vmatprep.mubr.bf16.mxu1 %v2303_v44  ;;  %v2383_v43 = vld [vmem:[%s3500_s0 + $0x214] ss:$12 sps:$4 sm:$0xff]  }
  0x6b   :  { %v2385_v44 = vld [vmem:[%s3500_s0 + $0x2a8] ss:$12 sps:$4 sm:$0xff]  }
  0x71   :  { %952 = vmatmul.mubr.bf16.gmra.mrb[24].mxu0 %v2305_v45  ;;  %1144 = vmatmul.mubr.bf16.gmra.mrb[24].mxu1 %v2306_v46  ;;  %v2386_v45 = vld [vmem:[%s3500_s0 + $0x210] ss:$12 sps:$4 sm:$0xff]   ;;  %v2387_v46 = vld [vmem:[%s3500_s0 + $0x2c0] ss:$12 sps:$4 sm:$0xff]  }
  0x72   :  { %959 = vmatprep.mubr.bf16.mxu0 %v2307_v47  ;;  %1151 = vmatprep.mubr.bf16.mxu1 %v2309_v48  ;;  %v2388_v47 = vld [vmem:[%s3500_s0 + $0x22c] ss:$12 sps:$4 sm:$0xff]  }
  0x73   :  { %v2390_v48 = vld [vmem:[%s3500_s0 + $0x2d8] ss:$12 sps:$4 sm:$0xff]  }
  0x79   :  { %960 = vmatmul.mubr.bf16.gmra.mrb[28].mxu0 %v2311_v49  ;;  %1152 = vmatmul.mubr.bf16.gmra.mrb[28].mxu1 %v2312_v50  ;;  %v2391_v49 = vld [vmem:[%s3500_s0 + $0x228] ss:$12 sps:$4 sm:$0xff]   ;;  %v2392_v50 = vld [vmem:[%s3500_s0 + $0x2f0] ss:$12 sps:$4 sm:$0xff]  }
  0x7a   :  { %967 = vmatprep.mubr.bf16.mxu0 %v2313_v51  ;;  %2150 = vmatprep.mubr.msk.bf16.mxu1 %vm774_vm0, %v2315_v52 }
  0x81   :  { %968 = vmatmul.mubr.bf16.gmra.mrb[32].mxu0 %v2316_v53  ;;  %2151 = vmatmul.mubr.msk.bf16.vlgmr.msra.gmra.mrb[32].mxu1 %vm774_vm0, %v2317_v54 }
  0x82   :  { %975 = vmatprep.mubr.bf16.mxu0 %v2318_v55  ;;  %2154 = vmatprep.mubr.msk.bf16.mxu1 %vm774_vm0, %v2320_v56 }
  0x89   :  { %976 = vmatmul.mubr.bf16.gmra.mrb[36].mxu0 %v2321_v57  ;;  %2155 = vmatmul.mubr.msk.bf16.gmra.mrb[36].mxu1 %vm774_vm0, %v2322_v58 }
  0x8a   :  { %983 = vmatprep.mubr.bf16.mxu0 %v2323_v59  ;;  %2158 = vmatprep.mubr.msk.bf16.mxu1 %vm774_vm0, %v2325_v60 }
  0x91   :  { %984 = vmatmul.mubr.bf16.gmra.mrb[40].mxu0 %v2326_v61  ;;  %2159 = vmatmul.mubr.msk.bf16.gmra.mrb[40].mxu1 %vm774_vm0, %v2327_v62 }
  0x92   :  { %991 = vmatprep.mubr.bf16.mxu0 %v2328_v63  ;;  %2162 = vmatprep.mubr.msk.bf16.mxu1 %vm774_vm0, %v2330_v0 }
  0x99   :  { %992 = vmatmul.mubr.bf16.gmra.mrb[44].mxu0 %v2331_v1  ;;  %2163 = vmatmul.mubr.msk.bf16.gmra.mrb[44].mxu1 %vm774_vm0, %v2332_v2 }
  0x9a   :  { %999 = vmatprep.mubr.bf16.mxu0 %v2333_v3  ;;  %2166 = vmatprep.mubr.msk.bf16.mxu1 %vm774_vm0, %v2335_v4 }
  0xa1   :  { %1000 = vmatmul.mubr.bf16.gmra.mrb[48].mxu0 %v2336_v5  ;;  %2167 = vmatmul.mubr.msk.bf16.gmra.mrb[48].mxu1 %vm774_vm0, %v2337_v6 }
  0xa2   :  { %1007 = vmatprep.mubr.bf16.mxu0 %v2338_v7  ;;  %2170 = vmatprep.mubr.msk.bf16.mxu1 %vm774_vm0, %v2340_v8 }
  0xa9   :  { %1008 = vmatmul.mubr.bf16.gmra.mrb[52].mxu0 %v2341_v9  ;;  %2171 = vmatmul.mubr.msk.bf16.gmra.mrb[52].mxu1 %vm774_vm0, %v2342_v10 }
  0xaa   :  { %1015 = vmatprep.mubr.bf16.mxu0 %v2343_v11  ;;  %2174 = vmatprep.mubr.msk.bf16.mxu1 %vm774_vm0, %v2345_v12 }
  0xb1   :  { %1016 = vmatmul.mubr.bf16.gmra.mrb[56].mxu0 %v2346_v13  ;;  %2175 = vmatmul.mubr.msk.bf16.gmra.mrb[56].mxu1 %vm774_vm0, %v2347_v14 }
  0xb2   :  { %1023 = vmatprep.mubr.bf16.mxu0 %v2348_v15  ;;  %2178 = vmatprep.mubr.msk.bf16.mxu1 %vm774_vm0, %v2350_v16 }
  0xb9   :  { %1024 = vmatmul.mubr.bf16.gmra.mrb[60].mxu0 %v2351_v17  ;;  %2179 = vmatmul.mubr.msk.bf16.gmra.mrb[60].mxu1 %vm774_vm0, %v2352_v18 }
  0xba   :  { %1031 = vmatprep.mubr.bf16.mxu0 %v2353_v19  ;;  %2182 = vmatprep.mubr.msk.bf16.mxu1 %vm774_vm0, %v2355_v20 }
  0xc1   :  { %1032 = vmatmul.mubr.bf16.gmra.mrb[64].mxu0 %v2356_v21  ;;  %2183 = vmatmul.mubr.msk.bf16.gmra.mrb[64].mxu1 %vm774_vm0, %v2357_v22 }
  0xc2   :  { %1039 = vmatprep.mubr.bf16.mxu0 %v2358_v23  ;;  %2186 = vmatprep.mubr.msk.bf16.mxu1 %vm774_vm0, %v2360_v24 }
  0xc9   :  { %1040 = vmatmul.mubr.bf16.gmra.mrb[68].mxu0 %v2361_v25  ;;  %2187 = vmatmul.mubr.msk.bf16.gmra.mrb[68].mxu1 %vm774_vm0, %v2362_v26 }
  0xca   :  { %1047 = vmatprep.mubr.bf16.mxu0 %v2363_v27  ;;  %2190 = vmatprep.mubr.msk.bf16.mxu1 %vm774_vm0, %v2365_v28 }
  0xd1   :  { %1048 = vmatmul.mubr.bf16.gmra.mrb[72].mxu0 %v2366_v29  ;;  %2191 = vmatmul.mubr.msk.bf16.gmra.mrb[72].mxu1 %vm774_vm0, %v2367_v30 }
  0xd2   :  { %1055 = vmatprep.mubr.bf16.mxu0 %v2368_v31  ;;  %2194 = vmatprep.mubr.msk.bf16.mxu1 %vm774_vm0, %v2370_v32 }
  0xd9   :  { %1056 = vmatmul.mubr.bf16.gmra.mrb[76].mxu0 %v2371_v33  ;;  %2195 = vmatmul.mubr.msk.bf16.gmra.mrb[76].mxu1 %vm774_vm0, %v2372_v34 }
  0xda   :  { %1063 = vmatprep.mubr.bf16.mxu0 %v2373_v35  ;;  %2198 = vmatprep.mubr.msk.bf16.mxu1 %vm774_vm0, %v2375_v36 }
  0xe1   :  { %1064 = vmatmul.mubr.bf16.gmra.mrb[80].mxu0 %v2376_v37  ;;  %2199 = vmatmul.mubr.msk.bf16.gmra.mrb[80].mxu1 %vm774_vm0, %v2377_v38 }
  0xe2   :  { %1071 = vmatprep.mubr.bf16.mxu0 %v2378_v39  ;;  %2202 = vmatprep.mubr.msk.bf16.mxu1 %vm774_vm0, %v2380_v40 }
  0xe9   :  { %1072 = vmatmul.mubr.bf16.gmra.mrb[84].mxu0 %v2381_v41  ;;  %2203 = vmatmul.mubr.msk.bf16.gmra.mrb[84].mxu1 %vm774_vm0, %v2382_v42 }
  0xea   :  { %1079 = vmatprep.mubr.bf16.mxu0 %v2383_v43  ;;  %2206 = vmatprep.mubr.msk.bf16.mxu1 %vm774_vm0, %v2385_v44 }
  0xf1   :  { %1080 = vmatmul.mubr.bf16.gmra.mrb[88].mxu0 %v2386_v45  ;;  %2207 = vmatmul.mubr.msk.bf16.gmra.mrb[88].mxu1 %vm774_vm0, %v2387_v46 }
  0xf2   :  { %1087 = vmatprep.mubr.bf16.mxu0 %v2388_v47  ;;  %2210 = vmatprep.mubr.msk.bf16.mxu1 %vm774_vm0, %v2390_v48 }
  0xf9   :  { %1088 = vmatmul.mubr.bf16.gmra.mrb[92].mxu0 %v2391_v49  ;;  %2211 = vmatmul.mubr.msk.bf16.gmra.mrb[92].mxu1 %vm774_vm0, %v2392_v50 }
 0x114   :  { %v3077_v51 = vpop.f32.mrb[0].mxu0  ;;  %v3079_v52 = vpop.f32.mrb[0].mxu1 }
 0x115   :  { %v907_v53 = vpop.f32.mrb[1].mxu0  ;;  %v1099_v54 = vpop.f32.mrb[1].mxu1 }
 0x116   :  { %v3081_v55 = vpop.f32.mrb[2].mxu0  ;;  %v3083_v56 = vpop.f32.mrb[2].mxu1  ;;  %v3140_v53 = vld [vmem:[%s3501_s2] ss:$0 sm:$0xff] }
 0x117   :  { %v910_v57 = vpop.f32.mrb[3].mxu0  ;;  %v1102_v58 = vpop.f32.mrb[3].mxu1 }
 0x118   :  { %v906_v57 = vadd.f32 %v3140_v53, %v3077_v51 }
 0x11c   :  { %v913_v59 = vpop.f32.mrb[4].mxu0  ;;  %v3085_v60 = vpop.f32.mrb[4].mxu1 }
 0x11d   :  { %v915_v61 = vpop.f32.mrb[5].mxu0  ;;  %v1107_v62 = vpop.f32.mrb[5].mxu1  ;;  %v914_v54 = vadd.f32 %v3140_v53, %v913_v59 }
 0x11e   :  { %v916_v63 = vpop.f32.mrb[6].mxu0  ;;  %v3087_v0 = vpop.f32.mrb[6].mxu1 }
 0x11f   :  { %v918_v1 = vpop.f32.mrb[7].mxu0  ;;  %v1110_v2 = vpop.f32.mrb[7].mxu1  ;;  %v917_v62 = vadd.f32 %v3140_v53, %v916_v63 }
 0x124   :  { %v3089_v3 = vpop.f32.mrb[8].mxu0  ;;  %v3091_v4 = vpop.f32.mrb[8].mxu1 }
 0x125   :  { %v923_v5 = vpop.f32.mrb[9].mxu0  ;;  %v1115_v6 = vpop.f32.mrb[9].mxu1 }
 0x126   :  { %v3093_v7 = vpop.f32.mrb[10].mxu0  ;;  %v3095_v8 = vpop.f32.mrb[10].mxu1  ;;  %v909_v6 = vadd.f32 %v3140_v53, %v3081_v55  ;;  %v922_v55 = vadd.f32 %v3140_v53, %v3089_v3 }
 0x127   :  { %v926_v9 = vpop.f32.mrb[11].mxu0  ;;  %v1118_v10 = vpop.f32.mrb[11].mxu1 }
 0x12c   :  { %v3097_v11 = vpop.f32.mrb[12].mxu0  ;;  %v3099_v12 = vpop.f32.mrb[12].mxu1 }
 0x12d   :  { %v931_v13 = vpop.f32.mrb[13].mxu0  ;;  %v1123_v14 = vpop.f32.mrb[13].mxu1 }
 0x12e   :  { %v3101_v15 = vpop.f32.mrb[14].mxu0  ;;  %v3103_v16 = vpop.f32.mrb[14].mxu1 }
 0x12f   :  { %v934_v17 = vpop.f32.mrb[15].mxu0  ;;  %v1126_v18 = vpop.f32.mrb[15].mxu1 }
 0x134   :  { %v3105_v19 = vpop.f32.mrb[16].mxu0  ;;  %v3107_v20 = vpop.f32.mrb[16].mxu1 }
 0x135   :  { %v939_v21 = vpop.f32.mrb[17].mxu0  ;;  %v1131_v22 = vpop.f32.mrb[17].mxu1 }
 0x136   :  { %v3109_v23 = vpop.f32.mrb[18].mxu0  ;;  %v3111_v24 = vpop.f32.mrb[18].mxu1 }
 0x137   :  { %v942_v25 = vpop.f32.mrb[19].mxu0  ;;  %v1134_v26 = vpop.f32.mrb[19].mxu1 }
 0x138   :  { %v930_v25 = vadd.f32 %v3140_v53, %v3097_v11 }
 0x13c   :  { %v3113_v27 = vpop.f32.mrb[20].mxu0  ;;  %v3115_v28 = vpop.f32.mrb[20].mxu1 }
 0x13d   :  { %v947_v29 = vpop.f32.mrb[21].mxu0  ;;  %v1139_v30 = vpop.f32.mrb[21].mxu1 }
 0x13e   :  { %v3117_v31 = vpop.f32.mrb[22].mxu0  ;;  %v3119_v32 = vpop.f32.mrb[22].mxu1  ;;  %v933_v30 = vadd.f32 %v3140_v53, %v3101_v15 }
 0x13f   :  { %v950_v33 = vpop.f32.mrb[23].mxu0  ;;  %v1142_v34 = vpop.f32.mrb[23].mxu1 }
 0x144   :  { %v3121_v35 = vpop.f32.mrb[24].mxu0  ;;  %v3123_v36 = vpop.f32.mrb[24].mxu1 }
 0x145   :  { %v955_v37 = vpop.f32.mrb[25].mxu0  ;;  %v1147_v38 = vpop.f32.mrb[25].mxu1 }
 0x146   :  { %v3125_v39 = vpop.f32.mrb[26].mxu0  ;;  %v3127_v40 = vpop.f32.mrb[26].mxu1  ;;  %v925_v38 = vadd.f32 %v3140_v53, %v3093_v7 }
 0x147   :  { %v958_v41 = vpop.f32.mrb[27].mxu0  ;;  %v1150_v42 = vpop.f32.mrb[27].mxu1 }
 0x14c   :  { %v3129_v43 = vpop.f32.mrb[28].mxu0  ;;  %v3131_v44 = vpop.f32.mrb[28].mxu1 }
 0x14d   :  { %v963_v45 = vpop.f32.mrb[29].mxu0  ;;  %v1155_v46 = vpop.f32.mrb[29].mxu1 }
 0x14e   :  { %v3133_v47 = vpop.f32.mrb[30].mxu0  ;;  %v3135_v48 = vpop.f32.mrb[30].mxu1 }
 0x14f   :  { %v966_v49 = vpop.f32.mrb[31].mxu0  ;;  %v1158_v50 = vpop.f32.mrb[31].mxu1 }
 0x154   :  { %v3145_v58 = vpop.f32.mrb[32].mxu0  ;;  %v2152_v61 = vpop.f32.mrb[32].mxu1 }
 0x155   :  { %v1203_v1 = vadd.f32 %v2152_v61, %v914_v54  ;;  %v971_v2 = vpop.f32.mrb[33].mxu0  ;;  %v1194_v5 = vpop.f32.mrb[33].mxu1 }
 0x156   :  { %v1195_v9 = vadd.f32 %v1194_v5, %v906_v57  ;;  %v3150_v10 = vpop.f32.mrb[34].mxu0  ;;  %v2153_v13 = vpop.f32.mrb[34].mxu1 }
 0x157   :  { %v2050_v14 = vmul.f32 -1.442695, %v1203_v1  ;;  %v1206_v59 = vadd.f32 %v2153_v13, %v917_v62  ;;  %v974_v17 = vpop.f32.mrb[35].mxu0  ;;  %v1197_v18 = vpop.f32.mrb[35].mxu1  ;;  %v946_v62 = vadd.f32 %v3140_v53, %v3113_v27  ;;  %v938_v1 = vadd.f32 %v3140_v53, %v3105_v19 }
 0x158   :  { %v2048_v51 = vmul.f32 -1.442695, %v1195_v9  ;;  %v1198_v21 = vadd.f32 %v1197_v18, %v909_v6  ;;  %v941_v13 = vadd.f32 %v3140_v53, %v3109_v23  ;;  %v949_v27 = vadd.f32 %v3140_v53, %v3117_v31 }
 0x159   :  { %2393 = vpow2.f32 %v2050_v14  ;;  %v2051_v22 = vmul.f32 -1.442695, %v1206_v59 }
 0x15a   :  { %2395 = vpow2.f32 %v2048_v51  ;;  %v2049_v63 = vmul.f32 -1.442695, %v1198_v21 }
 0x15b   :  { %2397 = vpow2.f32 %v2051_v22 }
 0x15c   :  { %2399 = vpow2.f32 %v2049_v63  ;;  %v3156_v26 = vpop.f32.mrb[36].mxu0  ;;  %v2156_v29 = vpop.f32.mrb[36].mxu1 }
 0x15d   :  { %v1219_v33 = vadd.f32 %v2156_v29, %v930_v25  ;;  %v979_v34 = vpop.f32.mrb[37].mxu0  ;;  %v1210_v37 = vpop.f32.mrb[37].mxu1 }
 0x15e   :  { %v1211_v41 = vadd.f32 %v1210_v37, %v922_v55  ;;  %v3162_v42 = vpop.f32.mrb[38].mxu0  ;;  %v2157_v11 = vpop.f32.mrb[38].mxu1 }
 0x15f   :  { %v2054_v45 = vmul.f32 -1.442695, %v1219_v33  ;;  %v1222_v46 = vadd.f32 %v2157_v11, %v933_v30  ;;  %v982_v3 = vpop.f32.mrb[39].mxu0  ;;  %v1213_v49 = vpop.f32.mrb[39].mxu1 }
 0x160   :  { %v2052_v50 = vmul.f32 -1.442695, %v1211_v41  ;;  %v1214_v54 = vadd.f32 %v1213_v49, %v925_v38  ;;  %v962_v41 = vadd.f32 %v3140_v53, %v3129_v43 }
 0x161   :  { %2401 = vpow2.f32 %v2054_v45  ;;  %v2055_v57 = vmul.f32 -1.442695, %v1222_v46  ;;  %v954_v45 = vadd.f32 %v3140_v53, %v3121_v35 }
 0x162   :  { %2403 = vpow2.f32 %v2052_v50  ;;  %v2053_v15 = vmul.f32 -1.442695, %v1214_v54  ;;  %v957_v54 = vadd.f32 %v3140_v53, %v3125_v39 }
 0x163   :  { %v2394_v61 = vpop.eup %2393  ;;  %2405 = vpow2.f32 %v2055_v57 }
 0x164   :  { %v2396_v7 = vpop.eup %2395  ;;  %v1643_v2 = vadd.f32 1.0, %v2394_v61  ;;  %2407 = vpow2.f32 %v2053_v15  ;;  %v3168_v5 = vpop.f32.mrb[40].mxu0 }
 0x165   :  { %v2160_v6 = vpop.f32.mrb[40].mxu1  ;;  %v2398_v9 = vpop.eup %2397  ;;  %v1641_v14 = vadd.f32 1.0, %v2396_v7  ;;  %v965_v7 = vadd.f32 %v3140_v53, %v3133_v47 }
 0x166   :  { %v1235_v59 = vadd.f32 %v2160_v6, %v946_v62  ;;  %v987_v17 = vpop.f32.mrb[41].mxu0  ;;  %v1226_v18 = vpop.f32.mrb[41].mxu1  ;;  %2409 = vrcp.f32 %v1643_v2  ;;  %v1644_v21 = vadd.f32 1.0, %v2398_v9 }
 0x167   :  { %v2400_v51 = vpop.eup %2399  ;;  %v1227_v19 = vadd.f32 %v1226_v18, %v938_v1  ;;  %v3174_v22 = vpop.f32.mrb[42].mxu0  ;;  %2411 = vrcp.f32 %v1641_v14 }
 0x168   :  { %v2161_v63 = vpop.f32.mrb[42].mxu1  ;;  %v1642_v25 = vadd.f32 1.0, %v2400_v51  ;;  %v2058_v55 = vmul.f32 -1.442695, %v1235_v59  ;;  %v990_v29 = vpop.f32.mrb[43].mxu0  ;;  %2413 = vrcp.f32 %v1644_v21 }
 0x169   :  { %v1229_v30 = vpop.f32.mrb[43].mxu1  ;;  %v2056_v23 = vmul.f32 -1.442695, %v1227_v19  ;;  %v1238_v33 = vadd.f32 %v2161_v63, %v949_v27  ;;  %v970_v29 = vadd.f32 %v3140_v53, %v3145_v58 }
 0x16a   :  { %v1230_v34 = vadd.f32 %v1229_v30, %v941_v13  ;;  %2415 = vrcp.f32 %v1642_v25  ;;  %v978_v25 = vadd.f32 %v3140_v53, %v3156_v26 }
 0x16b   :  { %2417 = vpow2.f32 %v2058_v55  ;;  %v2059_v37 = vmul.f32 -1.442695, %v1238_v33  ;;  %v2402_v31 = vpop.eup %2401 }
 0x16c   :  { %v2057_v38 = vmul.f32 -1.442695, %v1230_v34  ;;  %2419 = vpow2.f32 %v2056_v23  ;;  %v2404_v11 = vpop.eup %2403  ;;  %v1647_v46 = vadd.f32 1.0, %v2402_v31  ;;  %v3180_v3 = vpop.f32.mrb[44].mxu0 }
 0x16d   :  { %2421 = vpow2.f32 %v2059_v37  ;;  %v2164_v49 = vpop.f32.mrb[44].mxu1  ;;  %v2406_v50 = vpop.eup %2405  ;;  %v1645_v57 = vadd.f32 1.0, %v2404_v11 }
 0x16e   :  { %2423 = vpow2.f32 %v2057_v38  ;;  %v1251_v15 = vadd.f32 %v2164_v49, %v962_v41  ;;  %v995_v61 = vpop.f32.mrb[45].mxu0  ;;  %v1242_v62 = vpop.f32.mrb[45].mxu1  ;;  %v1648_v35 = vadd.f32 1.0, %v2406_v50  ;;  %v981_v41 = vadd.f32 %v3140_v53, %v3162_v42 }
 0x16f   :  { %v2408_v43 = vpop.eup %2407  ;;  %2425 = vrcp.f32 %v1647_v46  ;;  %v1243_v1 = vadd.f32 %v1242_v62, %v954_v45  ;;  %v3186_v2 = vpop.f32.mrb[46].mxu0  ;;  %v973_v50 = vadd.f32 %v3140_v53, %v3150_v10 }
 0x170   :  { %v2165_v6 = vpop.f32.mrb[46].mxu1  ;;  %2427 = vrcp.f32 %v1645_v57  ;;  %v1646_v9 = vadd.f32 1.0, %v2408_v43  ;;  %v2062_v13 = vmul.f32 -1.442695, %v1251_v15  ;;  %v998_v14 = vpop.f32.mrb[47].mxu0 }
 0x171   :  { %v1245_v39 = vpop.f32.mrb[47].mxu1  ;;  %v2410_v59 = vpop.eup %2409  ;;  %2429 = vrcp.f32 %v1648_v35  ;;  %v2060_v17 = vmul.f32 -1.442695, %v1243_v1  ;;  %v1254_v18 = vadd.f32 %v2165_v6, %v965_v7 }
 0x172   :  { %v1246_v51 = vadd.f32 %v1245_v39, %v957_v54  ;;  %v2412_v27 = vpop.eup %2411  ;;  %1835 = vst [vmem:[%s3502_s3 + $0x10] sm:$0xff] %v2410_v59  ;;  %2431 = vrcp.f32 %v1646_v9  ;;  %v986_v59 = vadd.f32 %v3140_v53, %v3168_v5  ;;  %v989_v5 = vadd.f32 %v3140_v53, %v3174_v22 }
 0x173   :  { %v2414_v47 = vpop.eup %2413  ;;  %1833 = vst [vmem:[%s3502_s3] sm:$0xff] %v2412_v27  ;;  %2433 = vpow2.f32 %v2062_v13  ;;  %v2063_v21 = vmul.f32 -1.442695, %v1254_v18  ;;  %v994_v13 = vadd.f32 %v3140_v53, %v3180_v3 }
 0x174   :  { %v2061_v19 = vmul.f32 -1.442695, %v1246_v51  ;;  %v2416_v63 = vpop.eup %2415  ;;  %1836 = vst [vmem:[%s3502_s3 + $0x18] sm:$0xff] %v2414_v47  ;;  %2435 = vpow2.f32 %v2060_v17  ;;  %v3204_v30 = vpop.f32.mrb[48].mxu0 }
 0x175   :  { %v2418_v55 = vpop.eup %2417  ;;  %1834 = vst [vmem:[%s3502_s3 + $0x8] sm:$0xff] %v2416_v63  ;;  %2437 = vpow2.f32 %v2063_v21  ;;  %v2168_v23 = vpop.f32.mrb[48].mxu1 }
 0x176   :  { %v2420_v33 = vpop.eup %2419  ;;  %v1651_v34 = vadd.f32 1.0, %v2418_v55  ;;  %2439 = vpow2.f32 %v2061_v19  ;;  %v1267_v37 = vadd.f32 %v2168_v23, %v978_v25  ;;  %v1003_v38 = vpop.f32.mrb[49].mxu0  ;;  %v997_v25 = vadd.f32 %v3140_v53, %v3186_v2 }
 0x177   :  { %v1258_v31 = vpop.f32.mrb[49].mxu1  ;;  %v2422_v26 = vpop.eup %2421  ;;  %v1649_v11 = vadd.f32 1.0, %v2420_v33 }
 0x178   :  { %v1259_v58 = vadd.f32 %v1258_v31, %v970_v29  ;;  %v3208_v45 = vpop.f32.mrb[50].mxu0  ;;  %v2169_v46 = vpop.f32.mrb[50].mxu1  ;;  %2441 = vrcp.f32 %v1651_v34  ;;  %v1652_v54 = vadd.f32 1.0, %v2422_v26  ;;  %v2066_v57 = vmul.f32 -1.442695, %v1267_v37 }
 0x179   :  { %v2424_v49 = vpop.eup %2423  ;;  %v1006_v15 = vpop.f32.mrb[51].mxu0  ;;  %2443 = vrcp.f32 %v1649_v11  ;;  %v1270_v35 = vadd.f32 %v2169_v46, %v981_v41 }
 0x17a   :  { %v1261_v61 = vpop.f32.mrb[51].mxu1  ;;  %v2426_v62 = vpop.eup %2425  ;;  %v1650_v43 = vadd.f32 1.0, %v2424_v49  ;;  %v2064_v7 = vmul.f32 -1.442695, %v1259_v58  ;;  %2445 = vrcp.f32 %v1652_v54  ;;  %v1002_v15 = vadd.f32 %v3140_v53, %v3204_v30 }
 0x17b   :  { %v2428_v42 = vpop.eup %2427  ;;  %1839 = vst [vmem:[%s3502_s3 + $0x30] sm:$0xff] %v2426_v62  ;;  %v1262_v1 = vadd.f32 %v1261_v61, %v973_v50  ;;  %v2067_v10 = vmul.f32 -1.442695, %v1270_v35 }
 0x17c   :  { %v2430_v6 = vpop.eup %2429  ;;  %1837 = vst [vmem:[%s3502_s3 + $0x20] sm:$0xff] %v2428_v42  ;;  %2447 = vrcp.f32 %v1650_v43  ;;  %v1009_v17 = vpop.f32.mrb[52].mxu0 }
 0x17d   :  { %v2432_v9 = vpop.eup %2431  ;;  %1840 = vst [vmem:[%s3502_s3 + $0x38] sm:$0xff] %v2430_v6  ;;  %2449 = vpow2.f32 %v2066_v57  ;;  %v2065_v14 = vmul.f32 -1.442695, %v1262_v1  ;;  %v2172_v18 = vpop.f32.mrb[52].mxu1  ;;  %v1010_v50 = vadd.f32 %v3140_v53, %v1009_v17 }
 0x17e   :  { %v2434_v39 = vpop.eup %2433  ;;  %1838 = vst [vmem:[%s3502_s3 + $0x28] sm:$0xff] %v2432_v9  ;;  %2451 = vpow2.f32 %v2064_v7  ;;  %v1283_v47 = vadd.f32 %v2172_v18, %v994_v13  ;;  %v1011_v21 = vpop.f32.mrb[53].mxu0  ;;  %v1005_v9 = vadd.f32 %v3140_v53, %v3208_v45 }
 0x17f   :  { %v2436_v51 = vpop.eup %2435  ;;  %v1655_v27 = vadd.f32 1.0, %v2434_v39  ;;  %2453 = vpow2.f32 %v2067_v10  ;;  %v1274_v19 = vpop.f32.mrb[53].mxu1 }
 0x180   :  { %v2438_v3 = vpop.eup %2437  ;;  %v1653_v63 = vadd.f32 1.0, %v2436_v51  ;;  %2455 = vpow2.f32 %v2065_v14  ;;  %v1275_v55 = vadd.f32 %v1274_v19, %v986_v59  ;;  %v1012_v29 = vpop.f32.mrb[54].mxu0  ;;  %v2070_v37 = vmul.f32 -1.442695, %v1283_v47 }
 0x181   :  { %v2173_v23 = vpop.f32.mrb[54].mxu1  ;;  %v2440_v33 = vpop.eup %2439  ;;  %2457 = vrcp.f32 %v1655_v27  ;;  %v1656_v34 = vadd.f32 1.0, %v2438_v3  ;;  %v1013_v7 = vadd.f32 %v3140_v53, %v1012_v29 }
 0x182   :  { %v1014_v38 = vpop.f32.mrb[55].mxu0  ;;  %v1277_v31 = vpop.f32.mrb[55].mxu1  ;;  %2459 = vrcp.f32 %v1653_v63  ;;  %v1654_v26 = vadd.f32 1.0, %v2440_v33  ;;  %v2068_v41 = vmul.f32 -1.442695, %v1275_v55  ;;  %v1286_v11 = vadd.f32 %v2173_v23, %v997_v25 }
 0x183   :  { %v2442_v58 = vpop.eup %2441  ;;  %2461 = vrcp.f32 %v1656_v34  ;;  %v1278_v2 = vadd.f32 %v1277_v31, %v989_v5 }
 0x184   :  { %v2444_v46 = vpop.eup %2443  ;;  %1843 = vst [vmem:[%s3502_s3 + $0x50] sm:$0xff] %v2442_v58  ;;  %2463 = vrcp.f32 %v1654_v26  ;;  %v2071_v49 = vmul.f32 -1.442695, %v1286_v11  ;;  %v1017_v61 = vpop.f32.mrb[56].mxu0 }
 0x185   :  { %v2446_v22 = vpop.eup %2445  ;;  %1841 = vst [vmem:[%s3502_s3 + $0x40] sm:$0xff] %v2444_v46  ;;  %2465 = vpow2.f32 %v2070_v37  ;;  %v2069_v54 = vmul.f32 -1.442695, %v1278_v2  ;;  %v2176_v62 = vpop.f32.mrb[56].mxu1  ;;  %v1018_v5 = vadd.f32 %v3140_v53, %v1017_v61 }
 0x186   :  { %v2448_v57 = vpop.eup %2447  ;;  %1844 = vst [vmem:[%s3502_s3 + $0x58] sm:$0xff] %v2446_v22  ;;  %2467 = vpow2.f32 %v2068_v41  ;;  %v1299_v35 = vadd.f32 %v2176_v62, %v1010_v50  ;;  %v1019_v42 = vpop.f32.mrb[57].mxu0 }
 0x187   :  { %v2450_v43 = vpop.eup %2449  ;;  %1842 = vst [vmem:[%s3502_s3 + $0x48] sm:$0xff] %v2448_v57  ;;  %2469 = vpow2.f32 %v2071_v49  ;;  %v1290_v1 = vpop.f32.mrb[57].mxu1 }
 0x188   :  { %v2452_v6 = vpop.eup %2451  ;;  %v1659_v10 = vadd.f32 1.0, %v2450_v43  ;;  %2471 = vpow2.f32 %v2069_v54  ;;  %v1291_v30 = vadd.f32 %v1290_v1, %v1002_v15  ;;  %v1020_v13 = vpop.f32.mrb[58].mxu0  ;;  %v2074_v21 = vmul.f32 -1.442695, %v1299_v35 }
 0x189   :  { %v2177_v14 = vpop.f32.mrb[58].mxu1  ;;  %v2454_v39 = vpop.eup %2453  ;;  %v1657_v59 = vadd.f32 1.0, %v2452_v6  ;;  %v1021_v2 = vadd.f32 %v3140_v53, %v1020_v13 }
 0x18a   :  { %v1302_v17 = vadd.f32 %v2177_v14, %v1013_v7  ;;  %v1022_v18 = vpop.f32.mrb[59].mxu0  ;;  %v1293_v51 = vpop.f32.mrb[59].mxu1  ;;  %2473 = vrcp.f32 %v1659_v10  ;;  %v1660_v47 = vadd.f32 1.0, %v2454_v39  ;;  %v2072_v25 = vmul.f32 -1.442695, %v1291_v30 }
 0x18b   :  { %v2456_v27 = vpop.eup %2455  ;;  %v1294_v19 = vadd.f32 %v1293_v51, %v1005_v9  ;;  %2475 = vrcp.f32 %v1657_v59 }
 0x18c   :  { %v2458_v3 = vpop.eup %2457  ;;  %v1658_v63 = vadd.f32 1.0, %v2456_v27  ;;  %2477 = vrcp.f32 %v1660_v47  ;;  %v2075_v45 = vmul.f32 -1.442695, %v1302_v17  ;;  %v1025_v34 = vpop.f32.mrb[60].mxu0 }
 0x18d   :  { %v2460_v55 = vpop.eup %2459  ;;  %1847 = vst [vmem:[%s3502_s3 + $0x70] sm:$0xff] %v2458_v3  ;;  %v2073_v23 = vmul.f32 -1.442695, %v1294_v19  ;;  %v2180_v37 = vpop.f32.mrb[60].mxu1  ;;  %v1026_v31 = vadd.f32 %v3140_v53, %v1025_v34 }
 0x18e   :  { %v2462_v29 = vpop.eup %2461  ;;  %1845 = vst [vmem:[%s3502_s3 + $0x60] sm:$0xff] %v2460_v55  ;;  %2479 = vrcp.f32 %v1658_v63  ;;  %v1027_v26 = vpop.f32.mrb[61].mxu0 }
 0x18f   :  { %v2464_v33 = vpop.eup %2463  ;;  %1848 = vst [vmem:[%s3502_s3 + $0x78] sm:$0xff] %v2462_v29  ;;  %2481 = vpow2.f32 %v2074_v21  ;;  %v1306_v41 = vpop.f32.mrb[61].mxu1  ;;  %v1315_v57 = vadd.f32 %v2180_v37, %v1026_v31 }
 0x190   :  { %v2466_v38 = vpop.eup %2465  ;;  %1846 = vst [vmem:[%s3502_s3 + $0x68] sm:$0xff] %v2464_v33  ;;  %2483 = vpow2.f32 %v2072_v25  ;;  %v1307_v46 = vadd.f32 %v1306_v41, %v1018_v5  ;;  %v1028_v49 = vpop.f32.mrb[62].mxu0 }
 0x191   :  { %v2468_v11 = vpop.eup %2467  ;;  %v1663_v58 = vadd.f32 1.0, %v2466_v38  ;;  %2485 = vpow2.f32 %v2075_v45  ;;  %v2181_v22 = vpop.f32.mrb[62].mxu1  ;;  %v1029_v15 = vadd.f32 %v3140_v53, %v1028_v49  ;;  %v2078_v6 = vmul.f32 -1.442695, %v1315_v57 }
 0x192   :  { %v2470_v50 = vpop.eup %2469  ;;  %v1661_v54 = vadd.f32 1.0, %v2468_v11  ;;  %2487 = vpow2.f32 %v2073_v23  ;;  %v1030_v61 = vpop.f32.mrb[63].mxu0  ;;  %v2076_v35 = vmul.f32 -1.442695, %v1307_v46 }
 0x193   :  { %v1309_v62 = vpop.f32.mrb[63].mxu1  ;;  %v2472_v43 = vpop.eup %2471  ;;  %2489 = vrcp.f32 %v1663_v58  ;;  %v1664_v7 = vadd.f32 1.0, %v2470_v50  ;;  %v1318_v10 = vadd.f32 %v2181_v22, %v1029_v15 }
 0x194   :  { %v1310_v42 = vadd.f32 %v1309_v62, %v1021_v2  ;;  %2491 = vrcp.f32 %v1661_v54  ;;  %v1662_v1 = vadd.f32 1.0, %v2472_v43  ;;  %v2474_v9 = vpop.eup %2473  ;;  %v1033_v59 = vpop.f32.mrb[64].mxu0 }
 0x195   :  { %2493 = vrcp.f32 %v1664_v7  ;;  %v2476_v30 = vpop.eup %2475  ;;  %1851 = vst [vmem:[%s3502_s3 + $0x90] sm:$0xff] %v2474_v9  ;;  %v2079_v13 = vmul.f32 -1.442695, %v1318_v10  ;;  %v2184_v17 = vpop.f32.mrb[64].mxu1  ;;  %v1034_v51 = vadd.f32 %v3140_v53, %v1033_v59 }
 0x196   :  { %2495 = vrcp.f32 %v1662_v1  ;;  %v2077_v14 = vmul.f32 -1.442695, %v1310_v42  ;;  %v2478_v39 = vpop.eup %2477  ;;  %1849 = vst [vmem:[%s3502_s3 + $0x80] sm:$0xff] %v2476_v30  ;;  %v1035_v27 = vpop.f32.mrb[65].mxu0 }
 0x197   :  { %2497 = vpow2.f32 %v2078_v6  ;;  %1852 = vst [vmem:[%s3502_s3 + $0x98] sm:$0xff] %v2478_v39  ;;  %v1322_v47 = vpop.f32.mrb[65].mxu1  ;;  %v1036_v19 = vpop.f32.mrb[66].mxu0 }
 0x198   :  { %v2480_v18 = vpop.eup %2479  ;;  %2499 = vpow2.f32 %v2076_v35  ;;  %v2185_v3 = vpop.f32.mrb[66].mxu1  ;;  %v1323_v55 = vadd.f32 %v1322_v47, %v1034_v51  ;;  %v1037_v45 = vadd.f32 %v3140_v53, %v1036_v19 }
 0x199   :  { %v2482_v21 = vpop.eup %2481  ;;  %1850 = vst [vmem:[%s3502_s3 + $0x88] sm:$0xff] %v2480_v18  ;;  %2501 = vpow2.f32 %v2079_v13  ;;  %v1038_v29 = vpop.f32.mrb[67].mxu0 }
 0x19a   :  { %v2484_v63 = vpop.eup %2483  ;;  %v1667_v25 = vadd.f32 1.0, %v2482_v21  ;;  %2503 = vpow2.f32 %v2077_v14  ;;  %v1325_v23 = vpop.f32.mrb[67].mxu1  ;;  %v2080_v38 = vmul.f32 -1.442695, %v1323_v55 }
 0x19b   :  { %v2486_v33 = vpop.eup %2485  ;;  %v1665_v5 = vadd.f32 1.0, %v2484_v63  ;;  %v1326_v31 = vadd.f32 %v1325_v23, %v1037_v45 }
 0x19c   :  { %v2488_v34 = vpop.eup %2487  ;;  %2505 = vrcp.f32 %v1667_v25  ;;  %v1668_v37 = vadd.f32 1.0, %v2486_v33  ;;  %v1041_v46 = vpop.f32.mrb[68].mxu0 }
 0x19d   :  { %v2490_v26 = vpop.eup %2489  ;;  %2507 = vrcp.f32 %v1665_v5  ;;  %v1666_v41 = vadd.f32 1.0, %v2488_v34  ;;  %v2081_v58 = vmul.f32 -1.442695, %v1326_v31  ;;  %v3286_v49 = vpop.f32.mrb[68].mxu1  ;;  %v1042_v50 = vadd.f32 %v3140_v53, %v1041_v46 }
 0x19e   :  { %v2492_v11 = vpop.eup %2491  ;;  %1855 = vst [vmem:[%s3502_s3 + $0xb0] sm:$0xff] %v2490_v26  ;;  %2509 = vrcp.f32 %v1668_v37  ;;  %v1043_v54 = vpop.f32.mrb[69].mxu0 }
 0x19f   :  { %v2494_v2 = vpop.eup %2493  ;;  %1853 = vst [vmem:[%s3502_s3 + $0xa0] sm:$0xff] %v2492_v11  ;;  %2511 = vrcp.f32 %v1666_v41  ;;  %v1338_v57 = vpop.f32.mrb[69].mxu1  ;;  %v1331_v35 = vadd.f32 %v2184_v17, %v1042_v50 }
 0x1a0   :  { %v2496_v22 = vpop.eup %2495  ;;  %1856 = vst [vmem:[%s3502_s3 + $0xb8] sm:$0xff] %v2494_v2  ;;  %2513 = vpow2.f32 %v2080_v38  ;;  %v1044_v61 = vpop.f32.mrb[70].mxu0 }
 0x1a1   :  { %v2498_v15 = vpop.eup %2497  ;;  %1854 = vst [vmem:[%s3502_s3 + $0xa8] sm:$0xff] %v2496_v22  ;;  %2515 = vpow2.f32 %v2081_v58  ;;  %v3295_v62 = vpop.f32.mrb[70].mxu1  ;;  %v1045_v42 = vadd.f32 %v3140_v53, %v1044_v61  ;;  %v2082_v14 = vmul.f32 -1.442695, %v1331_v35 }
 0x1a2   :  { %v2500_v43 = vpop.eup %2499  ;;  %v1671_v7 = vadd.f32 1.0, %v2498_v15  ;;  %v1046_v1 = vpop.f32.mrb[71].mxu0 }
 0x1a3   :  { %v1341_v6 = vpop.f32.mrb[71].mxu1  ;;  %v2502_v10 = vpop.eup %2501  ;;  %v1669_v9 = vadd.f32 1.0, %v2500_v43  ;;  %v1334_v39 = vadd.f32 %v2185_v3, %v1045_v42 }
 0x1a4   :  { %v2504_v30 = vpop.eup %2503  ;;  %2517 = vrcp.f32 %v1671_v7  ;;  %v1672_v13 = vadd.f32 1.0, %v2502_v10  ;;  %v1049_v17 = vpop.f32.mrb[72].mxu0 }
 0x1a5   :  { %2519 = vrcp.f32 %v1669_v9  ;;  %v1670_v59 = vadd.f32 1.0, %v2504_v30  ;;  %v2083_v51 = vmul.f32 -1.442695, %v1334_v39  ;;  %v3301_v47 = vpop.f32.mrb[72].mxu1  ;;  %v1050_v19 = vadd.f32 %v3140_v53, %v1049_v17  ;;  %v1051_v3 = vpop.f32.mrb[73].mxu0 }
 0x1a6   :  { %v2506_v18 = vpop.eup %2505  ;;  %2521 = vrcp.f32 %v1672_v13  ;;  %v3307_v63 = vpop.f32.mrb[73].mxu1 }
 0x1a7   :  { %v2508_v27 = vpop.eup %2507  ;;  %1859 = vst [vmem:[%s3502_s3 + $0xd0] sm:$0xff] %v2506_v18  ;;  %2523 = vrcp.f32 %v1670_v59  ;;  %v1052_v55 = vpop.f32.mrb[74].mxu0  ;;  %v1339_v23 = vadd.f32 %v1338_v57, %v1050_v19  ;;  %v1106_v59 = vadd.f32 %v3140_v53, %v3085_v60 }
 0x1a8   :  { %v2510_v21 = vpop.eup %2509  ;;  %1857 = vst [vmem:[%s3502_s3 + $0xc0] sm:$0xff] %v2508_v27  ;;  %2525 = vpow2.f32 %v2082_v14  ;;  %v3312_v45 = vpop.f32.mrb[74].mxu1  ;;  %v1053_v33 = vadd.f32 %v3140_v53, %v1052_v55  ;;  %v1101_v55 = vadd.f32 %v3140_v53, %v3083_v56 }
 0x1a9   :  { %v2512_v25 = vpop.eup %2511  ;;  %1860 = vst [vmem:[%s3502_s3 + $0xd8] sm:$0xff] %v2510_v21  ;;  %2527 = vpow2.f32 %v2083_v51  ;;  %v1054_v5 = vpop.f32.mrb[75].mxu0  ;;  %v2084_v26 = vmul.f32 -1.442695, %v1339_v23 }
 0x1aa   :  { %v2514_v29 = vpop.eup %2513  ;;  %1858 = vst [vmem:[%s3502_s3 + $0xc8] sm:$0xff] %v2512_v25  ;;  %v3318_v34 = vpop.f32.mrb[75].mxu1  ;;  %v1342_v41 = vadd.f32 %v1341_v6, %v1053_v33 }
 0x1ab   :  { %v2516_v37 = vpop.eup %2515  ;;  %v1673_v38 = vadd.f32 1.0, %v2514_v29 }
 0x1ac   :  { %v1674_v31 = vadd.f32 1.0, %v2516_v37  ;;  %v2085_v58 = vmul.f32 -1.442695, %v1342_v41  ;;  %v1057_v46 = vpop.f32.mrb[76].mxu0  ;;  %v3323_v22 = vpop.f32.mrb[76].mxu1 }
 0x1ad   :  { %2529 = vrcp.f32 %v1673_v38  ;;  %v1058_v54 = vadd.f32 %v3140_v53, %v1057_v46  ;;  %v1059_v57 = vpop.f32.mrb[77].mxu0  ;;  %v3329_v15 = vpop.f32.mrb[77].mxu1 }
 0x1ae   :  { %v2518_v11 = vpop.eup %2517  ;;  %2531 = vrcp.f32 %v1674_v31  ;;  %v1060_v43 = vpop.f32.mrb[78].mxu0 }
 0x1af   :  { %v2520_v2 = vpop.eup %2519  ;;  %1863 = vst [vmem:[%s3502_s3 + $0xf0] sm:$0xff] %v2518_v11  ;;  %2533 = vpow2.f32 %v2084_v26  ;;  %v3334_v7 = vpop.f32.mrb[78].mxu1  ;;  %v1347_v42 = vadd.f32 %v3286_v49, %v1058_v54  ;;  %v1061_v1 = vadd.f32 %v3140_v53, %v1060_v43  ;;  %v1098_v49 = vadd.f32 %v3140_v53, %v3079_v52 }
 0x1b0   :  { %v2522_v50 = vpop.eup %2521  ;;  %1861 = vst [vmem:[%s3502_s3 + $0xe0] sm:$0xff] %v2520_v2  ;;  %2535 = vpow2.f32 %v2085_v58  ;;  %v1062_v6 = vpop.f32.mrb[79].mxu0  ;;  %v1109_v52 = vadd.f32 %v3140_v53, %v3087_v0  ;;  %v1122_v54 = vadd.f32 %v3140_v53, %v3099_v12  ;;  %v1114_v43 = vadd.f32 %v3140_v53, %v3091_v4 }
 0x1b1   :  { %v2524_v61 = vpop.eup %2523  ;;  %1864 = vst [vmem:[%s3502_s3 + $0xf8] sm:$0xff] %v2522_v50  ;;  %v3341_v10 = vpop.f32.mrb[79].mxu1  ;;  %v2086_v14 = vmul.f32 -1.442695, %v1347_v42  ;;  %v1350_v39 = vadd.f32 %v3295_v62, %v1061_v1  ;;  %v1125_v4 = vadd.f32 %v3140_v53, %v3103_v16 }
 0x1b2   :  { %v2526_v35 = vpop.eup %2525  ;;  %1862 = vst [vmem:[%s3502_s3 + $0xe8] sm:$0xff] %v2524_v61 }
 0x1b3   :  { %v2528_v9 = vpop.eup %2527  ;;  %v1675_v30 = vadd.f32 1.0, %v2526_v35  ;;  %v2087_v18 = vmul.f32 -1.442695, %v1350_v39 }
 0x1b4   :  { %v1676_v13 = vadd.f32 1.0, %v2528_v9  ;;  %v1065_v27 = vpop.f32.mrb[80].mxu0  ;;  %v2200_v17 = vpop.f32.mrb[80].mxu1 }
 0x1b5   :  { %2537 = vrcp.f32 %v1675_v30  ;;  %v1066_v62 = vadd.f32 %v3140_v53, %v1065_v27  ;;  %v1395_v19 = vadd.f32 %v2200_v17, %v1106_v59  ;;  %v1067_v3 = vpop.f32.mrb[81].mxu0  ;;  %v1386_v60 = vpop.f32.mrb[81].mxu1 }
 0x1b6   :  { %2539 = vrcp.f32 %v1676_v13  ;;  %v1387_v29 = vadd.f32 %v1386_v60, %v1098_v49  ;;  %v1068_v23 = vpop.f32.mrb[82].mxu0  ;;  %v2201_v33 = vpop.f32.mrb[82].mxu1 }
 0x1b7   :  { %v2530_v51 = vpop.eup %2529  ;;  %2541 = vpow2.f32 %v2086_v14  ;;  %v1355_v38 = vadd.f32 %v3307_v63, %v1066_v62  ;;  %v1069_v31 = vadd.f32 %v3140_v53, %v1068_v23  ;;  %v1070_v26 = vpop.f32.mrb[83].mxu0  ;;  %v2098_v56 = vmul.f32 -1.442695, %v1395_v19 }
 0x1b8   :  { %v2532_v21 = vpop.eup %2531  ;;  %1865 = vst [vmem:[%s3502_s3 + $0x100] sm:$0xff] %v2530_v51  ;;  %2543 = vpow2.f32 %v2087_v18  ;;  %v1389_v41 = vpop.f32.mrb[83].mxu1  ;;  %v1398_v58 = vadd.f32 %v2201_v33, %v1109_v52  ;;  %v2096_v46 = vmul.f32 -1.442695, %v1387_v29  ;;  %v1117_v14 = vadd.f32 %v3140_v53, %v3095_v8 }
 0x1b9   :  { %v2534_v25 = vpop.eup %2533  ;;  %1866 = vst [vmem:[%s3502_s3 + $0x108] sm:$0xff] %v2532_v21  ;;  %v1390_v2 = vadd.f32 %v1389_v41, %v1101_v55  ;;  %v2088_v0 = vmul.f32 -1.442695, %v1355_v38  ;;  %v1358_v50 = vadd.f32 %v3318_v34, %v1069_v31  ;;  %v1138_v29 = vadd.f32 %v3140_v53, %v3115_v28  ;;  %v3393_v28 = vld [vmem:[%s3501_s2] ss:$0 sm:$0xff] }
 0x1ba   :  { %v2536_v5 = vpop.eup %2535  ;;  %v1677_v37 = vadd.f32 1.0, %v2534_v25  ;;  %v2099_v63 = vmul.f32 -1.442695, %v1398_v58  ;;  %v1130_v33 = vadd.f32 %v3140_v53, %v3107_v20 }
 0x1bb   :  { %v1678_v11 = vadd.f32 1.0, %v2536_v5  ;;  %v2089_v57 = vmul.f32 -1.442695, %v1358_v50  ;;  %v2097_v35 = vmul.f32 -1.442695, %v1390_v2 }
 0x1bc   :  { %2545 = vrcp.f32 %v1677_v37  ;;  %v1073_v42 = vpop.f32.mrb[84].mxu0  ;;  %v2204_v1 = vpop.f32.mrb[84].mxu1 }
 0x1bd   :  { %2547 = vrcp.f32 %v1678_v11  ;;  %v1074_v34 = vadd.f32 %v3140_v53, %v1073_v42  ;;  %v1411_v12 = vadd.f32 %v2204_v1, %v1122_v54  ;;  %v1075_v9 = vpop.f32.mrb[85].mxu0  ;;  %v1402_v30 = vpop.f32.mrb[85].mxu1 }
 0x1be   :  { %2549 = vpow2.f32 %v2088_v0  ;;  %v1403_v39 = vadd.f32 %v1402_v30, %v1114_v43  ;;  %v1076_v59 = vpop.f32.mrb[86].mxu0  ;;  %v2205_v18 = vpop.f32.mrb[86].mxu1  ;;  %v1133_v43 = vadd.f32 %v3393_v28, %v3111_v24 }
 0x1bf   :  { %v2538_v61 = vpop.eup %2537  ;;  %2551 = vpow2.f32 %v2098_v56  ;;  %v1363_v27 = vadd.f32 %v3301_v47, %v1074_v34  ;;  %v2102_v17 = vmul.f32 -1.442695, %v1411_v12  ;;  %v1078_v21 = vpop.f32.mrb[87].mxu0  ;;  %v1077_v16 = vadd.f32 %v3140_v53, %v1076_v59 }
 0x1c0   :  { %v2540_v6 = vpop.eup %2539  ;;  %1867 = vst [vmem:[%s3502_s3 + $0x110] sm:$0xff] %v2538_v61  ;;  %2553 = vpow2.f32 %v2096_v46  ;;  %v1405_v62 = vpop.f32.mrb[87].mxu1  ;;  %v2100_v19 = vmul.f32 -1.442695, %v1403_v39  ;;  %v1414_v60 = vadd.f32 %v2205_v18, %v1125_v4  ;;  %v1141_v46 = vadd.f32 %v3393_v28, %v3119_v32 }
 0x1c1   :  { %v2542_v13 = vpop.eup %2541  ;;  %1868 = vst [vmem:[%s3502_s3 + $0x118] sm:$0xff] %v2540_v6  ;;  %2555 = vpow2.f32 %v2089_v57  ;;  %v2090_v3 = vmul.f32 -1.442695, %v1363_v27  ;;  %v1406_v25 = vadd.f32 %v1405_v62, %v1117_v14  ;;  %v1366_v55 = vadd.f32 %v3312_v45, %v1077_v16 }
 0x1c2   :  { %v2544_v51 = vpop.eup %2543  ;;  %v1679_v49 = vadd.f32 1.0, %v2542_v13  ;;  %2557 = vpow2.f32 %v2099_v63  ;;  %v2103_v47 = vmul.f32 -1.442695, %v1414_v60  ;;  %v1154_v14 = vadd.f32 %v3393_v28, %v3131_v44 }
 0x1c3   :  { %v1680_v8 = vadd.f32 1.0, %v2544_v51  ;;  %2559 = vpow2.f32 %v2097_v35  ;;  %v2091_v5 = vmul.f32 -1.442695, %v1366_v55  ;;  %v2101_v34 = vmul.f32 -1.442695, %v1406_v25 }
 0x1c4   :  { %2561 = vrcp.f32 %v1679_v49  ;;  %v1081_v37 = vpop.f32.mrb[88].mxu0  ;;  %v2208_v38 = vpop.f32.mrb[88].mxu1  ;;  %v1146_v59 = vadd.f32 %v3393_v28, %v3123_v36  ;;  %v1149_v36 = vadd.f32 %v3393_v28, %v3127_v40  ;;  %v1157_v60 = vadd.f32 %v3393_v28, %v3135_v48 }
 0x1c5   :  { %2563 = vrcp.f32 %v1680_v8  ;;  %v1082_v20 = vadd.f32 %v3393_v28, %v1081_v37  ;;  %v3396_v53 = vadd.f32 %v2208_v38, %v1138_v29  ;;  %v1083_v45 = vpop.f32.mrb[89].mxu0  ;;  %v1418_v26 = vpop.f32.mrb[89].mxu1 }
 0x1c6   :  { %v2546_v52 = vpop.eup %2545  ;;  %2565 = vpow2.f32 %v2090_v3  ;;  %v3398_v56 = vadd.f32 %v1418_v26, %v1130_v33  ;;  %v1084_v58 = vpop.f32.mrb[90].mxu0 }
 0x1c7   :  { %v2548_v23 = vpop.eup %2547  ;;  %1869 = vst [vmem:[%s3502_s3 + $0x120] sm:$0xff] %v2546_v52  ;;  %2567 = vpow2.f32 %v2102_v17  ;;  %v2209_v2 = vpop.f32.mrb[90].mxu1  ;;  %v1371_v54 = vadd.f32 %v3329_v15, %v1082_v20  ;;  %v1085_v42 = vadd.f32 %v3393_v28, %v1084_v58  ;;  %v2106_v40 = vmul.f32 -1.442695, %v3396_v53 }
 0x1c8   :  { %v2550_v31 = vpop.eup %2549  ;;  %1870 = vst [vmem:[%s3502_s3 + $0x128] sm:$0xff] %v2548_v23  ;;  %2569 = vpow2.f32 %v2100_v19  ;;  %v1086_v57 = vpop.f32.mrb[91].mxu0  ;;  %v1430_v12 = vadd.f32 %v2209_v2, %v1141_v46  ;;  %v2104_v38 = vmul.f32 -1.442695, %v3398_v56 }
 0x1c9   :  { %v2552_v41 = vpop.eup %2551  ;;  %v1681_v11 = vadd.f32 1.0, %v2550_v31  ;;  %2571 = vpow2.f32 %v2091_v5  ;;  %v1421_v63 = vpop.f32.mrb[91].mxu1  ;;  %v1374_v15 = vadd.f32 %v3341_v10, %v1085_v42  ;;  %v2092_v4 = vmul.f32 -1.442695, %v1371_v54 }
 0x1ca   :  { %v2554_v0 = vpop.eup %2553  ;;  %v1691_v50 = vadd.f32 1.0, %v2552_v41  ;;  %2573 = vpow2.f32 %v2103_v47  ;;  %v1422_v30 = vadd.f32 %v1421_v63, %v1133_v43  ;;  %v2107_v41 = vmul.f32 -1.442695, %v1430_v12 }
 0x1cb   :  { %v2556_v61 = vpop.eup %2555  ;;  %2575 = vrcp.f32 %v1681_v11  ;;  %v1689_v35 = vadd.f32 1.0, %v2554_v0  ;;  %v2093_v53 = vmul.f32 -1.442695, %v1374_v15 }
 0x1cc   :  { %v2558_v1 = vpop.eup %2557  ;;  %2577 = vrcp.f32 %v1691_v50  ;;  %v1682_v6 = vadd.f32 1.0, %v2556_v61  ;;  %v1089_v18 = vpop.f32.mrb[92].mxu0 }
 0x1cd   :  { %v2560_v32 = vpop.eup %2559  ;;  %2579 = vrcp.f32 %v1689_v35  ;;  %v1692_v9 = vadd.f32 1.0, %v2558_v1  ;;  %v2212_v51 = vpop.f32.mrb[92].mxu1  ;;  %v1090_v44 = vadd.f32 %v3393_v28, %v1089_v18 }
 0x1ce   :  { %v2562_v13 = vpop.eup %2561  ;;  %2581 = vrcp.f32 %v1682_v6  ;;  %v1690_v24 = vadd.f32 1.0, %v2560_v32  ;;  %v1443_v49 = vadd.f32 %v2212_v51, %v1154_v14  ;;  %v1091_v27 = vpop.f32.mrb[93].mxu0 }
 0x1cf   :  { %v2564_v39 = vpop.eup %2563  ;;  %1871 = vst [vmem:[%s3502_s3 + $0x130] sm:$0xff] %v2562_v13  ;;  %2583 = vrcp.f32 %v1692_v9  ;;  %v1434_v17 = vpop.f32.mrb[93].mxu1  ;;  %v1379_v55 = vadd.f32 %v3323_v22, %v1090_v44 }
 0x1d0   :  { %v2566_v10 = vpop.eup %2565  ;;  %1872 = vst [vmem:[%s3502_s3 + $0x138] sm:$0xff] %v2564_v39  ;;  %2585 = vrcp.f32 %v1690_v24  ;;  %v1435_v8 = vadd.f32 %v1434_v17, %v1146_v59  ;;  %v1092_v19 = vpop.f32.mrb[94].mxu0  ;;  %v2110_v54 = vmul.f32 -1.442695, %v1443_v49 }
 0x1d1   :  { %v2568_v21 = vpop.eup %2567  ;;  %v1683_v62 = vadd.f32 1.0, %v2566_v10  ;;  %2587 = vpow2.f32 %v2101_v34  ;;  %v2213_v16 = vpop.f32.mrb[94].mxu1  ;;  %v1093_v33 = vadd.f32 %v3393_v28, %v1092_v19  ;;  %v2094_v58 = vmul.f32 -1.442695, %v1379_v55 }
 0x1d2   :  { %v2570_v3 = vpop.eup %2569  ;;  %v1695_v25 = vadd.f32 1.0, %v2568_v21  ;;  %2589 = vpow2.f32 %v2092_v4  ;;  %v1094_v52 = vpop.f32.mrb[95].mxu0  ;;  %v1446_v31 = vadd.f32 %v2213_v16, %v1157_v60  ;;  %v2108_v61 = vmul.f32 -1.442695, %v1435_v8 }
 0x1d3   :  { %v1437_v29 = vpop.f32.mrb[95].mxu1  ;;  %v2572_v47 = vpop.eup %2571  ;;  %2591 = vrcp.f32 %v1683_v62  ;;  %v1693_v23 = vadd.f32 1.0, %v2570_v3  ;;  %v1382_v22 = vadd.f32 %v3334_v7, %v1093_v33  ;;  %v2105_v7 = vmul.f32 -1.442695, %v1422_v30 }
 0x1d4   :  { %v2574_v5 = vpop.eup %2573  ;;  %2593 = vrcp.f32 %v1695_v25  ;;  %v1684_v37 = vadd.f32 1.0, %v2572_v47  ;;  %v1438_v45 = vadd.f32 %v1437_v29, %v1149_v36  ;;  %v2111_v1 = vmul.f32 -1.442695, %v1446_v31 }
 0x1d5   :  { %v2576_v48 = vpop.eup %2575  ;;  %2595 = vrcp.f32 %v1693_v23  ;;  %v1696_v20 = vadd.f32 1.0, %v2574_v5  ;;  %v2095_v35 = vmul.f32 -1.442695, %v1382_v22 }
 0x1d6   :  { %v2578_v26 = vpop.eup %2577  ;;  %1873 = vst [vmem:[%s3502_s3 + $0x140] sm:$0xff] %v2576_v48  ;;  %2597 = vrcp.f32 %v1684_v37  ;;  %v2109_v34 = vmul.f32 -1.442695, %v1438_v45 }
 0x1d7   :  { %v2580_v28 = vpop.eup %2579  ;;  %1883 = vst [vmem:[%s3502_s3 + $0x190] sm:$0xff] %v2578_v26  ;;  %2599 = vrcp.f32 %v1696_v20 }
 0x1d8   :  { %v2582_v11 = vpop.eup %2581  ;;  %1881 = vst [vmem:[%s3502_s3 + $0x180] sm:$0xff] %v2580_v28  ;;  %2601 = vpow2.f32 %v2106_v40 }
 0x1d9   :  { %v2584_v56 = vpop.eup %2583  ;;  %1874 = vst [vmem:[%s3502_s3 + $0x148] sm:$0xff] %v2582_v11  ;;  %2603 = vpow2.f32 %v2104_v38 }
 0x1da   :  { %v2586_v2 = vpop.eup %2585  ;;  %1884 = vst [vmem:[%s3502_s3 + $0x198] sm:$0xff] %v2584_v56  ;;  %2605 = vpow2.f32 %v2093_v53 }
 0x1db   :  { %v2588_v0 = vpop.eup %2587  ;;  %1882 = vst [vmem:[%s3502_s3 + $0x188] sm:$0xff] %v2586_v2  ;;  %2607 = vpow2.f32 %v2107_v41 }
 0x1dc   :  { %v2590_v46 = vpop.eup %2589  ;;  %v1694_v50 = vadd.f32 1.0, %v2588_v0  ;;  %2609 = vpow2.f32 %v2105_v7 }
 0x1dd   :  { %v2592_v57 = vpop.eup %2591  ;;  %v1685_v63 = vadd.f32 1.0, %v2590_v46  ;;  %2611 = vpow2.f32 %v2094_v58 }
 0x1de   :  { %v2594_v43 = vpop.eup %2593  ;;  %1875 = vst [vmem:[%s3502_s3 + $0x150] sm:$0xff] %v2592_v57  ;;  %2613 = vrcp.f32 %v1694_v50 }
 0x1df   :  { %v2596_v42 = vpop.eup %2595  ;;  %1887 = vst [vmem:[%s3502_s3 + $0x1b0] sm:$0xff] %v2594_v43  ;;  %2615 = vrcp.f32 %v1685_v63 }
 0x1e0   :  { %v2598_v6 = vpop.eup %2597  ;;  %1885 = vst [vmem:[%s3502_s3 + $0x1a0] sm:$0xff] %v2596_v42  ;;  %2617 = vpow2.f32 %v2110_v54 }
 0x1e1   :  { %v2600_v12 = vpop.eup %2599  ;;  %1876 = vst [vmem:[%s3502_s3 + $0x158] sm:$0xff] %v2598_v6  ;;  %2619 = vpow2.f32 %v2108_v61 }
 0x1e2   :  { %v2602_v32 = vpop.eup %2601  ;;  %1888 = vst [vmem:[%s3502_s3 + $0x1b8] sm:$0xff] %v2600_v12  ;;  %2621 = vpow2.f32 %v2095_v35 }
 0x1e3   :  { %v2604_v9 = vpop.eup %2603  ;;  %v1699_v15 = vadd.f32 1.0, %v2602_v32  ;;  %2623 = vpow2.f32 %v2111_v1 }
 0x1e4   :  { %v2606_v30 = vpop.eup %2605  ;;  %v1697_v13 = vadd.f32 1.0, %v2604_v9  ;;  %2625 = vpow2.f32 %v2109_v34 }
 0x1e5   :  { %v2608_v14 = vpop.eup %2607  ;;  %2627 = vrcp.f32 %v1699_v15  ;;  %v1686_v24 = vadd.f32 1.0, %v2606_v30 }
 0x1e6   :  { %v2610_v4 = vpop.eup %2609  ;;  %2629 = vrcp.f32 %v1697_v13  ;;  %v1700_v39 = vadd.f32 1.0, %v2608_v14 }
 0x1e7   :  { %v2612_v59 = vpop.eup %2611  ;;  %2631 = vrcp.f32 %v1686_v24  ;;  %v1698_v18 = vadd.f32 1.0, %v2610_v4 }
 0x1e8   :  { %v2614_v51 = vpop.eup %2613  ;;  %2633 = vrcp.f32 %v1700_v39  ;;  %v1687_v10 = vadd.f32 1.0, %v2612_v59 }
 0x1e9   :  { %v2616_v44 = vpop.eup %2615  ;;  %1886 = vst [vmem:[%s3502_s3 + $0x1a8] sm:$0xff] %v2614_v51  ;;  %2635 = vrcp.f32 %v1698_v18 }
 0x1ea   :  { %v2618_v49 = vpop.eup %2617  ;;  %1877 = vst [vmem:[%s3502_s3 + $0x160] sm:$0xff] %v2616_v44  ;;  %2637 = vrcp.f32 %v1687_v10 }
 0x1eb   :  { %v2620_v27 = vpop.eup %2619  ;;  %v1703_v17 = vadd.f32 1.0, %v2618_v49 }
 0x1ec   :  { %v2622_v21 = vpop.eup %2621  ;;  %v1701_v36 = vadd.f32 1.0, %v2620_v27 }
 0x1ed   :  { %v2624_v62 = vpop.eup %2623  ;;  %2639 = vrcp.f32 %v1703_v17  ;;  %v1688_v8 = vadd.f32 1.0, %v2622_v21 }
 0x1ee   :  { %v2626_v19 = vpop.eup %2625  ;;  %2641 = vrcp.f32 %v1701_v36  ;;  %v1704_v16 = vadd.f32 1.0, %v2624_v62 }
 0x1ef   :  { %v2628_v3 = vpop.eup %2627  ;;  %2643 = vrcp.f32 %v1688_v8  ;;  %v1702_v60 = vadd.f32 1.0, %v2626_v19 }
 0x1f0   :  { %v2630_v25 = vpop.eup %2629  ;;  %1891 = vst [vmem:[%s3502_s3 + $0x1d0] sm:$0xff] %v2628_v3  ;;  %2645 = vrcp.f32 %v1704_v16 }
 0x1f1   :  { %v2632_v55 = vpop.eup %2631  ;;  %1889 = vst [vmem:[%s3502_s3 + $0x1c0] sm:$0xff] %v2630_v25  ;;  %2647 = vrcp.f32 %v1702_v60 }
 0x1f2   :  { %v2634_v52 = vpop.eup %2633  ;;  %1878 = vst [vmem:[%s3502_s3 + $0x168] sm:$0xff] %v2632_v55 }
 0x1f3   :  { %v2636_v29 = vpop.eup %2635  ;;  %1892 = vst [vmem:[%s3502_s3 + $0x1d8] sm:$0xff] %v2634_v52 }
 0x1f4   :  { %v2638_v47 = vpop.eup %2637  ;;  %1890 = vst [vmem:[%s3502_s3 + $0x1c8] sm:$0xff] %v2636_v29 }
 0x1f5   :  { %1879 = vst [vmem:[%s3502_s3 + $0x170] sm:$0xff] %v2638_v47 }
 0x1f7   :  { %v2640_v23 = vpop.eup %2639 }
 0x1f8   :  { %v2642_v40 = vpop.eup %2641  ;;  %1895 = vst [vmem:[%s3502_s3 + $0x1f0] sm:$0xff] %v2640_v23 }
 0x1f9   :  { %v2644_v33 = vpop.eup %2643  ;;  %1893 = vst [vmem:[%s3502_s3 + $0x1e0] sm:$0xff] %v2642_v40 }
 0x1fa   :  { %v2646_v5 = vpop.eup %2645  ;;  %1880 = vst [vmem:[%s3502_s3 + $0x178] sm:$0xff] %v2644_v33 }
 0x1fb   :  { %v2648_v37 = vpop.eup %2647  ;;  %1896 = vst [vmem:[%s3502_s3 + $0x1f8] sm:$0xff] %v2646_v5 }
 0x1fc   :  { %1894 = vst [vmem:[%s3502_s3 + $0x1e8] sm:$0xff] %v2648_v37 }

</bundles_post_ra>
